<compile_context>
chip_gen: v7x
topology: tpu7x:2x2x1
jax: 0.10.0
libtpu: 0.0.40
codegen_flags: <defaults>
</compile_context>

<pallas_src>
import jax
import jax.numpy as jnp
from jax import lax
from jax.experimental import pallas as pl
from jax.experimental.pallas import tpu as pltpu

_LPAD = 8   # interior W-offset inside the padded scratch (sublane aligned)
_RPAD = 8   # right zero strip width (keeps that zeroing store aligned too)


# ---------------------------------------------------------------------------
# In-kernel helpers
# ---------------------------------------------------------------------------
def _zero_halo(ref, H, W):
    """Zero only the halo cells the 3x3 taps read, with sublane-aligned stores.

    NOTE(correctness): the interior store writes rows [1, H] x cols
    [_LPAD, _LPAD+W) ONLY -- it must never touch these halo cells, otherwise a
    future tile/offset change would silently reuse stale data.
    """
    Hp2, Wp, C = ref.shape
    # Left strip (contains zero column _LPAD-1 == x[:, -1]).
    ref[:, 0:_LPAD, :] = jnp.zeros((Hp2, _LPAD, C), ref.dtype)
    # Right strip (contains zero column _LPAD+W == x[:, W]).
    ref[:, _LPAD + W:Wp, :] = jnp.zeros((Hp2, Wp - _LPAD - W, C), ref.dtype)
    # Top / bottom halo rows over the interior columns.
    ref[0:1, _LPAD:_LPAD + W, :] = jnp.zeros((1, W, C), ref.dtype)
    ref[Hp2 - 1:Hp2, _LPAD:_LPAD + W, :] = jnp.zeros((1, W, C), ref.dtype)


def _conv3x3_relu(pad_ref, w_ref, b_row, H, W):
    """3x3 SAME conv as 9 per-tap accumulated MXU matmuls, + bias + ReLU.

    pad_ref : (H+2, _LPAD+W+_RPAD, Cin)  zero-haloed scratch, interior at
              [1:H+1, _LPAD:_LPAD+W, :]
    w_ref   : (9, Cin, Cout) tap-major weights
    b_row   : (Cout,) fp32 bias
    returns : (H*W, Cout) fp32
    """
    Cin = pad_ref.shape[2]
    Cout = w_ref.shape[2]
    acc = jnp.zeros((H * W, Cout), jnp.float32)
    for ky in range(3):
        for kx in range(3):
            c0 = _LPAD - 1 + kx                       # tap column offset (-1/0/+1)
            patch = pad_ref[ky:ky + H, c0:c0 + W, :].reshape(H * W, Cin)
            acc = acc + jnp.dot(patch, w_ref[ky * 3 + kx],
                                preferred_element_type=jnp.float32)
    return jnp.maximum(acc + b_row, 0.0)


# ---------------------------------------------------------------------------
# Fused kernel: trunk conv+BN+ReLU -> (cls/reg 3x3 conv+ReLU) -> fused 1x1
# ---------------------------------------------------------------------------
def _fused_aux_kernel(x_ref, wt_ref, bt_ref, wh3_ref, bh3_ref, w1_ref, b1_ref,
                      o_ref, xpad_ref, hpad_ref):
    """One batch element per grid step; all activations stay in VMEM.

    x_ref   : (1, H, W, Cin)        input features, NHWC, compute dtype
    wt_ref  : (9, Cin, Ch)          trunk 3x3 weight, tap-major, BN folded
    bt_ref  : (1, Ch)               trunk bias with BN folded (fp32)
    wh3_ref : (9, Ch, 2*Ch)         [cls | reg] 3x3 head weights, tap-major
    bh3_ref : (1, 2*Ch)             [cls | reg] 3x3 head biases (fp32)
    w1_ref  : (2*Ch, 128)           fused, zero-padded 1x1 weights (lane dense)
    b1_ref  : (1, 128)              fused, zero-padded 1x1 biases (fp32)
    o_ref   : (1, n_out_pad, H*W)   NCHW output slab, H*W flattened (fp32)
    xpad_ref: (H+2, W+16, Cin)      VMEM scratch (zero halo)
    hpad_ref: (H+2, W+16, Ch)       VMEM scratch (zero halo, hidden activation)
    """
    H, W = x_ref.shape[1], x_ref.shape[2]
    Ch = hpad_ref.shape[2]
    n_out_pad, HW = o_ref.shape[1], o_ref.shape[2]

    # -- stage 0: aligned interior store into the zero-haloed input scratch --
    _zero_halo(xpad_ref, H, W)
    xpad_ref[1:H + 1, _LPAD:_LPAD + W, :] = x_ref[0]

    # -- stage 1: trunk 3x3 conv (BN folded) + ReLU, 9 per-tap matmuls --------
    h = _conv3x3_relu(xpad_ref, wt_ref, bt_ref[0, :], H, W)      # (HW, Ch) fp32

    # -- stage 2: keep h on-chip: aligned interior store into hidden scratch --
    _zero_halo(hpad_ref, H, W)
    hpad_ref[1:H + 1, _LPAD:_LPAD + W, :] = (
        h.reshape(H, W, Ch).astype(hpad_ref.dtype))

    # -- stage 3: both heads' 3x3 convs, 9 per-tap matmuls + ReLU -------------
    a = _conv3x3_relu(hpad_ref, wh3_ref, bh3_ref[0, :], H, W)    # (HW, 2Ch) fp32

    # -- stage 4: fused lane-dense 1x1, one on-chip transpose, NCHW-flat store -
    out = jnp.dot(a.astype(w1_ref.dtype), w1_ref[...],
                  preferred_element_type=jnp.float32) + b1_ref[0, :]   # (HW, 128)
    out_t = jnp.transpose(out, (1, 0))                                  # (128, HW)
    o_ref[...] = out_t[:n_out_pad, :].reshape(1, n_out_pad, HW)


# ---------------------------------------------------------------------------
# Wrapper: host-side weight fusion + one pallas_call over the batch
# ---------------------------------------------------------------------------
def auxiliary_network_forward(features_nchw, params, *, compute_dtype=jnp.float32):
    """boxes=None forward. NCHW in/out to match the PyTorch module.

    compute_dtype=jnp.bfloat16 (recommended on v6e/v7x) halves operand DMA
    bytes; biases/ReLU and all matmul accumulation stay fp32.  With bf16 the
    hidden activations are truncated between stages, so expect ~1e-2-level
    differences vs the fp32 reference.
    """
    B, Cin, H, W = features_nchw.shape
    Ch = params["w_conv"].shape[-1]
    num_classes = params["w_cls1"].shape[-1]
    n_out = num_classes + 4
    n_out_pad = ((n_out + 7) // 8) * 8     # sublane-aligned output channel rows
    Cslab = 128                            # lane-dense fused 1x1 matmul width
    HW = H * W
    wpad = _LPAD + W + _RPAD               # padded scratch width

    # NCHW -> NHWC so channels sit on the TPU lane axis.
    x = jnp.transpose(features_nchw, (0, 2, 3, 1)).astype(compute_dtype)

    # Fold eval-mode BatchNorm into the trunk conv:  y = (conv+b)*s + t.
    eps = 1e-5
    scale = params["bn_gamma"] / jnp.sqrt(params["bn_var"] + eps)       # (Ch,)
    shift = params["bn_beta"] - params["bn_mean"] * scale
    w_trunk = (params["w_conv"] * scale).reshape(9, Cin, Ch)            # tap-major
    b_trunk = params["b_conv"] * scale + shift                          # (Ch,)

    # Fuse the two head 3x3 convs along output channels: [cls | reg].
    w_heads3 = jnp.concatenate([params["w_cls3"], params["w_reg3"]],
                               axis=-1).reshape(9, Ch, 2 * Ch)
    b_heads3 = jnp.concatenate([params["b_cls3"], params["b_reg3"]], axis=0)

    # Fuse the two 1x1 convs into one zero-padded lane-dense matrix.
    w1 = jnp.zeros((2 * Ch, Cslab), jnp.float32)
    w1 = w1.at[:Ch, :num_classes].set(params["w_cls1"])
    w1 = w1.at[Ch:, num_classes:n_out].set(params["w_reg1"])
    b1 = jnp.zeros((Cslab,), jnp.float32)
    b1 = b1.at[:num_classes].set(params["b_cls1"])
    b1 = b1.at[num_classes:n_out].set(params["b_reg1"])

    # Explicit VMEM budget: halo scratches + double-buffered I/O + weights + live values.
    it = jnp.dtype(compute_dtype).itemsize
    step_bytes = ((H + 2) * wpad * (Cin + Ch) * it
                  + 2 * H * W * Cin * it
                  + 2 * n_out_pad * HW * 4
                  + 2 * (9 * Cin * Ch + 18 * Ch * Ch + 2 * Ch * Cslab) * it
                  + HW * (Ch + 2 * Ch + Cslab) * 4)
    vmem_limit = int(min(64 * 2 ** 20, max(32 * 2 ** 20, 2 * step_bytes)))

    slab = pl.pallas_call(
        _fused_aux_kernel,
        out_shape=jax.ShapeDtypeStruct((B, n_out_pad, HW), jnp.float32),
        grid=(B,),
        in_specs=[
            pl.BlockSpec((1, H, W, Cin), lambda b: (b, 0, 0, 0)),
            pl.BlockSpec((9, Cin, Ch), lambda b: (0, 0, 0)),
            pl.BlockSpec((1, Ch), lambda b: (0, 0)),
            pl.BlockSpec((9, Ch, 2 * Ch), lambda b: (0, 0, 0)),
            pl.BlockSpec((1, 2 * Ch), lambda b: (0, 0)),
            pl.BlockSpec((2 * Ch, Cslab), lambda b: (0, 0)),
            pl.BlockSpec((1, Cslab), lambda b: (0, 0)),
        ],
        out_specs=pl.BlockSpec((1, n_out_pad, HW), lambda b: (b, 0, 0)),
        scratch_shapes=[
            pltpu.VMEM((H + 2, wpad, Cin), compute_dtype),
            pltpu.VMEM((H + 2, wpad, Ch), compute_dtype),
        ],
        compiler_params=pltpu.CompilerParams(
            dimension_semantics=("parallel",),
            vmem_limit_bytes=vmem_limit),
    )(x,
      w_trunk.astype(compute_dtype), b_trunk.reshape(1, Ch).astype(jnp.float32),
      w_heads3.astype(compute_dtype), b_heads3.reshape(1, 2 * Ch).astype(jnp.float32),
      w1.astype(compute_dtype), b1.reshape(1, Cslab).astype(jnp.float32))

    # Slab is already NCHW with H*W flattened: slice channels + reshape (no transpose).
    cls = slab[:, :num_classes, :].reshape(B, num_classes, H, W)
    reg = slab[:, num_classes:n_out, :].reshape(B, 4, H, W)
    return cls, reg


# ---------------------------------------------------------------------------
# Pure-JAX reference (for correctness check)
# ---------------------------------------------------------------------------
def _ref_forward(features_nchw, params):
    x = jnp.transpose(features_nchw, (0, 2, 3, 1))
    dn = ("NHWC", "HWIO", "NHWC")

    def conv3(v, w, b):
        return lax.conv_general_dilated(v, w, (1, 1), "SAME",
                                        dimension_numbers=dn) + b

    eps = 1e-5
    h = conv3(x, params["w_conv"], params["b_conv"])
    h = (h - params["bn_mean"]) / jnp.sqrt(params["bn_var"] + eps)
    h = h * params["bn_gamma"] + params["bn_beta"]
    h = jnp.maximum(h, 0.0)

    c = jnp.maximum(conv3(h, params["w_cls3"], params["b_cls3"]), 0.0)
    cls = jnp.einsum("bhwc,cn->bhwn", c, params["w_cls1"]) + params["b_cls1"]
    r = jnp.maximum(conv3(h, params["w_reg3"], params["b_reg3"]), 0.0)
    reg = jnp.einsum("bhwc,cn->bhwn", r, params["w_reg1"]) + params["b_reg1"]
    return jnp.transpose(cls, (0, 3, 1, 2)), jnp.transpose(reg, (0, 3, 1, 2))


# ---------------------------------------------------------------------------
def _init_params(key, in_channels, hidden_channels, num_classes):
    ks = jax.random.split(key, 12)
    n = lambda k, s: (0.05 * jax.random.normal(k, s)).astype(jnp.float32)
    return {
        "w_conv": n(ks[0], (3, 3, in_channels, hidden_channels)),
        "b_conv": n(ks[1], (hidden_channels,)),
        "bn_gamma": 1.0 + n(ks[2], (hidden_channels,)),
        "bn_beta": n(ks[3], (hidden_channels,)),
        "bn_mean": n(ks[4], (hidden_channels,)),
        "bn_var": 1.0 + jnp.abs(n(ks[5], (hidden_channels,))),
        "w_cls3": n(ks[6], (3, 3, hidden_channels, hidden_channels)),
        "b_cls3": n(ks[7], (hidden_channels,)),
        "w_cls1": n(ks[8], (hidden_channels, num_classes)),
        "b_cls1": n(ks[9], (num_classes,)),
        "w_reg3": n(ks[10], (3, 3, hidden_channels, hidden_channels)),
        "b_reg3": n(ks[11], (hidden_channels,)),
        "w_reg1": n(jax.random.fold_in(key, 100), (hidden_channels, 4)),
        "b_reg1": n(jax.random.fold_in(key, 101), (4,)),
    }


if __name__ == "__main__":
    B, Cin, H, W = 2, 16, 16, 16
    hidden, num_classes = 32, 20

    key = jax.random.PRNGKey(0)
    k_x, k_p = jax.random.split(key)
    features = jax.random.normal(k_x, (B, Cin, H, W), dtype=jnp.float32)  # NCHW
    params = _init_params(k_p, Cin, hidden, num_classes)

    fwd = jax.jit(auxiliary_network_forward, static_argnames=("compute_dtype",))

    # fp32 operands: tight check against the pure-JAX reference.
    cls_scores, bbox_preds = fwd(features, params, compute_dtype=jnp.float32)
    cls_scores = jax.block_until_ready(cls_scores)
    bbox_preds = jax.block_until_ready(bbox_preds)

    assert cls_scores.shape == (B, num_classes, H, W)
    assert bbox_preds.shape == (B, 4, H, W)

    cls_ref, reg_ref = _ref_forward(features, params)
    assert jnp.allclose(cls_scores, cls_ref, rtol=1e-4, atol=1e-4)
    assert jnp.allclose(bbox_preds, reg_ref, rtol=1e-4, atol=1e-4)

    # bf16 operand path (recommended default on v6e/v7x): loose tolerance since
    # the hidden activations are truncated to bf16 between stages.
    cls_bf, reg_bf = fwd(features, params, compute_dtype=jnp.bfloat16)
    cls_bf = jax.block_until_ready(cls_bf)
    reg_bf = jax.block_until_ready(reg_bf)
    assert jnp.allclose(cls_bf, cls_ref, rtol=5e-2, atol=5e-2)
    assert jnp.allclose(reg_bf, reg_ref, rtol=5e-2, atol=5e-2)

    print("KERNEL_OK")
</pallas_src>

<mosaic_0001>
module attributes {stable_mosaic.version = 11 : i64} {
  func.func @_fused_aux_kernel(%arg0: i32, %arg1: memref<1x16x16x16xf32, #tpu.memory_space<vmem>>, %arg2: memref<9x16x32xf32, #tpu.memory_space<vmem>>, %arg3: memref<1x32xf32, #tpu.memory_space<vmem>>, %arg4: memref<9x32x64xf32, #tpu.memory_space<vmem>>, %arg5: memref<1x64xf32, #tpu.memory_space<vmem>>, %arg6: memref<64x128xf32, #tpu.memory_space<vmem>>, %arg7: memref<1x128xf32, #tpu.memory_space<vmem>>, %arg8: memref<1x24x256xf32, #tpu.memory_space<vmem>>, %arg9: memref<18x32x16xf32, #tpu.memory_space<vmem>>, %arg10: memref<18x32x32xf32, #tpu.memory_space<vmem>>) attributes {dimension_semantics = [#tpu.dimension_semantics<parallel>], iteration_bounds = array<i64: 2>, scalar_prefetch = 0 : i64, scratch_operands = 2 : i64, tpu.core_type = #tpu.core_type<tc>, window_params = [{transform_indices = @transform_0, window_bounds = array<i64: 1, 16, 16, 16>}, {pipeline_mode = #tpu.pipeline_mode<synchronous>, transform_indices = @transform_1, window_bounds = array<i64: 9, 16, 32>}, {pipeline_mode = #tpu.pipeline_mode<synchronous>, transform_indices = @transform_2, window_bounds = array<i64: 1, 32>}, {pipeline_mode = #tpu.pipeline_mode<synchronous>, transform_indices = @transform_3, window_bounds = array<i64: 9, 32, 64>}, {pipeline_mode = #tpu.pipeline_mode<synchronous>, transform_indices = @transform_4, window_bounds = array<i64: 1, 64>}, {pipeline_mode = #tpu.pipeline_mode<synchronous>, transform_indices = @transform_5, window_bounds = array<i64: 64, 128>}, {pipeline_mode = #tpu.pipeline_mode<synchronous>, transform_indices = @transform_6, window_bounds = array<i64: 1, 128>}, {transform_indices = @transform_7, window_bounds = array<i64: 1, 24, 256>}]} {
    %cst = arith.constant 0.000000e+00 : f32
    %0 = vector.broadcast %cst : f32 to vector<18x8x16xf32>
    %c0 = arith.constant 0 : index
    %c0_0 = arith.constant 0 : index
    %c0_1 = arith.constant 0 : index
    %1 = vector.load %arg9[%c0, %c0_0, %c0_1] : memref<18x32x16xf32, #tpu.memory_space<vmem>>, vector<18x8x16xf32>
    tpu.vector_store %arg9[%c0, %c0_0, %c0_1], %0 {strides = array<i32>} : memref<18x32x16xf32, #tpu.memory_space<vmem>>, vector<18x8x16xf32>,
    %cst_2 = arith.constant 0.000000e+00 : f32
    %2 = vector.broadcast %cst_2 : f32 to vector<18x8x16xf32>
    %c0_3 = arith.constant 0 : index
    %c24 = arith.constant 24 : index
    %c0_4 = arith.constant 0 : index
    %3 = vector.load %arg9[%c0_3, %c24, %c0_4] : memref<18x32x16xf32, #tpu.memory_space<vmem>>, vector<18x8x16xf32>
    tpu.vector_store %arg9[%c0_3, %c24, %c0_4], %2 {strides = array<i32>} : memref<18x32x16xf32, #tpu.memory_space<vmem>>, vector<18x8x16xf32>,
    %cst_5 = arith.constant 0.000000e+00 : f32
    %4 = vector.broadcast %cst_5 : f32 to vector<1x16x16xf32>
    %c0_6 = arith.constant 0 : index
    %c8 = arith.constant 8 : index
    %c0_7 = arith.constant 0 : index
    %5 = vector.load %arg9[%c0_6, %c8, %c0_7] : memref<18x32x16xf32, #tpu.memory_space<vmem>>, vector<1x16x16xf32>
    tpu.vector_store %arg9[%c0_6, %c8, %c0_7], %4 {strides = array<i32>} : memref<18x32x16xf32, #tpu.memory_space<vmem>>, vector<1x16x16xf32>,
    %cst_8 = arith.constant 0.000000e+00 : f32
    %6 = vector.broadcast %cst_8 : f32 to vector<1x16x16xf32>
    %c17 = arith.constant 17 : index
    %c8_9 = arith.constant 8 : index
    %c0_10 = arith.constant 0 : index
    %7 = vector.load %arg9[%c17, %c8_9, %c0_10] : memref<18x32x16xf32, #tpu.memory_space<vmem>>, vector<1x16x16xf32>
    tpu.vector_store %arg9[%c17, %c8_9, %c0_10], %6 {strides = array<i32>} : memref<18x32x16xf32, #tpu.memory_space<vmem>>, vector<1x16x16xf32>,
    %c0_11 = arith.constant 0 : index
    %c0_12 = arith.constant 0 : index
    %c0_13 = arith.constant 0 : index
    %c0_14 = arith.constant 0 : index
    %8 = vector.load %arg1[%c0_11, %c0_12, %c0_13, %c0_14] : memref<1x16x16x16xf32, #tpu.memory_space<vmem>>, vector<1x16x16x16xf32>
    %9 = vector.shape_cast %8 : vector<1x16x16x16xf32> to vector<16x16x16xf32>
    %c1 = arith.constant 1 : index
    %c8_15 = arith.constant 8 : index
    %c0_16 = arith.constant 0 : index
    %10 = vector.load %arg9[%c1, %c8_15, %c0_16] : memref<18x32x16xf32, #tpu.memory_space<vmem>>, vector<16x16x16xf32>
    tpu.vector_store %arg9[%c1, %c8_15, %c0_16], %9 {strides = array<i32>} : memref<18x32x16xf32, #tpu.memory_space<vmem>>, vector<16x16x16xf32>,
    %c0_17 = arith.constant 0 : index
    %c0_18 = arith.constant 0 : index
    %11 = vector.load %arg3[%c0_17, %c0_18] : memref<1x32xf32, #tpu.memory_space<vmem>>, vector<1x32xf32>
    %12 = vector.shape_cast %11 : vector<1x32xf32> to vector<32xf32>
    %cst_19 = arith.constant 0.000000e+00 : f32
    %13 = vector.broadcast %cst_19 : f32 to vector<256x32xf32>
    %c0_20 = arith.constant 0 : index
    %c7 = arith.constant 7 : index
    %c0_21 = arith.constant 0 : index
    %14 = vector.load %arg9[%c0_20, %c7, %c0_21] : memref<18x32x16xf32, #tpu.memory_space<vmem>>, vector<16x16x16xf32>
    %15 = vector.shape_cast %14 : vector<16x16x16xf32> to vector<256x16xf32>
    %c0_22 = arith.constant 0 : index
    %c0_23 = arith.constant 0 : index
    %c0_24 = arith.constant 0 : index
    %16 = vector.load %arg2[%c0_22, %c0_23, %c0_24] : memref<9x16x32xf32, #tpu.memory_space<vmem>>, vector<1x16x32xf32>
    %17 = vector.shape_cast %16 : vector<1x16x32xf32> to vector<16x32xf32>
    %cst_25 = arith.constant dense<0.000000e+00> : vector<256x32xf32>
    %18 = tpu.matmul %15, %17, %cst_25 {dimension_numbers = #tpu.dot_dimension_numbers<[1], [0], [0], [1], [0, 0, 1, 1], [], []>} : vector<256x16xf32>, vector<16x32xf32>, vector<256x32xf32> -> vector<256x32xf32>
    %19 = arith.addf %13, %18 : vector<256x32xf32>
    %c0_26 = arith.constant 0 : index
    %c8_27 = arith.constant 8 : index
    %c0_28 = arith.constant 0 : index
    %20 = vector.load %arg9[%c0_26, %c8_27, %c0_28] : memref<18x32x16xf32, #tpu.memory_space<vmem>>, vector<16x16x16xf32>
    %21 = vector.shape_cast %20 : vector<16x16x16xf32> to vector<256x16xf32>
    %c1_29 = arith.constant 1 : index
    %c0_30 = arith.constant 0 : index
    %c0_31 = arith.constant 0 : index
    %22 = vector.load %arg2[%c1_29, %c0_30, %c0_31] : memref<9x16x32xf32, #tpu.memory_space<vmem>>, vector<1x16x32xf32>
    %23 = vector.shape_cast %22 : vector<1x16x32xf32> to vector<16x32xf32>
    %cst_32 = arith.constant dense<0.000000e+00> : vector<256x32xf32>
    %24 = tpu.matmul %21, %23, %cst_32 {dimension_numbers = #tpu.dot_dimension_numbers<[1], [0], [0], [1], [0, 0, 1, 1], [], []>} : vector<256x16xf32>, vector<16x32xf32>, vector<256x32xf32> -> vector<256x32xf32>
    %25 = arith.addf %19, %24 : vector<256x32xf32>
    %c0_33 = arith.constant 0 : index
    %c9 = arith.constant 9 : index
    %c0_34 = arith.constant 0 : index
    %26 = vector.load %arg9[%c0_33, %c9, %c0_34] : memref<18x32x16xf32, #tpu.memory_space<vmem>>, vector<16x16x16xf32>
    %27 = vector.shape_cast %26 : vector<16x16x16xf32> to vector<256x16xf32>
    %c2 = arith.constant 2 : index
    %c0_35 = arith.constant 0 : index
    %c0_36 = arith.constant 0 : index
    %28 = vector.load %arg2[%c2, %c0_35, %c0_36] : memref<9x16x32xf32, #tpu.memory_space<vmem>>, vector<1x16x32xf32>
    %29 = vector.shape_cast %28 : vector<1x16x32xf32> to vector<16x32xf32>
    %cst_37 = arith.constant dense<0.000000e+00> : vector<256x32xf32>
    %30 = tpu.matmul %27, %29, %cst_37 {dimension_numbers = #tpu.dot_dimension_numbers<[1], [0], [0], [1], [0, 0, 1, 1], [], []>} : vector<256x16xf32>, vector<16x32xf32>, vector<256x32xf32> -> vector<256x32xf32>
    %31 = arith.addf %25, %30 : vector<256x32xf32>
    %c1_38 = arith.constant 1 : index
    %c7_39 = arith.constant 7 : index
    %c0_40 = arith.constant 0 : index
    %32 = vector.load %arg9[%c1_38, %c7_39, %c0_40] : memref<18x32x16xf32, #tpu.memory_space<vmem>>, vector<16x16x16xf32>
    %33 = vector.shape_cast %32 : vector<16x16x16xf32> to vector<256x16xf32>
    %c3 = arith.constant 3 : index
    %c0_41 = arith.constant 0 : index
    %c0_42 = arith.constant 0 : index
    %34 = vector.load %arg2[%c3, %c0_41, %c0_42] : memref<9x16x32xf32, #tpu.memory_space<vmem>>, vector<1x16x32xf32>
    %35 = vector.shape_cast %34 : vector<1x16x32xf32> to vector<16x32xf32>
    %cst_43 = arith.constant dense<0.000000e+00> : vector<256x32xf32>
    %36 = tpu.matmul %33, %35, %cst_43 {dimension_numbers = #tpu.dot_dimension_numbers<[1], [0], [0], [1], [0, 0, 1, 1], [], []>} : vector<256x16xf32>, vector<16x32xf32>, vector<256x32xf32> -> vector<256x32xf32>
    %37 = arith.addf %31, %36 : vector<256x32xf32>
    %c1_44 = arith.constant 1 : index
    %c8_45 = arith.constant 8 : index
    %c0_46 = arith.constant 0 : index
    %38 = vector.load %arg9[%c1_44, %c8_45, %c0_46] : memref<18x32x16xf32, #tpu.memory_space<vmem>>, vector<16x16x16xf32>
    %39 = vector.shape_cast %38 : vector<16x16x16xf32> to vector<256x16xf32>
    %c4 = arith.constant 4 : index
    %c0_47 = arith.constant 0 : index
    %c0_48 = arith.constant 0 : index
    %40 = vector.load %arg2[%c4, %c0_47, %c0_48] : memref<9x16x32xf32, #tpu.memory_space<vmem>>, vector<1x16x32xf32>
    %41 = vector.shape_cast %40 : vector<1x16x32xf32> to vector<16x32xf32>
    %cst_49 = arith.constant dense<0.000000e+00> : vector<256x32xf32>
    %42 = tpu.matmul %39, %41, %cst_49 {dimension_numbers = #tpu.dot_dimension_numbers<[1], [0], [0], [1], [0, 0, 1, 1], [], []>} : vector<256x16xf32>, vector<16x32xf32>, vector<256x32xf32> -> vector<256x32xf32>
    %43 = arith.addf %37, %42 : vector<256x32xf32>
    %c1_50 = arith.constant 1 : index
    %c9_51 = arith.constant 9 : index
    %c0_52 = arith.constant 0 : index
    %44 = vector.load %arg9[%c1_50, %c9_51, %c0_52] : memref<18x32x16xf32, #tpu.memory_space<vmem>>, vector<16x16x16xf32>
    %45 = vector.shape_cast %44 : vector<16x16x16xf32> to vector<256x16xf32>
    %c5 = arith.constant 5 : index
    %c0_53 = arith.constant 0 : index
    %c0_54 = arith.constant 0 : index
    %46 = vector.load %arg2[%c5, %c0_53, %c0_54] : memref<9x16x32xf32, #tpu.memory_space<vmem>>, vector<1x16x32xf32>
    %47 = vector.shape_cast %46 : vector<1x16x32xf32> to vector<16x32xf32>
    %cst_55 = arith.constant dense<0.000000e+00> : vector<256x32xf32>
    %48 = tpu.matmul %45, %47, %cst_55 {dimension_numbers = #tpu.dot_dimension_numbers<[1], [0], [0], [1], [0, 0, 1, 1], [], []>} : vector<256x16xf32>, vector<16x32xf32>, vector<256x32xf32> -> vector<256x32xf32>
    %49 = arith.addf %43, %48 : vector<256x32xf32>
    %c2_56 = arith.constant 2 : index
    %c7_57 = arith.constant 7 : index
    %c0_58 = arith.constant 0 : index
    %50 = vector.load %arg9[%c2_56, %c7_57, %c0_58] : memref<18x32x16xf32, #tpu.memory_space<vmem>>, vector<16x16x16xf32>
    %51 = vector.shape_cast %50 : vector<16x16x16xf32> to vector<256x16xf32>
    %c6 = arith.constant 6 : index
    %c0_59 = arith.constant 0 : index
    %c0_60 = arith.constant 0 : index
    %52 = vector.load %arg2[%c6, %c0_59, %c0_60] : memref<9x16x32xf32, #tpu.memory_space<vmem>>, vector<1x16x32xf32>
    %53 = vector.shape_cast %52 : vector<1x16x32xf32> to vector<16x32xf32>
    %cst_61 = arith.constant dense<0.000000e+00> : vector<256x32xf32>
    %54 = tpu.matmul %51, %53, %cst_61 {dimension_numbers = #tpu.dot_dimension_numbers<[1], [0], [0], [1], [0, 0, 1, 1], [], []>} : vector<256x16xf32>, vector<16x32xf32>, vector<256x32xf32> -> vector<256x32xf32>
    %55 = arith.addf %49, %54 : vector<256x32xf32>
    %c2_62 = arith.constant 2 : index
    %c8_63 = arith.constant 8 : index
    %c0_64 = arith.constant 0 : index
    %56 = vector.load %arg9[%c2_62, %c8_63, %c0_64] : memref<18x32x16xf32, #tpu.memory_space<vmem>>, vector<16x16x16xf32>
    %57 = vector.shape_cast %56 : vector<16x16x16xf32> to vector<256x16xf32>
    %c7_65 = arith.constant 7 : index
    %c0_66 = arith.constant 0 : index
    %c0_67 = arith.constant 0 : index
    %58 = vector.load %arg2[%c7_65, %c0_66, %c0_67] : memref<9x16x32xf32, #tpu.memory_space<vmem>>, vector<1x16x32xf32>
    %59 = vector.shape_cast %58 : vector<1x16x32xf32> to vector<16x32xf32>
    %cst_68 = arith.constant dense<0.000000e+00> : vector<256x32xf32>
    %60 = tpu.matmul %57, %59, %cst_68 {dimension_numbers = #tpu.dot_dimension_numbers<[1], [0], [0], [1], [0, 0, 1, 1], [], []>} : vector<256x16xf32>, vector<16x32xf32>, vector<256x32xf32> -> vector<256x32xf32>
    %61 = arith.addf %55, %60 : vector<256x32xf32>
    %c2_69 = arith.constant 2 : index
    %c9_70 = arith.constant 9 : index
    %c0_71 = arith.constant 0 : index
    %62 = vector.load %arg9[%c2_69, %c9_70, %c0_71] : memref<18x32x16xf32, #tpu.memory_space<vmem>>, vector<16x16x16xf32>
    %63 = vector.shape_cast %62 : vector<16x16x16xf32> to vector<256x16xf32>
    %c8_72 = arith.constant 8 : index
    %c0_73 = arith.constant 0 : index
    %c0_74 = arith.constant 0 : index
    %64 = vector.load %arg2[%c8_72, %c0_73, %c0_74] : memref<9x16x32xf32, #tpu.memory_space<vmem>>, vector<1x16x32xf32>
    %65 = vector.shape_cast %64 : vector<1x16x32xf32> to vector<16x32xf32>
    %cst_75 = arith.constant dense<0.000000e+00> : vector<256x32xf32>
    %66 = tpu.matmul %63, %65, %cst_75 {dimension_numbers = #tpu.dot_dimension_numbers<[1], [0], [0], [1], [0, 0, 1, 1], [], []>} : vector<256x16xf32>, vector<16x32xf32>, vector<256x32xf32> -> vector<256x32xf32>
    %67 = arith.addf %61, %66 : vector<256x32xf32>
    %68 = vector.shape_cast %12 : vector<32xf32> to vector<1x32xf32>
    %69 = vector.broadcast %68 : vector<1x32xf32> to vector<256x32xf32>
    %70 = arith.addf %67, %69 : vector<256x32xf32>
    %cst_76 = arith.constant 0.000000e+00 : f32
    %71 = vector.broadcast %cst_76 : f32 to vector<256x32xf32>
    %72 = arith.maximumf %70, %71 : vector<256x32xf32>
    %cst_77 = arith.constant 0.000000e+00 : f32
    %73 = vector.broadcast %cst_77 : f32 to vector<18x8x32xf32>
    %c0_78 = arith.constant 0 : index
    %c0_79 = arith.constant 0 : index
    %c0_80 = arith.constant 0 : index
    %74 = vector.load %arg10[%c0_78, %c0_79, %c0_80] : memref<18x32x32xf32, #tpu.memory_space<vmem>>, vector<18x8x32xf32>
    tpu.vector_store %arg10[%c0_78, %c0_79, %c0_80], %73 {strides = array<i32>} : memref<18x32x32xf32, #tpu.memory_space<vmem>>, vector<18x8x32xf32>,
    %cst_81 = arith.constant 0.000000e+00 : f32
    %75 = vector.broadcast %cst_81 : f32 to vector<18x8x32xf32>
    %c0_82 = arith.constant 0 : index
    %c24_83 = arith.constant 24 : index
    %c0_84 = arith.constant 0 : index
    %76 = vector.load %arg10[%c0_82, %c24_83, %c0_84] : memref<18x32x32xf32, #tpu.memory_space<vmem>>, vector<18x8x32xf32>
    tpu.vector_store %arg10[%c0_82, %c24_83, %c0_84], %75 {strides = array<i32>} : memref<18x32x32xf32, #tpu.memory_space<vmem>>, vector<18x8x32xf32>,
    %cst_85 = arith.constant 0.000000e+00 : f32
    %77 = vector.broadcast %cst_85 : f32 to vector<1x16x32xf32>
    %c0_86 = arith.constant 0 : index
    %c8_87 = arith.constant 8 : index
    %c0_88 = arith.constant 0 : index
    %78 = vector.load %arg10[%c0_86, %c8_87, %c0_88] : memref<18x32x32xf32, #tpu.memory_space<vmem>>, vector<1x16x32xf32>
    tpu.vector_store %arg10[%c0_86, %c8_87, %c0_88], %77 {strides = array<i32>} : memref<18x32x32xf32, #tpu.memory_space<vmem>>, vector<1x16x32xf32>,
    %cst_89 = arith.constant 0.000000e+00 : f32
    %79 = vector.broadcast %cst_89 : f32 to vector<1x16x32xf32>
    %c17_90 = arith.constant 17 : index
    %c8_91 = arith.constant 8 : index
    %c0_92 = arith.constant 0 : index
    %80 = vector.load %arg10[%c17_90, %c8_91, %c0_92] : memref<18x32x32xf32, #tpu.memory_space<vmem>>, vector<1x16x32xf32>
    tpu.vector_store %arg10[%c17_90, %c8_91, %c0_92], %79 {strides = array<i32>} : memref<18x32x32xf32, #tpu.memory_space<vmem>>, vector<1x16x32xf32>,
    %81 = vector.shape_cast %72 : vector<256x32xf32> to vector<16x16x32xf32>
    %c1_93 = arith.constant 1 : index
    %c8_94 = arith.constant 8 : index
    %c0_95 = arith.constant 0 : index
    %82 = vector.load %arg10[%c1_93, %c8_94, %c0_95] : memref<18x32x32xf32, #tpu.memory_space<vmem>>, vector<16x16x32xf32>
    tpu.vector_store %arg10[%c1_93, %c8_94, %c0_95], %81 {strides = array<i32>} : memref<18x32x32xf32, #tpu.memory_space<vmem>>, vector<16x16x32xf32>,
    %c0_96 = arith.constant 0 : index
    %c0_97 = arith.constant 0 : index
    %83 = vector.load %arg5[%c0_96, %c0_97] : memref<1x64xf32, #tpu.memory_space<vmem>>, vector<1x64xf32>
    %84 = vector.shape_cast %83 : vector<1x64xf32> to vector<64xf32>
    %cst_98 = arith.constant 0.000000e+00 : f32
    %85 = vector.broadcast %cst_98 : f32 to vector<256x64xf32>
    %c0_99 = arith.constant 0 : index
    %c7_100 = arith.constant 7 : index
    %c0_101 = arith.constant 0 : index
    %86 = vector.load %arg10[%c0_99, %c7_100, %c0_101] : memref<18x32x32xf32, #tpu.memory_space<vmem>>, vector<16x16x32xf32>
    %87 = vector.shape_cast %86 : vector<16x16x32xf32> to vector<256x32xf32>
    %c0_102 = arith.constant 0 : index
    %c0_103 = arith.constant 0 : index
    %c0_104 = arith.constant 0 : index
    %88 = vector.load %arg4[%c0_102, %c0_103, %c0_104] : memref<9x32x64xf32, #tpu.memory_space<vmem>>, vector<1x32x64xf32>
    %89 = vector.shape_cast %88 : vector<1x32x64xf32> to vector<32x64xf32>
    %cst_105 = arith.constant dense<0.000000e+00> : vector<256x64xf32>
    %90 = tpu.matmul %87, %89, %cst_105 {dimension_numbers = #tpu.dot_dimension_numbers<[1], [0], [0], [1], [0, 0, 1, 1], [], []>} : vector<256x32xf32>, vector<32x64xf32>, vector<256x64xf32> -> vector<256x64xf32>
    %91 = arith.addf %85, %90 : vector<256x64xf32>
    %c0_106 = arith.constant 0 : index
    %c8_107 = arith.constant 8 : index
    %c0_108 = arith.constant 0 : index
    %92 = vector.load %arg10[%c0_106, %c8_107, %c0_108] : memref<18x32x32xf32, #tpu.memory_space<vmem>>, vector<16x16x32xf32>
    %93 = vector.shape_cast %92 : vector<16x16x32xf32> to vector<256x32xf32>
    %c1_109 = arith.constant 1 : index
    %c0_110 = arith.constant 0 : index
    %c0_111 = arith.constant 0 : index
    %94 = vector.load %arg4[%c1_109, %c0_110, %c0_111] : memref<9x32x64xf32, #tpu.memory_space<vmem>>, vector<1x32x64xf32>
    %95 = vector.shape_cast %94 : vector<1x32x64xf32> to vector<32x64xf32>
    %cst_112 = arith.constant dense<0.000000e+00> : vector<256x64xf32>
    %96 = tpu.matmul %93, %95, %cst_112 {dimension_numbers = #tpu.dot_dimension_numbers<[1], [0], [0], [1], [0, 0, 1, 1], [], []>} : vector<256x32xf32>, vector<32x64xf32>, vector<256x64xf32> -> vector<256x64xf32>
    %97 = arith.addf %91, %96 : vector<256x64xf32>
    %c0_113 = arith.constant 0 : index
    %c9_114 = arith.constant 9 : index
    %c0_115 = arith.constant 0 : index
    %98 = vector.load %arg10[%c0_113, %c9_114, %c0_115] : memref<18x32x32xf32, #tpu.memory_space<vmem>>, vector<16x16x32xf32>
    %99 = vector.shape_cast %98 : vector<16x16x32xf32> to vector<256x32xf32>
    %c2_116 = arith.constant 2 : index
    %c0_117 = arith.constant 0 : index
    %c0_118 = arith.constant 0 : index
    %100 = vector.load %arg4[%c2_116, %c0_117, %c0_118] : memref<9x32x64xf32, #tpu.memory_space<vmem>>, vector<1x32x64xf32>
    %101 = vector.shape_cast %100 : vector<1x32x64xf32> to vector<32x64xf32>
    %cst_119 = arith.constant dense<0.000000e+00> : vector<256x64xf32>
    %102 = tpu.matmul %99, %101, %cst_119 {dimension_numbers = #tpu.dot_dimension_numbers<[1], [0], [0], [1], [0, 0, 1, 1], [], []>} : vector<256x32xf32>, vector<32x64xf32>, vector<256x64xf32> -> vector<256x64xf32>
    %103 = arith.addf %97, %102 : vector<256x64xf32>
    %c1_120 = arith.constant 1 : index
    %c7_121 = arith.constant 7 : index
    %c0_122 = arith.constant 0 : index
    %104 = vector.load %arg10[%c1_120, %c7_121, %c0_122] : memref<18x32x32xf32, #tpu.memory_space<vmem>>, vector<16x16x32xf32>
    %105 = vector.shape_cast %104 : vector<16x16x32xf32> to vector<256x32xf32>
    %c3_123 = arith.constant 3 : index
    %c0_124 = arith.constant 0 : index
    %c0_125 = arith.constant 0 : index
    %106 = vector.load %arg4[%c3_123, %c0_124, %c0_125] : memref<9x32x64xf32, #tpu.memory_space<vmem>>, vector<1x32x64xf32>
    %107 = vector.shape_cast %106 : vector<1x32x64xf32> to vector<32x64xf32>
    %cst_126 = arith.constant dense<0.000000e+00> : vector<256x64xf32>
    %108 = tpu.matmul %105, %107, %cst_126 {dimension_numbers = #tpu.dot_dimension_numbers<[1], [0], [0], [1], [0, 0, 1, 1], [], []>} : vector<256x32xf32>, vector<32x64xf32>, vector<256x64xf32> -> vector<256x64xf32>
    %109 = arith.addf %103, %108 : vector<256x64xf32>
    %c1_127 = arith.constant 1 : index
    %c8_128 = arith.constant 8 : index
    %c0_129 = arith.constant 0 : index
    %110 = vector.load %arg10[%c1_127, %c8_128, %c0_129] : memref<18x32x32xf32, #tpu.memory_space<vmem>>, vector<16x16x32xf32>
    %111 = vector.shape_cast %110 : vector<16x16x32xf32> to vector<256x32xf32>
    %c4_130 = arith.constant 4 : index
    %c0_131 = arith.constant 0 : index
    %c0_132 = arith.constant 0 : index
    %112 = vector.load %arg4[%c4_130, %c0_131, %c0_132] : memref<9x32x64xf32, #tpu.memory_space<vmem>>, vector<1x32x64xf32>
    %113 = vector.shape_cast %112 : vector<1x32x64xf32> to vector<32x64xf32>
    %cst_133 = arith.constant dense<0.000000e+00> : vector<256x64xf32>
    %114 = tpu.matmul %111, %113, %cst_133 {dimension_numbers = #tpu.dot_dimension_numbers<[1], [0], [0], [1], [0, 0, 1, 1], [], []>} : vector<256x32xf32>, vector<32x64xf32>, vector<256x64xf32> -> vector<256x64xf32>
    %115 = arith.addf %109, %114 : vector<256x64xf32>
    %c1_134 = arith.constant 1 : index
    %c9_135 = arith.constant 9 : index
    %c0_136 = arith.constant 0 : index
    %116 = vector.load %arg10[%c1_134, %c9_135, %c0_136] : memref<18x32x32xf32, #tpu.memory_space<vmem>>, vector<16x16x32xf32>
    %117 = vector.shape_cast %116 : vector<16x16x32xf32> to vector<256x32xf32>
    %c5_137 = arith.constant 5 : index
    %c0_138 = arith.constant 0 : index
    %c0_139 = arith.constant 0 : index
    %118 = vector.load %arg4[%c5_137, %c0_138, %c0_139] : memref<9x32x64xf32, #tpu.memory_space<vmem>>, vector<1x32x64xf32>
    %119 = vector.shape_cast %118 : vector<1x32x64xf32> to vector<32x64xf32>
    %cst_140 = arith.constant dense<0.000000e+00> : vector<256x64xf32>
    %120 = tpu.matmul %117, %119, %cst_140 {dimension_numbers = #tpu.dot_dimension_numbers<[1], [0], [0], [1], [0, 0, 1, 1], [], []>} : vector<256x32xf32>, vector<32x64xf32>, vector<256x64xf32> -> vector<256x64xf32>
    %121 = arith.addf %115, %120 : vector<256x64xf32>
    %c2_141 = arith.constant 2 : index
    %c7_142 = arith.constant 7 : index
    %c0_143 = arith.constant 0 : index
    %122 = vector.load %arg10[%c2_141, %c7_142, %c0_143] : memref<18x32x32xf32, #tpu.memory_space<vmem>>, vector<16x16x32xf32>
    %123 = vector.shape_cast %122 : vector<16x16x32xf32> to vector<256x32xf32>
    %c6_144 = arith.constant 6 : index
    %c0_145 = arith.constant 0 : index
    %c0_146 = arith.constant 0 : index
    %124 = vector.load %arg4[%c6_144, %c0_145, %c0_146] : memref<9x32x64xf32, #tpu.memory_space<vmem>>, vector<1x32x64xf32>
    %125 = vector.shape_cast %124 : vector<1x32x64xf32> to vector<32x64xf32>
    %cst_147 = arith.constant dense<0.000000e+00> : vector<256x64xf32>
    %126 = tpu.matmul %123, %125, %cst_147 {dimension_numbers = #tpu.dot_dimension_numbers<[1], [0], [0], [1], [0, 0, 1, 1], [], []>} : vector<256x32xf32>, vector<32x64xf32>, vector<256x64xf32> -> vector<256x64xf32>
    %127 = arith.addf %121, %126 : vector<256x64xf32>
    %c2_148 = arith.constant 2 : index
    %c8_149 = arith.constant 8 : index
    %c0_150 = arith.constant 0 : index
    %128 = vector.load %arg10[%c2_148, %c8_149, %c0_150] : memref<18x32x32xf32, #tpu.memory_space<vmem>>, vector<16x16x32xf32>
    %129 = vector.shape_cast %128 : vector<16x16x32xf32> to vector<256x32xf32>
    %c7_151 = arith.constant 7 : index
    %c0_152 = arith.constant 0 : index
    %c0_153 = arith.constant 0 : index
    %130 = vector.load %arg4[%c7_151, %c0_152, %c0_153] : memref<9x32x64xf32, #tpu.memory_space<vmem>>, vector<1x32x64xf32>
    %131 = vector.shape_cast %130 : vector<1x32x64xf32> to vector<32x64xf32>
    %cst_154 = arith.constant dense<0.000000e+00> : vector<256x64xf32>
    %132 = tpu.matmul %129, %131, %cst_154 {dimension_numbers = #tpu.dot_dimension_numbers<[1], [0], [0], [1], [0, 0, 1, 1], [], []>} : vector<256x32xf32>, vector<32x64xf32>, vector<256x64xf32> -> vector<256x64xf32>
    %133 = arith.addf %127, %132 : vector<256x64xf32>
    %c2_155 = arith.constant 2 : index
    %c9_156 = arith.constant 9 : index
    %c0_157 = arith.constant 0 : index
    %134 = vector.load %arg10[%c2_155, %c9_156, %c0_157] : memref<18x32x32xf32, #tpu.memory_space<vmem>>, vector<16x16x32xf32>
    %135 = vector.shape_cast %134 : vector<16x16x32xf32> to vector<256x32xf32>
    %c8_158 = arith.constant 8 : index
    %c0_159 = arith.constant 0 : index
    %c0_160 = arith.constant 0 : index
    %136 = vector.load %arg4[%c8_158, %c0_159, %c0_160] : memref<9x32x64xf32, #tpu.memory_space<vmem>>, vector<1x32x64xf32>
    %137 = vector.shape_cast %136 : vector<1x32x64xf32> to vector<32x64xf32>
    %cst_161 = arith.constant dense<0.000000e+00> : vector<256x64xf32>
    %138 = tpu.matmul %135, %137, %cst_161 {dimension_numbers = #tpu.dot_dimension_numbers<[1], [0], [0], [1], [0, 0, 1, 1], [], []>} : vector<256x32xf32>, vector<32x64xf32>, vector<256x64xf32> -> vector<256x64xf32>
    %139 = arith.addf %133, %138 : vector<256x64xf32>
    %140 = vector.shape_cast %84 : vector<64xf32> to vector<1x64xf32>
    %141 = vector.broadcast %140 : vector<1x64xf32> to vector<256x64xf32>
    %142 = arith.addf %139, %141 : vector<256x64xf32>
    %cst_162 = arith.constant 0.000000e+00 : f32
    %143 = vector.broadcast %cst_162 : f32 to vector<256x64xf32>
    %144 = arith.maximumf %142, %143 : vector<256x64xf32>
    %c0_163 = arith.constant 0 : index
    %c0_164 = arith.constant 0 : index
    %145 = vector.load %arg6[%c0_163, %c0_164] : memref<64x128xf32, #tpu.memory_space<vmem>>, vector<64x128xf32>
    %cst_165 = arith.constant dense<0.000000e+00> : vector<256x128xf32>
    %146 = tpu.matmul %144, %145, %cst_165 {dimension_numbers = #tpu.dot_dimension_numbers<[1], [0], [0], [1], [0, 0, 1, 1], [], []>} : vector<256x64xf32>, vector<64x128xf32>, vector<256x128xf32> -> vector<256x128xf32>
    %c0_166 = arith.constant 0 : index
    %c0_167 = arith.constant 0 : index
    %147 = vector.load %arg7[%c0_166, %c0_167] : memref<1x128xf32, #tpu.memory_space<vmem>>, vector<1x128xf32>
    %148 = vector.shape_cast %147 : vector<1x128xf32> to vector<128xf32>
    %149 = vector.shape_cast %148 : vector<128xf32> to vector<1x128xf32>
    %150 = vector.broadcast %149 : vector<1x128xf32> to vector<256x128xf32>
    %151 = arith.addf %146, %150 : vector<256x128xf32>
    %152 = tpu.transpose %151, [1, 0] : vector<256x128xf32> -> vector<128x256xf32>
    %153 = vector.extract_strided_slice %152 {offsets = [0, 0], sizes = [24, 256], strides = [1, 1]} : vector<128x256xf32> to vector<24x256xf32>
    %154 = vector.shape_cast %153 : vector<24x256xf32> to vector<1x24x256xf32>
    %c0_168 = arith.constant 0 : index
    %c0_169 = arith.constant 0 : index
    %c0_170 = arith.constant 0 : index
    %155 = vector.load %arg8[%c0_168, %c0_169, %c0_170] : memref<1x24x256xf32, #tpu.memory_space<vmem>>, vector<1x24x256xf32>
    tpu.vector_store %arg8[%c0_168, %c0_169, %c0_170], %154 {strides = array<i32>} : memref<1x24x256xf32, #tpu.memory_space<vmem>>, vector<1x24x256xf32>,
    return
  }
  func.func @transform_0(%arg0: i32) -> (i32, i32, i32, i32) {
    %c0_i32 = arith.constant 0 : i32
    %c0_i32_0 = arith.constant 0 : i32
    %c0_i32_1 = arith.constant 0 : i32
    %c0_i32_2 = arith.constant 0 : i32
    return %arg0, %c0_i32, %c0_i32_0, %c0_i32_1 : i32, i32, i32, i32
  }
  func.func @transform_1(%arg0: i32) -> (i32, i32, i32) {
    %c0_i32 = arith.constant 0 : i32
    %c0_i32_0 = arith.constant 0 : i32
    %c0_i32_1 = arith.constant 0 : i32
    %c0_i32_2 = arith.constant 0 : i32
    return %c0_i32, %c0_i32_0, %c0_i32_1 : i32, i32, i32
  }
  func.func @transform_2(%arg0: i32) -> (i32, i32) {
    %c0_i32 = arith.constant 0 : i32
    %c0_i32_0 = arith.constant 0 : i32
    %c0_i32_1 = arith.constant 0 : i32
    return %c0_i32, %c0_i32_0 : i32, i32
  }
  func.func @transform_3(%arg0: i32) -> (i32, i32, i32) {
    %c0_i32 = arith.constant 0 : i32
    %c0_i32_0 = arith.constant 0 : i32
    %c0_i32_1 = arith.constant 0 : i32
    %c0_i32_2 = arith.constant 0 : i32
    return %c0_i32, %c0_i32_0, %c0_i32_1 : i32, i32, i32
  }
  func.func @transform_4(%arg0: i32) -> (i32, i32) {
    %c0_i32 = arith.constant 0 : i32
    %c0_i32_0 = arith.constant 0 : i32
    %c0_i32_1 = arith.constant 0 : i32
    return %c0_i32, %c0_i32_0 : i32, i32
  }
  func.func @transform_5(%arg0: i32) -> (i32, i32) {
    %c0_i32 = arith.constant 0 : i32
    %c0_i32_0 = arith.constant 0 : i32
    %c0_i32_1 = arith.constant 0 : i32
    return %c0_i32, %c0_i32_0 : i32, i32
  }
  func.func @transform_6(%arg0: i32) -> (i32, i32) {
    %c0_i32 = arith.constant 0 : i32
    %c0_i32_0 = arith.constant 0 : i32
    %c0_i32_1 = arith.constant 0 : i32
    return %c0_i32, %c0_i32_0 : i32, i32
  }
  func.func @transform_7(%arg0: i32) -> (i32, i32, i32) {
    %c0_i32 = arith.constant 0 : i32
    %c0_i32_0 = arith.constant 0 : i32
    %c0_i32_1 = arith.constant 0 : i32
    return %arg0, %c0_i32, %c0_i32_0 : i32, i32, i32
  }
}

</mosaic_0001>

<bundles_post_ra>
// kernel: auxiliary_network_forward.1
= control target key start
LH: loop header
LB: loop body
LE: loop exit
PB: predicated region body
PF: predicated region fallthrough
CT: control target
= control target key end

     0   :  { %s11012_s24 = smov 0   ;;  %s13193_s0 = inlined_call_operand.vmem [shape: f32[2,16,16,16], index: 0, kind: input, shape index: {}]   ;;  %s13194_s1 = inlined_call_operand.vmem [shape: f32[9,16,32], index: 1, kind: input, shape index: {}]   ;;  %s13195_s2 = inlined_call_operand.vmem [shape: f32[1,32], index: 2, kind: input, shape index: {}]   ;;  %s13196_s3 = inlined_call_operand.vmem [shape: f32[9,32,64], index: 3, kind: input, shape index: {}]   ;;  %s13197_s4 = inlined_call_operand.vmem [shape: f32[1,64], index: 4, kind: input, shape index: {}]   ;;  %s13198_s5 = inlined_call_operand.vmem [shape: f32[64,128], index: 5, kind: input, shape index: {}]   ;;  %s13199_s6 = inlined_call_operand.vmem [shape: f32[1,128], index: 6, kind: input, shape index: {}]   ;;  %s13200_s7 = inlined_call_operand.vmem [shape: f32[2,24,256], index: 7, kind: output, shape index: {}]  }
   0x1 LB: > { %s7939_s25 = sadd.s32 4294967295, %s10969_s24   ;;  %p7943_p0 = scmp.ge.s32.totalorder %s10969_s24, 1  ;;  %s10969_s24 = sphi %s11012_s24, %s17_s24  }
   0x2   : > { %p237_p1 = scmp.lt.s32.totalorder %s10969_s24, 3 }
   0x4   : > { %p238_p2 = pnand %p7943_p0, %p237_p1 }
   0x6   : > { %241 = sbr.rel (%p238_p2) target bundleno = 1859 (0x743), region = 48 }
   0xd   : > { %v7947_v0 = vld [vmem:[%s13194_s1 + $0x10] sm:$0xff]  ;;  %v7948_v1 = vld [vmem:[%s13194_s1 + $0x18] sm:$0xff]  ;;  %vm279_vm0 = vcmask 130048   ;;  %v419_v2 = vld [vmem:[%s13194_s1] sm:$0xff]  ;;  %p11031_p3 = scmp.lt.s32.totalorder %s7939_s25, 1  ;;  %v13201_v4 = vmov 0.0  }
   0xe   : > { %v10315_v3 = vpack.c.bf16 %v7948_v1, %v7947_v0  ;;  %316 = vst.msk [vmem:[#allocation2 + $0x8] sm:$0xff] %vm279_vm0, %v13201_v4  ;;  %280 = vst.msk [vmem:[#allocation2] sm:$0xff] %vm279_vm0, %v13201_v4  ;;  %v420_v5 = vld [vmem:[%s13194_s1 + $0x8] sm:$0xff]  ;;  %v8013_v7 = vld [vmem:[%s13194_s1 + $0x20] sm:$0xff]  ;;  %vm3885_vm1 = vcmask 261120   ;;  %vm7492_vm2 = vcmask 523264  }
   0xf   : > { %281 = vst.msk [vmem:[#allocation2 + $0x20] sm:$0xff] %vm279_vm0, %v13201_v4  ;;  %282 = vst.msk [vmem:[#allocation2 + $0x40] sm:$0xff] %vm279_vm0, %v13201_v4  ;;  %v10319_v6 = vpack.c.bf16 %v420_v5, %v419_v2  ;;  %s13518_s25 = smov (!%p11031_p3, %s7939_s25), 1  ;;  %v8014_v8 = vld [vmem:[%s13194_s1 + $0x28] sm:$0xff]  ;;  %v8047_v57 = vld [vmem:[%s13194_s1 + $0x30] sm:$0xff] }
  0x10   : > { %283 = vst.msk [vmem:[#allocation2 + $0x60] sm:$0xff] %vm279_vm0, %v13201_v4  ;;  %284 = vst.msk [vmem:[#allocation2 + $0x80] sm:$0xff] %vm279_vm0, %v13201_v4  ;;  %10316 = vmatprep.subr.bf16.mxu0 %v10315_v3  ;;  %10439 = vmatprep.subr.bf16.mxu1 %v10315_v3  ;;  %s8608_s12 = sshll.u32 %s13518_s25, 8  ;;  %v11149_v18 = vpack.c.bf16 %v8014_v8, %v8013_v7  ;;  %v8048_v58 = vld [vmem:[%s13194_s1 + $0x38] sm:$0xff] }
  0x11   : > { %285 = vst.msk [vmem:[#allocation2 + $0xa0] sm:$0xff] %vm279_vm0, %v13201_v4  ;;  %286 = vst.msk [vmem:[#allocation2 + $0xc0] sm:$0xff] %vm279_vm0, %v13201_v4  ;;  %10318 = vmatpush3.bf16.msra.mxu0 %v10315_v3  ;;  %10440 = vmatpush3.bf16.msra.mxu1 %v10315_v3  ;;  %s11128_s15 = scalar_lea.vmem %s13193_s0, %s8608_s12  ;;  %v11266_v61 = vpack.c.bf16 %v8048_v58, %v8047_v57  ;;  %s10953_s12 = smul.u32 48, %s13518_s25 }
  0x12   : > { %287 = vst.msk [vmem:[#allocation2 + $0xe0] sm:$0xff] %vm279_vm0, %v13201_v4  ;;  %288 = vst.msk [vmem:[#allocation2 + $0x100] sm:$0xff] %vm279_vm0, %v13201_v4  ;;  %10320 = vmatprep.subr.bf16.mxu0 %v10319_v6  ;;  %v321_v9 = vld [vmem:[%s11128_s15] sm:$0xff]  ;;  %v322_v10 = vld [vmem:[%s11128_s15 + $0x8] sm:$0xff] }
  0x13   : > { %289 = vst.msk [vmem:[#allocation2 + $0x120] sm:$0xff] %vm279_vm0, %v13201_v4  ;;  %290 = vst.msk [vmem:[#allocation2 + $0x140] sm:$0xff] %vm279_vm0, %v13201_v4  ;;  %v323_v11 = vld [vmem:[%s11128_s15 + $0x10] sm:$0xff]  ;;  %v324_v12 = vld [vmem:[%s11128_s15 + $0x18] sm:$0xff] }
  0x14   : > { %291 = vst.msk [vmem:[#allocation2 + $0x160] sm:$0xff] %vm279_vm0, %v13201_v4  ;;  %292 = vst.msk [vmem:[#allocation2 + $0x180] sm:$0xff] %vm279_vm0, %v13201_v4  ;;  %v325_v13 = vld [vmem:[%s11128_s15 + $0x20] sm:$0xff]  ;;  %v326_v14 = vld [vmem:[%s11128_s15 + $0x28] sm:$0xff] }
  0x15   : > { %293 = vst.msk [vmem:[#allocation2 + $0x1a0] sm:$0xff] %vm279_vm0, %v13201_v4  ;;  %294 = vst.msk [vmem:[#allocation2 + $0x1c0] sm:$0xff] %vm279_vm0, %v13201_v4  ;;  %v421_v15 = vld [vmem:[#allocation2 + $0x8] sm:$0xff]  ;;  %v327_v17 = vld [vmem:[%s11128_s15 + $0x30] sm:$0xff] }
  0x16   : > { %295 = vst.msk [vmem:[#allocation2 + $0x1e0] sm:$0xff] %vm279_vm0, %v13201_v4  ;;  %296 = vst.msk [vmem:[#allocation2 + $0x200] sm:$0xff] %vm279_vm0, %v13201_v4  ;;  %9283 = vmatprep.mubr.msk.f32.mxu0 %vm279_vm0, %v421_v15  ;;  %v328_v19 = vld [vmem:[%s11128_s15 + $0x38] sm:$0xff]  ;;  %v329_v20 = vld [vmem:[%s11128_s15 + $0x40] sm:$0xff] }
  0x17   : > { %297 = vst.msk [vmem:[#allocation2 + $0x220] sm:$0xff] %vm279_vm0, %v13201_v4  ;;  %298 = vst.msk [vmem:[#allocation2 + $0x18] sm:$0xff] %vm279_vm0, %v13201_v4  ;;  %v330_v21 = vld [vmem:[%s11128_s15 + $0x48] sm:$0xff]  ;;  %v331_v22 = vld [vmem:[%s11128_s15 + $0x50] sm:$0xff] }
  0x18   : > { %299 = vst.msk [vmem:[#allocation2 + $0x38] sm:$0xff] %vm279_vm0, %v13201_v4  ;;  %300 = vst.msk [vmem:[#allocation2 + $0x58] sm:$0xff] %vm279_vm0, %v13201_v4  ;;  %v332_v23 = vld [vmem:[%s11128_s15 + $0x58] sm:$0xff]  ;;  %v333_v24 = vld [vmem:[%s11128_s15 + $0x60] sm:$0xff] }
  0x19   : > { %301 = vst.msk [vmem:[#allocation2 + $0x78] sm:$0xff] %vm279_vm0, %v13201_v4  ;;  %302 = vst.msk [vmem:[#allocation2 + $0x98] sm:$0xff] %vm279_vm0, %v13201_v4  ;;  %v334_v25 = vld [vmem:[%s11128_s15 + $0x68] sm:$0xff]  ;;  %v335_v26 = vld [vmem:[%s11128_s15 + $0x70] sm:$0xff] }
  0x1a   : > { %303 = vst.msk [vmem:[#allocation2 + $0xb8] sm:$0xff] %vm279_vm0, %v13201_v4  ;;  %304 = vst.msk [vmem:[#allocation2 + $0xd8] sm:$0xff] %vm279_vm0, %v13201_v4  ;;  %v336_v27 = vld [vmem:[%s11128_s15 + $0x78] sm:$0xff]  ;;  %v337_v28 = vld [vmem:[%s11128_s15 + $0x80] sm:$0xff] }
  0x1b   : > { %305 = vst.msk [vmem:[#allocation2 + $0xf8] sm:$0xff] %vm279_vm0, %v13201_v4  ;;  %306 = vst.msk [vmem:[#allocation2 + $0x118] sm:$0xff] %vm279_vm0, %v13201_v4  ;;  %v338_v29 = vld [vmem:[%s11128_s15 + $0x88] sm:$0xff]  ;;  %v339_v30 = vld [vmem:[%s11128_s15 + $0x90] sm:$0xff] }
  0x1c   : > { %307 = vst.msk [vmem:[#allocation2 + $0x138] sm:$0xff] %vm279_vm0, %v13201_v4  ;;  %308 = vst.msk [vmem:[#allocation2 + $0x158] sm:$0xff] %vm279_vm0, %v13201_v4  ;;  %v340_v31 = vld [vmem:[%s11128_s15 + $0x98] sm:$0xff]  ;;  %v341_v41 = vld [vmem:[%s11128_s15 + $0xa0] sm:$0xff] }
  0x1d   : > { %309 = vst.msk [vmem:[#allocation2 + $0x178] sm:$0xff] %vm279_vm0, %v13201_v4  ;;  %310 = vst.msk [vmem:[#allocation2 + $0x198] sm:$0xff] %vm279_vm0, %v13201_v4  ;;  %v342_v42 = vld [vmem:[%s11128_s15 + $0xa8] sm:$0xff]  ;;  %v343_v43 = vld [vmem:[%s11128_s15 + $0xb0] sm:$0xff] }
  0x1e   : > { %311 = vst.msk [vmem:[#allocation2 + $0x1b8] sm:$0xff] %vm279_vm0, %v13201_v4  ;;  %312 = vst.msk [vmem:[#allocation2 + $0x1d8] sm:$0xff] %vm279_vm0, %v13201_v4  ;;  %v344_v44 = vld [vmem:[%s11128_s15 + $0xb8] sm:$0xff]  ;;  %v345_v45 = vld [vmem:[%s11128_s15 + $0xc0] sm:$0xff] }
  0x1f   : > { %313 = vst.msk [vmem:[#allocation2 + $0x1f8] sm:$0xff] %vm279_vm0, %v13201_v4  ;;  %314 = vst.msk [vmem:[#allocation2 + $0x218] sm:$0xff] %vm279_vm0, %v13201_v4  ;;  %v346_v46 = vld [vmem:[%s11128_s15 + $0xc8] sm:$0xff]  ;;  %v347_v47 = vld [vmem:[%s11128_s15 + $0xd0] sm:$0xff] }
  0x20   : > { %315 = vst.msk [vmem:[#allocation2 + $0x238] sm:$0xff] %vm279_vm0, %v13201_v4  ;;  %317 = vst.msk [vmem:[#allocation2 + $0x10] sm:$0xff] %vm279_vm0, %v13201_v4  ;;  %v348_v48 = vld [vmem:[%s11128_s15 + $0xd8] sm:$0xff]  ;;  %v349_v49 = vld [vmem:[%s11128_s15 + $0xe0] sm:$0xff] }
  0x21   : > { %319 = vst.msk [vmem:[#allocation2 + $0x228] sm:$0xff] %vm279_vm0, %v13201_v4  ;;  %320 = vst.msk [vmem:[#allocation2 + $0x230] sm:$0xff] %vm279_vm0, %v13201_v4  ;;  %v350_v50 = vld [vmem:[%s11128_s15 + $0xe8] sm:$0xff] }
  0x22   : > { %354 = vst.msk [vmem:[#allocation2 + $0x28] sm:$0xff] %vm279_vm0, %v321_v9  ;;  %355 = vst.msk [vmem:[#allocation2 + $0x30] sm:$0xff] %vm279_vm0, %v322_v10  ;;  %v387_v56 = vld [vmem:[#allocation2 + $0x7] sm:$0xff] }
  0x23   : > { %356 = vst.msk [vmem:[#allocation2 + $0x48] sm:$0xff] %vm279_vm0, %v323_v11  ;;  %357 = vst.msk [vmem:[#allocation2 + $0x50] sm:$0xff] %vm279_vm0, %v324_v12 }
  0x24   : > { %358 = vst.msk [vmem:[#allocation2 + $0x68] sm:$0xff] %vm279_vm0, %v325_v13  ;;  %359 = vst.msk [vmem:[#allocation2 + $0x70] sm:$0xff] %vm279_vm0, %v326_v14 }
  0x25   : > { %360 = vst.msk [vmem:[#allocation2 + $0x88] sm:$0xff] %vm279_vm0, %v327_v17  ;;  %361 = vst.msk [vmem:[#allocation2 + $0x90] sm:$0xff] %vm279_vm0, %v328_v19 }
  0x26   : > { %362 = vst.msk [vmem:[#allocation2 + $0xa8] sm:$0xff] %vm279_vm0, %v329_v20  ;;  %363 = vst.msk [vmem:[#allocation2 + $0xb0] sm:$0xff] %vm279_vm0, %v330_v21 }
  0x27   : > { %v422_v16 = vld [vmem:[#allocation2 + $0x10] sm:$0xff]  ;;  %364 = vst.msk [vmem:[#allocation2 + $0xc8] sm:$0xff] %vm279_vm0, %v331_v22  ;;  %365 = vst.msk [vmem:[#allocation2 + $0xd0] sm:$0xff] %vm279_vm0, %v332_v23 }
  0x28   : > { %9284 = vmatmul.mubr.msk.f32.vlgmr.msra.gmra.mrb[0].mxu0 %vm279_vm0, %v422_v16  ;;  %366 = vst.msk [vmem:[#allocation2 + $0xe8] sm:$0xff] %vm279_vm0, %v333_v24  ;;  %367 = vst.msk [vmem:[#allocation2 + $0xf0] sm:$0xff] %vm279_vm0, %v334_v25  ;;  %v388_v59 = vld [vmem:[#allocation2 + $0xf] sm:$0xff] }
  0x29   : > { %10322 = vmatpush3.bf16.msra.mxu0 %v10319_v6  ;;  %368 = vst.msk [vmem:[#allocation2 + $0x108] sm:$0xff] %vm279_vm0, %v335_v26  ;;  %369 = vst.msk [vmem:[#allocation2 + $0x110] sm:$0xff] %vm279_vm0, %v336_v27  ;;  %v11178_v32 = vld [vmem:[#allocation2 + $0x28] sm:$0xff]  ;;  %v11180_v33 = vld [vmem:[#allocation2 + $0x30] sm:$0xff] }
  0x2a   : > { %10324 = vmatprep.subr.bf16.mxu0 %v11149_v18  ;;  %370 = vst.msk [vmem:[#allocation2 + $0x128] sm:$0xff] %vm279_vm0, %v337_v28  ;;  %v11182_v34 = vld [vmem:[#allocation2 + $0x48] sm:$0xff]  ;;  %371 = vst.msk [vmem:[#allocation2 + $0x130] sm:$0xff] %vm279_vm0, %v338_v29  ;;  %9286 = vmatprep.mubr.msk.f32.mxu0 %vm279_vm0, %v11178_v32  ;;  %v11193_v35 = vld [vmem:[#allocation2 + $0x50] sm:$0xff] }
  0x2b   : > { %372 = vst.msk [vmem:[#allocation2 + $0x148] sm:$0xff] %vm279_vm0, %v339_v30  ;;  %373 = vst.msk [vmem:[#allocation2 + $0x150] sm:$0xff] %vm279_vm0, %v340_v31  ;;  %v11195_v36 = vld [vmem:[#allocation2 + $0x68] sm:$0xff]  ;;  %v11201_v37 = vld [vmem:[#allocation2 + $0x70] sm:$0xff] }
  0x2c   : > { %9287 = vmatmul.mubr.msk.f32.gmra.mrb[2].mxu0 %vm279_vm0, %v11180_v33  ;;  %v11203_v38 = vld [vmem:[#allocation2 + $0x88] sm:$0xff]  ;;  %v11207_v39 = vld [vmem:[#allocation2 + $0x90] sm:$0xff]  ;;  %374 = vst.msk [vmem:[#allocation2 + $0x168] sm:$0xff] %vm279_vm0, %v341_v41  ;;  %375 = vst.msk [vmem:[#allocation2 + $0x170] sm:$0xff] %vm279_vm0, %v342_v42 }
  0x2d   : > { %9289 = vmatprep.mubr.msk.f32.mxu0 %vm279_vm0, %v11182_v34  ;;  %v11211_v40 = vld [vmem:[#allocation2 + $0xa8] sm:$0xff]  ;;  %376 = vst.msk [vmem:[#allocation2 + $0x188] sm:$0xff] %vm279_vm0, %v343_v43  ;;  %377 = vst.msk [vmem:[#allocation2 + $0x190] sm:$0xff] %vm279_vm0, %v344_v44  ;;  %v11235_v51 = vld [vmem:[#allocation2 + $0xb0] sm:$0xff] }
  0x2e   : > { %378 = vst.msk [vmem:[#allocation2 + $0x1a8] sm:$0xff] %vm279_vm0, %v345_v45  ;;  %379 = vst.msk [vmem:[#allocation2 + $0x1b0] sm:$0xff] %vm279_vm0, %v346_v46  ;;  %v11239_v52 = vld [vmem:[#allocation2 + $0xc8] sm:$0xff]  ;;  %v11245_v53 = vld [vmem:[#allocation2 + $0xd0] sm:$0xff] }
  0x2f   : > { %380 = vst.msk [vmem:[#allocation2 + $0x1c8] sm:$0xff] %vm279_vm0, %v347_v47  ;;  %381 = vst.msk [vmem:[#allocation2 + $0x1d0] sm:$0xff] %vm279_vm0, %v348_v48  ;;  %v11247_v54 = vld [vmem:[#allocation2 + $0xe8] sm:$0xff]  ;;  %v11253_v55 = vld [vmem:[#allocation2 + $0xf0] sm:$0xff] }
  0x30   : > { %9290 = vmatmul.mubr.msk.f32.gmra.mrb[4].mxu0 %vm279_vm0, %v11193_v35  ;;  %382 = vst.msk [vmem:[#allocation2 + $0x1e8] sm:$0xff] %vm279_vm0, %v349_v49  ;;  %383 = vst.msk [vmem:[#allocation2 + $0x1f0] sm:$0xff] %vm279_vm0, %v350_v50  ;;  %v11264_v60 = vld [vmem:[#allocation2 + $0x27] sm:$0xff]  ;;  %v11272_v62 = vld [vmem:[#allocation2 + $0x2f] sm:$0xff] }
  0x31   : > { %9292 = vmatprep.mubr.msk.f32.mxu0 %vm279_vm0, %v11195_v36  ;;  %v11274_v63 = vld [vmem:[#allocation2 + $0x47] sm:$0xff]  ;;  %v11281_v0 = vld [vmem:[#allocation2 + $0x4f] sm:$0xff]  ;;  %v352_v26 = vld [vmem:[%s11128_s15 + $0xf8] sm:$0xff] }
  0x32   : > { %v11283_v1 = vld [vmem:[#allocation2 + $0x67] sm:$0xff]  ;;  %v11289_v2 = vld [vmem:[#allocation2 + $0x6f] sm:$0xff]  ;;  %385 = vst.msk [vmem:[#allocation2 + $0x210] sm:$0xff] %vm279_vm0, %v352_v26 }
  0x33   : > { %v11291_v3 = vld [vmem:[#allocation2 + $0x87] sm:$0xff]  ;;  %v11297_v5 = vld [vmem:[#allocation2 + $0x8f] sm:$0xff] }
  0x34   : > { %9293 = vmatmul.mubr.msk.f32.gmra.mrb[6].mxu0 %vm279_vm0, %v11201_v37  ;;  %v11299_v6 = vld [vmem:[#allocation2 + $0xa7] sm:$0xff]  ;;  %v11305_v7 = vld [vmem:[#allocation2 + $0xaf] sm:$0xff] }
  0x35   : > { %9295 = vmatprep.mubr.msk.f32.mxu0 %vm279_vm0, %v11203_v38  ;;  %v11307_v8 = vld [vmem:[#allocation2 + $0xc7] sm:$0xff]  ;;  %v11313_v9 = vld [vmem:[#allocation2 + $0xcf] sm:$0xff] }
  0x36   : > { %v11315_v10 = vld [vmem:[#allocation2 + $0xe7] sm:$0xff]  ;;  %v11321_v11 = vld [vmem:[#allocation2 + $0xef] sm:$0xff] }
  0x37   : > { %v11323_v12 = vld [vmem:[#allocation2 + $0x107] sm:$0xff]  ;;  %v11329_v13 = vld [vmem:[#allocation2 + $0x10f] sm:$0xff] }
  0x38   : > { %9296 = vmatmul.mubr.msk.f32.gmra.mrb[8].mxu0 %vm279_vm0, %v11207_v39  ;;  %v11331_v14 = vld [vmem:[#allocation2 + $0x127] sm:$0xff]  ;;  %v11337_v15 = vld [vmem:[#allocation2 + $0x12f] sm:$0xff] }
  0x39   : > { %9298 = vmatprep.mubr.msk.f32.mxu0 %vm279_vm0, %v11211_v40  ;;  %v11339_v16 = vld [vmem:[#allocation2 + $0x147] sm:$0xff]  ;;  %v11345_v17 = vld [vmem:[#allocation2 + $0x14f] sm:$0xff] }
  0x3a   : > { %v11353_v19 = vld [vmem:[#allocation2 + $0x16f] sm:$0xff]  ;;  %v11355_v20 = vld [vmem:[#allocation2 + $0x187] sm:$0xff] }
  0x3b   : > { %v11361_v21 = vld [vmem:[#allocation2 + $0x18f] sm:$0xff]  ;;  %v11363_v22 = vld [vmem:[#allocation2 + $0x1a7] sm:$0xff] }
  0x3c   : > { %9299 = vmatmul.mubr.msk.f32.gmra.mrb[10].mxu0 %vm279_vm0, %v11235_v51  ;;  %v11369_v23 = vld [vmem:[#allocation2 + $0x1af] sm:$0xff]  ;;  %v11371_v24 = vld [vmem:[#allocation2 + $0x1c7] sm:$0xff] }
  0x3d   : > { %9301 = vmatprep.mubr.msk.f32.mxu0 %vm279_vm0, %v11239_v52  ;;  %v351_v25 = vld [vmem:[%s11128_s15 + $0xf0] sm:$0xff]  ;;  %v11383_v28 = vld [vmem:[#allocation2 + $0x1e7] sm:$0xff]  ;;  %s278_s15 = scalar_lea.vmem %s13200_s7, %s10953_s12 }
  0x3e   : > { %384 = vst.msk [vmem:[#allocation2 + $0x208] sm:$0xff] %vm279_vm0, %v351_v25  ;;  %v11381_v27 = vld [vmem:[#allocation2 + $0x1cf] sm:$0xff]  ;;  %v8081_v31 = vld [vmem:[%s13194_s1 + $0x40] sm:$0xff] }
  0x3f   : > { %v11389_v29 = vld [vmem:[#allocation2 + $0x1ef] sm:$0xff] }
  0x40   : > { %9302 = vmatmul.mubr.msk.f32.gmra.mrb[12].mxu0 %vm279_vm0, %v11245_v53  ;;  %v1098_v30 = vld [vmem:[#allocation2 + $0x9] sm:$0xff]  ;;  %v1099_v42 = vld [vmem:[#allocation2 + $0x11] sm:$0xff] }
  0x41   : > { %9304 = vmatprep.mubr.msk.f32.mxu0 %vm279_vm0, %v11247_v54  ;;  %v8082_v41 = vld [vmem:[%s13194_s1 + $0x48] sm:$0xff]  ;;  %v11408_v45 = vld [vmem:[#allocation2 + $0x31] sm:$0xff] }
  0x42   : > { %v11400_v43 = vld [vmem:[#allocation2 + $0x29] sm:$0xff]  ;;  %v11402_v44 = vpack.c.bf16 %v8082_v41, %v8081_v31  ;;  %13339 = vst [vmem:[#allocation5_spill] sm:$0xff] %v11408_v45  ;;  %v11417_v47 = vld [vmem:[#allocation2 + $0x51] sm:$0xff] }
  0x43   : > { %13338 = vst [vmem:[#allocation4_spill] sm:$0xff] %v11400_v43  ;;  %v11410_v46 = vld [vmem:[#allocation2 + $0x49] sm:$0xff]  ;;  %13341 = vst [vmem:[#allocation7_spill] sm:$0xff] %v11417_v47  ;;  %v11425_v49 = vld [vmem:[#allocation2 + $0x71] sm:$0xff] }
  0x44   : > { %9305 = vmatmul.mubr.msk.f32.gmra.mrb[14].mxu0 %vm279_vm0, %v11253_v55  ;;  %13340 = vst [vmem:[#allocation6_spill] sm:$0xff] %v11410_v46  ;;  %v11419_v48 = vld [vmem:[#allocation2 + $0x69] sm:$0xff]  ;;  %13343 = vst [vmem:[#allocation9_spill] sm:$0xff] %v11425_v49  ;;  %v11441_v58 = vld [vmem:[#allocation2 + $0xb1] sm:$0xff] }
  0x45   : > { %9335 = vmatprep.mubr.msk.f32.mxu0 %vm279_vm0, %v387_v56  ;;  %13342 = vst [vmem:[#allocation8_spill] sm:$0xff] %v11419_v48  ;;  %v11427_v50 = vld [vmem:[#allocation2 + $0x89] sm:$0xff]  ;;  %v11433_v56 = vld [vmem:[#allocation2 + $0x91] sm:$0xff]  ;;  %13347 = vst [vmem:[#allocation13_spill] sm:$0xff] %v11441_v58 }
  0x46   : > { %13344 = vst [vmem:[#allocation10_spill] sm:$0xff] %v11427_v50  ;;  %13345 = vst [vmem:[#allocation11_spill] sm:$0xff] %v11433_v56  ;;  %v11435_v57 = vld [vmem:[#allocation2 + $0xa9] sm:$0xff]  ;;  %v11475_v4 = vld [vmem:[#allocation2 + $0x111] sm:$0xff] }
  0x47   : > { %13346 = vst [vmem:[#allocation12_spill] sm:$0xff] %v11435_v57  ;;  %v11451_v25 = vld [vmem:[#allocation2 + $0xe9] sm:$0xff]  ;;  %13353 = vst [vmem:[#allocation19_spill] sm:$0xff] %v11475_v4 }
  0x48   : > { %9336 = vmatmul.mubr.msk.f32.vlgmr.msra.gmra.mrb[0].mxu0 %vm279_vm0, %v388_v59  ;;  %v11443_v59 = vld [vmem:[#allocation2 + $0xc9] sm:$0xff]  ;;  %13350 = vst [vmem:[#allocation16_spill] sm:$0xff] %v11451_v25 }
  0x49   : > { %10326 = vmatpush3.bf16.msra.mxu0 %v11149_v18  ;;  %9338 = vmatprep.mubr.msk.f32.mxu0 %vm279_vm0, %v11264_v60  ;;  %v11347_v18 = vld [vmem:[#allocation2 + $0x167] sm:$0xff]  ;;  %13348 = vst [vmem:[#allocation14_spill] sm:$0xff] %v11443_v59  ;;  %v11461_v31 = vld [vmem:[#allocation2 + $0x110] sm:$0xff] }
  0x4a   : > { %10328 = vmatprep.subr.bf16.mxu0 %v11266_v61  ;;  %v11455_v26 = vld [vmem:[#allocation2 + $0x108] sm:$0xff] }
  0x4b   : > { %9307 = vmatprep.mubr.msk.f32.mxu1 %vm279_vm0, %v11455_v26  ;;  %v11465_v41 = vld [vmem:[#allocation2 + $0x109] sm:$0xff] }
  0x4c   : > { %9339 = vmatmul.mubr.msk.f32.gmra.mrb[2].mxu0 %vm279_vm0, %v11272_v62  ;;  %13352 = vst [vmem:[#allocation18_spill] sm:$0xff] %v11465_v41  ;;  %9308 = vmatmul.mubr.msk.f32.vlgmr.msra.gmra.mrb[0].mxu1 %vm279_vm0, %v11461_v31 }
  0x4d   : > { %9341 = vmatprep.mubr.msk.f32.mxu0 %vm279_vm0, %v11274_v63 }
  0x50   : > { %9342 = vmatmul.mubr.msk.f32.gmra.mrb[4].mxu0 %vm279_vm0, %v11281_v0 }
  0x51   : > { %9344 = vmatprep.mubr.msk.f32.mxu0 %vm279_vm0, %v11283_v1 }
  0x54   : > { %9345 = vmatmul.mubr.msk.f32.gmra.mrb[6].mxu0 %vm279_vm0, %v11289_v2 }
  0x55   : > { %9347 = vmatprep.mubr.msk.f32.mxu0 %vm279_vm0, %v11291_v3 }
  0x58   : > { %9348 = vmatmul.mubr.msk.f32.gmra.mrb[8].mxu0 %vm279_vm0, %v11297_v5 }
  0x59   : > { %9350 = vmatprep.mubr.msk.f32.mxu0 %vm279_vm0, %v11299_v6 }
  0x5c   : > { %9351 = vmatmul.mubr.msk.f32.gmra.mrb[10].mxu0 %vm279_vm0, %v11305_v7 }
  0x5d   : > { %9353 = vmatprep.mubr.msk.f32.mxu0 %vm279_vm0, %v11307_v8 }
  0x60   : > { %9354 = vmatmul.mubr.msk.f32.gmra.mrb[12].mxu0 %vm279_vm0, %v11313_v9 }
  0x61   : > { %9356 = vmatprep.mubr.msk.f32.mxu0 %vm279_vm0, %v11315_v10 }
  0x64   : > { %9357 = vmatmul.mubr.msk.f32.gmra.mrb[14].mxu0 %vm279_vm0, %v11321_v11 }
  0x65   : > { %9359 = vmatprep.mubr.msk.f32.mxu0 %vm279_vm0, %v11323_v12 }
  0x68   : > { %9360 = vmatmul.mubr.msk.f32.gmra.mrb[16].mxu0 %vm279_vm0, %v11329_v13 }
  0x69   : > { %9362 = vmatprep.mubr.msk.f32.mxu0 %vm279_vm0, %v11331_v14 }
  0x6c   : > { %9363 = vmatmul.mubr.msk.f32.gmra.mrb[18].mxu0 %vm279_vm0, %v11337_v15 }
  0x6d   : > { %9365 = vmatprep.mubr.msk.f32.mxu0 %vm279_vm0, %v11339_v16 }
  0x70   : > { %9366 = vmatmul.mubr.msk.f32.gmra.mrb[20].mxu0 %vm279_vm0, %v11345_v17 }
  0x71   : > { %9368 = vmatprep.mubr.msk.f32.mxu0 %vm279_vm0, %v11347_v18 }
  0x74   : > { %9369 = vmatmul.mubr.msk.f32.gmra.mrb[22].mxu0 %vm279_vm0, %v11353_v19 }
  0x75   : > { %9371 = vmatprep.mubr.msk.f32.mxu0 %vm279_vm0, %v11355_v20 }
  0x78   : > { %9372 = vmatmul.mubr.msk.f32.gmra.mrb[24].mxu0 %vm279_vm0, %v11361_v21 }
  0x79   : > { %9374 = vmatprep.mubr.msk.f32.mxu0 %vm279_vm0, %v11363_v22 }
  0x7c   : > { %9375 = vmatmul.mubr.msk.f32.gmra.mrb[26].mxu0 %vm279_vm0, %v11369_v23 }
  0x7d   : > { %9377 = vmatprep.mubr.msk.f32.mxu0 %vm279_vm0, %v11371_v24 }
  0x80   : > { %9378 = vmatmul.mubr.msk.f32.gmra.mrb[28].mxu0 %vm279_vm0, %v11381_v27 }
  0x81   : > { %9380 = vmatprep.mubr.msk.f32.mxu0 %vm279_vm0, %v11383_v28 }
  0x84   : > { %9381 = vmatmul.mubr.msk.f32.gmra.mrb[30].mxu0 %vm279_vm0, %v11389_v29 }
  0x85   : > { %9387 = vmatprep.mubr.msk.f32.mxu0 %vm279_vm0, %v1098_v30  ;;  %v11459_v30 = vld [vmem:[#allocation2 + $0xf1] sm:$0xff] }
  0x86   : > { %13351 = vst [vmem:[#allocation17_spill] sm:$0xff] %v11459_v30 }
  0x88   : > { %9388 = vmatmul.mubr.msk.f32.vlgmr.msra.gmra.mrb[0].mxu0 %vm279_vm0, %v1099_v42  ;;  %v11471_v42 = vld [vmem:[#allocation2 + $0x128] sm:$0xff] }
  0x89   : > { %10330 = vmatpush3.bf16.msra.mxu0 %v11266_v61  ;;  %9390 = vmatprep.mubr.msk.f32.mxu0 %vm279_vm0, %v11400_v43  ;;  %v11449_v61 = vld [vmem:[#allocation2 + $0xd1] sm:$0xff] }
  0x8a   : > { %10332 = vmatprep.subr.bf16.mxu0 %v11402_v44  ;;  %13349 = vst [vmem:[#allocation15_spill] sm:$0xff] %v11449_v61  ;;  %9310 = vmatprep.mubr.msk.f32.mxu1 %vm279_vm0, %v11471_v42  ;;  %v11573_v43 = vld [vmem:[#allocation2 + $0x1f0] sm:$0xff] }
  0x8b   : > { %13372 = vst [vmem:[#allocation38_spill] sm:$0xff] %v11573_v43 }
  0x8c   : > { %9391 = vmatmul.mubr.msk.f32.gmra.mrb[2].mxu0 %vm279_vm0, %v11408_v45  ;;  %v11561_v45 = vld [vmem:[#allocation2 + $0x1c9] sm:$0xff] }
  0x8d   : > { %9393 = vmatprep.mubr.msk.f32.mxu0 %vm279_vm0, %v11410_v46  ;;  %v11557_v46 = vld [vmem:[#allocation2 + $0x1d0] sm:$0xff]  ;;  %13369 = vst [vmem:[#allocation35_spill] sm:$0xff] %v11561_v45 }
  0x8e   : > { %13368 = vst [vmem:[#allocation34_spill] sm:$0xff] %v11557_v46 }
  0x90   : > { %9394 = vmatmul.mubr.msk.f32.gmra.mrb[4].mxu0 %vm279_vm0, %v11417_v47  ;;  %v11545_v47 = vld [vmem:[#allocation2 + $0x1a9] sm:$0xff] }
  0x91   : > { %9396 = vmatprep.mubr.msk.f32.mxu0 %vm279_vm0, %v11419_v48  ;;  %v11541_v48 = vld [vmem:[#allocation2 + $0x1b0] sm:$0xff]  ;;  %13365 = vst [vmem:[#allocation31_spill] sm:$0xff] %v11545_v47 }
  0x92   : > { %13364 = vst [vmem:[#allocation30_spill] sm:$0xff] %v11541_v48 }
  0x94   : > { %9397 = vmatmul.mubr.msk.f32.gmra.mrb[6].mxu0 %vm279_vm0, %v11425_v49  ;;  %v11529_v49 = vld [vmem:[#allocation2 + $0x189] sm:$0xff] }
  0x95   : > { %9399 = vmatprep.mubr.msk.f32.mxu0 %vm279_vm0, %v11427_v50  ;;  %v11525_v50 = vld [vmem:[#allocation2 + $0x190] sm:$0xff]  ;;  %13361 = vst [vmem:[#allocation27_spill] sm:$0xff] %v11529_v49 }
  0x96   : > { %13360 = vst [vmem:[#allocation26_spill] sm:$0xff] %v11525_v50 }
  0x98   : > { %9400 = vmatmul.mubr.msk.f32.gmra.mrb[8].mxu0 %vm279_vm0, %v11433_v56  ;;  %v11513_v56 = vld [vmem:[#allocation2 + $0x169] sm:$0xff] }
  0x99   : > { %9402 = vmatprep.mubr.msk.f32.mxu0 %vm279_vm0, %v11435_v57  ;;  %v11509_v57 = vld [vmem:[#allocation2 + $0x170] sm:$0xff]  ;;  %13358 = vst [vmem:[#allocation24_spill] sm:$0xff] %v11513_v56 }
  0x9c   : > { %9403 = vmatmul.mubr.msk.f32.gmra.mrb[10].mxu0 %vm279_vm0, %v11441_v58  ;;  %v11497_v58 = vld [vmem:[#allocation2 + $0x149] sm:$0xff] }
  0x9d   : > { %9405 = vmatprep.mubr.msk.f32.mxu0 %vm279_vm0, %v11443_v59  ;;  %v11493_v59 = vld [vmem:[#allocation2 + $0x150] sm:$0xff]  ;;  %13356 = vst [vmem:[#allocation22_spill] sm:$0xff] %v11497_v58 }
  0xa0   : > { %9406 = vmatmul.mubr.msk.f32.gmra.mrb[12].mxu0 %vm279_vm0, %v11449_v61  ;;  %v11481_v61 = vld [vmem:[#allocation2 + $0x129] sm:$0xff] }
  0xa1   : > { %9408 = vmatprep.mubr.msk.f32.mxu0 %vm279_vm0, %v11451_v25  ;;  %v11477_v25 = vld [vmem:[#allocation2 + $0x130] sm:$0xff]  ;;  %13354 = vst [vmem:[#allocation20_spill] sm:$0xff] %v11481_v61 }
  0xa2   : > { %9311 = vmatmul.mubr.msk.f32.gmra.mrb[2].mxu1 %vm279_vm0, %v11477_v25 }
  0xa4   : > { %9409 = vmatmul.mubr.msk.f32.gmra.mrb[14].mxu0 %vm279_vm0, %v11459_v30  ;;  %v11487_v30 = vld [vmem:[#allocation2 + $0x148] sm:$0xff] }
  0xa5   : > { %9411 = vmatprep.mubr.msk.f32.mxu0 %vm279_vm0, %v11465_v41  ;;  %v11491_v41 = vld [vmem:[#allocation2 + $0x131] sm:$0xff]  ;;  %9313 = vmatprep.mubr.msk.f32.mxu1 %vm279_vm0, %v11487_v30 }
  0xa6   : > { %13355 = vst [vmem:[#allocation21_spill] sm:$0xff] %v11491_v41  ;;  %9314 = vmatmul.mubr.msk.f32.gmra.mrb[4].mxu1 %vm279_vm0, %v11493_v59 }
  0xa8   : > { %9412 = vmatmul.mubr.msk.f32.gmra.mrb[16].mxu0 %vm279_vm0, %v11475_v4  ;;  %v11503_v4 = vld [vmem:[#allocation2 + $0x168] sm:$0xff] }
  0xa9   : > { %9414 = vmatprep.mubr.msk.f32.mxu0 %vm279_vm0, %v11481_v61  ;;  %v11507_v61 = vld [vmem:[#allocation2 + $0x151] sm:$0xff]  ;;  %9316 = vmatprep.mubr.msk.f32.mxu1 %vm279_vm0, %v11503_v4 }
  0xaa   : > { %13357 = vst [vmem:[#allocation23_spill] sm:$0xff] %v11507_v61  ;;  %9317 = vmatmul.mubr.msk.f32.gmra.mrb[6].mxu1 %vm279_vm0, %v11509_v57 }
  0xac   : > { %9415 = vmatmul.mubr.msk.f32.gmra.mrb[18].mxu0 %vm279_vm0, %v11491_v41  ;;  %v11519_v41 = vld [vmem:[#allocation2 + $0x188] sm:$0xff] }
  0xad   : > { %9417 = vmatprep.mubr.msk.f32.mxu0 %vm279_vm0, %v11497_v58  ;;  %v11523_v58 = vld [vmem:[#allocation2 + $0x171] sm:$0xff]  ;;  %9319 = vmatprep.mubr.msk.f32.mxu1 %vm279_vm0, %v11519_v41 }
  0xae   : > { %13359 = vst [vmem:[#allocation25_spill] sm:$0xff] %v11523_v58  ;;  %9320 = vmatmul.mubr.msk.f32.gmra.mrb[8].mxu1 %vm279_vm0, %v11525_v50 }
  0xb0   : > { %9418 = vmatmul.mubr.msk.f32.gmra.mrb[20].mxu0 %vm279_vm0, %v11507_v61  ;;  %v11535_v61 = vld [vmem:[#allocation2 + $0x1a8] sm:$0xff] }
  0xb1   : > { %9420 = vmatprep.mubr.msk.f32.mxu0 %vm279_vm0, %v11513_v56  ;;  %13362 = vst [vmem:[#allocation28_spill] sm:$0xff] %v11535_v61  ;;  %v11539_v56 = vld [vmem:[#allocation2 + $0x191] sm:$0xff]  ;;  %9322 = vmatprep.mubr.msk.f32.mxu1 %vm279_vm0, %v11535_v61 }
  0xb2   : > { %13363 = vst [vmem:[#allocation29_spill] sm:$0xff] %v11539_v56  ;;  %9323 = vmatmul.mubr.msk.f32.gmra.mrb[10].mxu1 %vm279_vm0, %v11541_v48 }
  0xb4   : > { %9421 = vmatmul.mubr.msk.f32.gmra.mrb[22].mxu0 %vm279_vm0, %v11523_v58  ;;  %v11551_v58 = vld [vmem:[#allocation2 + $0x1c8] sm:$0xff] }
  0xb5   : > { %9423 = vmatprep.mubr.msk.f32.mxu0 %vm279_vm0, %v11529_v49  ;;  %13366 = vst [vmem:[#allocation32_spill] sm:$0xff] %v11551_v58  ;;  %v11555_v49 = vld [vmem:[#allocation2 + $0x1b1] sm:$0xff]  ;;  %9325 = vmatprep.mubr.msk.f32.mxu1 %vm279_vm0, %v11551_v58  ;;  %v11577_v58 = vld [vmem:[#allocation2 + $0x1e9] sm:$0xff] }
  0xb6   : > { %13367 = vst [vmem:[#allocation33_spill] sm:$0xff] %v11555_v49  ;;  %9326 = vmatmul.mubr.msk.f32.gmra.mrb[12].mxu1 %vm279_vm0, %v11557_v46 }
  0xb8   : > { %9424 = vmatmul.mubr.msk.f32.gmra.mrb[24].mxu0 %vm279_vm0, %v11539_v56  ;;  %v11567_v56 = vld [vmem:[#allocation2 + $0x1e8] sm:$0xff] }
  0xb9   : > { %9426 = vmatprep.mubr.msk.f32.mxu0 %vm279_vm0, %v11545_v47  ;;  %13370 = vst [vmem:[#allocation36_spill] sm:$0xff] %v11567_v56  ;;  %v11571_v47 = vld [vmem:[#allocation2 + $0x1d1] sm:$0xff]  ;;  %9328 = vmatprep.mubr.msk.f32.mxu1 %vm279_vm0, %v11567_v56 }
  0xba   : > { %13371 = vst [vmem:[#allocation37_spill] sm:$0xff] %v11571_v47  ;;  %9329 = vmatmul.mubr.msk.f32.gmra.mrb[14].mxu1 %vm279_vm0, %v11573_v43  ;;  %v8116_v56 = vld [vmem:[%s13194_s1 + $0x58] sm:$0xff] }
  0xbc   : > { %9427 = vmatmul.mubr.msk.f32.gmra.mrb[26].mxu0 %vm279_vm0, %v11555_v49  ;;  %v11585_v49 = vld [vmem:[#allocation2 + $0x1f1] sm:$0xff] }
  0xbd   : > { %9429 = vmatprep.mubr.msk.f32.mxu0 %vm279_vm0, %v11561_v45  ;;  %13373 = vst [vmem:[#allocation39_spill] sm:$0xff] %v11585_v49  ;;  %v8115_v45 = vld [vmem:[%s13194_s1 + $0x50] sm:$0xff] }
  0xc0   : > { %9430 = vmatmul.mubr.msk.f32.gmra.mrb[28].mxu0 %vm279_vm0, %v11571_v47  ;;  %v10335_v47 = vpack.c.bf16 %v8116_v56, %v8115_v45  ;;  %v8150_v45 = vld [vmem:[%s13194_s1 + $0x68] sm:$0xff] }
  0xc1   : > { %9432 = vmatprep.mubr.msk.f32.mxu0 %vm279_vm0, %v11577_v58 }
  0xc4   : > { %9433 = vmatmul.mubr.msk.f32.gmra.mrb[30].mxu0 %vm279_vm0, %v11585_v49 }
  0xc5   : > { %9439 = vmatprep.mubr.msk.f32.mxu0 %vm279_vm0, %v11264_v60  ;;  %v11654_v60 = vld [vmem:[#allocation2 + $0x207] sm:$0xff] }
  0xc8   : > { %9440 = vmatmul.mubr.msk.f32.vlgmr.msra.gmra.mrb[0].mxu0 %vm279_vm0, %v11272_v62  ;;  %v11660_v62 = vld [vmem:[#allocation2 + $0x20f] sm:$0xff] }
  0xc9   : > { %10334 = vmatpush3.bf16.msra.mxu0 %v11402_v44  ;;  %9442 = vmatprep.mubr.msk.f32.mxu0 %vm279_vm0, %v11274_v63  ;;  %v8149_v44 = vld [vmem:[%s13194_s1 + $0x60] sm:$0xff] }
  0xca   : > { %10336 = vmatprep.subr.bf16.mxu0 %v10335_v47  ;;  %v10339_v56 = vpack.c.bf16 %v8150_v45, %v8149_v44  ;;  %v11734_v44 = vld [vmem:[#allocation2 + $0x210] sm:$0xff] }
  0xcb   : > { %13377 = vst [vmem:[#allocation41_spill] sm:$0xff] %v11734_v44  ;;  %v8183_v45 = vld [vmem:[%s13194_s1 + $0x70] sm:$0xff] }
  0xcc   : > { %9443 = vmatmul.mubr.msk.f32.gmra.mrb[2].mxu0 %vm279_vm0, %v11281_v0 }
  0xcd   : > { %9445 = vmatprep.mubr.msk.f32.mxu0 %vm279_vm0, %v11283_v1 }
  0xd0   : > { %9446 = vmatmul.mubr.msk.f32.gmra.mrb[4].mxu0 %vm279_vm0, %v11289_v2 }
  0xd1   : > { %9448 = vmatprep.mubr.msk.f32.mxu0 %vm279_vm0, %v11291_v3 }
  0xd4   : > { %9449 = vmatmul.mubr.msk.f32.gmra.mrb[6].mxu0 %vm279_vm0, %v11297_v5 }
  0xd5   : > { %9451 = vmatprep.mubr.msk.f32.mxu0 %vm279_vm0, %v11299_v6 }
  0xd8   : > { %9452 = vmatmul.mubr.msk.f32.gmra.mrb[8].mxu0 %vm279_vm0, %v11305_v7 }
  0xd9   : > { %9454 = vmatprep.mubr.msk.f32.mxu0 %vm279_vm0, %v11307_v8 }
  0xdc   : > { %9455 = vmatmul.mubr.msk.f32.gmra.mrb[10].mxu0 %vm279_vm0, %v11313_v9 }
  0xdd   : > { %9457 = vmatprep.mubr.msk.f32.mxu0 %vm279_vm0, %v11315_v10 }
  0xe0   : > { %9458 = vmatmul.mubr.msk.f32.gmra.mrb[12].mxu0 %vm279_vm0, %v11321_v11 }
  0xe1   : > { %9460 = vmatprep.mubr.msk.f32.mxu0 %vm279_vm0, %v11323_v12 }
  0xe4   : > { %9461 = vmatmul.mubr.msk.f32.gmra.mrb[14].mxu0 %vm279_vm0, %v11329_v13 }
  0xe5   : > { %9463 = vmatprep.mubr.msk.f32.mxu0 %vm279_vm0, %v11331_v14 }
  0xe8   : > { %9464 = vmatmul.mubr.msk.f32.gmra.mrb[16].mxu0 %vm279_vm0, %v11337_v15 }
  0xe9   : > { %9466 = vmatprep.mubr.msk.f32.mxu0 %vm279_vm0, %v11339_v16 }
  0xec   : > { %9467 = vmatmul.mubr.msk.f32.gmra.mrb[18].mxu0 %vm279_vm0, %v11345_v17 }
  0xed   : > { %9469 = vmatprep.mubr.msk.f32.mxu0 %vm279_vm0, %v11347_v18 }
  0xf0   : > { %9470 = vmatmul.mubr.msk.f32.gmra.mrb[20].mxu0 %vm279_vm0, %v11353_v19 }
  0xf1   : > { %9472 = vmatprep.mubr.msk.f32.mxu0 %vm279_vm0, %v11355_v20 }
  0xf4   : > { %9473 = vmatmul.mubr.msk.f32.gmra.mrb[22].mxu0 %vm279_vm0, %v11361_v21 }
  0xf5   : > { %9475 = vmatprep.mubr.msk.f32.mxu0 %vm279_vm0, %v11363_v22 }
  0xf8   : > { %9476 = vmatmul.mubr.msk.f32.gmra.mrb[24].mxu0 %vm279_vm0, %v11369_v23 }
  0xf9   : > { %9478 = vmatprep.mubr.msk.f32.mxu0 %vm279_vm0, %v11371_v24 }
  0xfc   : > { %9479 = vmatmul.mubr.msk.f32.gmra.mrb[26].mxu0 %vm279_vm0, %v11381_v27 }
  0xfd   : > { %9481 = vmatprep.mubr.msk.f32.mxu0 %vm279_vm0, %v11383_v28 }
 0x100   : > { %9482 = vmatmul.mubr.msk.f32.gmra.mrb[28].mxu0 %vm279_vm0, %v11389_v29 }
 0x101   : > { %9484 = vmatprep.mubr.msk.f32.mxu0 %vm279_vm0, %v11654_v60 }
 0x104   : > { %9485 = vmatmul.mubr.msk.f32.gmra.mrb[30].mxu0 %vm279_vm0, %v11660_v62 }
 0x105   : > { %9491 = vmatprep.mubr.msk.f32.mxu0 %vm279_vm0, %v11178_v32  ;;  %v13374_v32 = vld [vmem:[#allocation32_spill] sm:$0xff] }
 0x108   : > { %9492 = vmatmul.mubr.msk.f32.vlgmr.msra.gmra.mrb[0].mxu0 %vm279_vm0, %v11180_v33  ;;  %v13375_v33 = vld [vmem:[#allocation36_spill] sm:$0xff] }
 0x109   : > { %10338 = vmatpush3.bf16.msra.mxu0 %v10335_v47  ;;  %9494 = vmatprep.mubr.msk.f32.mxu0 %vm279_vm0, %v11182_v34  ;;  %v11728_v47 = vld [vmem:[#allocation2 + $0x208] sm:$0xff] }
 0x10a   : > { %10340 = vmatprep.subr.bf16.mxu0 %v10339_v56  ;;  %13376 = vst [vmem:[#allocation40_spill] sm:$0xff] %v11728_v47 }
 0x10c   : > { %9495 = vmatmul.mubr.msk.f32.gmra.mrb[2].mxu0 %vm279_vm0, %v11193_v35 }
 0x10d   : > { %9497 = vmatprep.mubr.msk.f32.mxu0 %vm279_vm0, %v11195_v36 }
 0x110   : > { %9498 = vmatmul.mubr.msk.f32.gmra.mrb[4].mxu0 %vm279_vm0, %v11201_v37 }
 0x111   : > { %9500 = vmatprep.mubr.msk.f32.mxu0 %vm279_vm0, %v11203_v38 }
 0x114   : > { %9501 = vmatmul.mubr.msk.f32.gmra.mrb[6].mxu0 %vm279_vm0, %v11207_v39 }
 0x115   : > { %9503 = vmatprep.mubr.msk.f32.mxu0 %vm279_vm0, %v11211_v40 }
 0x118   : > { %9504 = vmatmul.mubr.msk.f32.gmra.mrb[8].mxu0 %vm279_vm0, %v11235_v51 }
 0x119   : > { %9506 = vmatprep.mubr.msk.f32.mxu0 %vm279_vm0, %v11239_v52 }
 0x11c   : > { %9507 = vmatmul.mubr.msk.f32.gmra.mrb[10].mxu0 %vm279_vm0, %v11245_v53 }
 0x11d   : > { %9509 = vmatprep.mubr.msk.f32.mxu0 %vm279_vm0, %v11247_v54 }
 0x120   : > { %9510 = vmatmul.mubr.msk.f32.gmra.mrb[12].mxu0 %vm279_vm0, %v11253_v55 }
 0x121   : > { %9512 = vmatprep.mubr.msk.f32.mxu0 %vm279_vm0, %v11455_v26 }
 0x124   : > { %9513 = vmatmul.mubr.msk.f32.gmra.mrb[14].mxu0 %vm279_vm0, %v11461_v31 }
 0x125   : > { %9515 = vmatprep.mubr.msk.f32.mxu0 %vm279_vm0, %v11471_v42 }
 0x128   : > { %9516 = vmatmul.mubr.msk.f32.gmra.mrb[16].mxu0 %vm279_vm0, %v11477_v25 }
 0x129   : > { %9518 = vmatprep.mubr.msk.f32.mxu0 %vm279_vm0, %v11487_v30 }
 0x12c   : > { %9519 = vmatmul.mubr.msk.f32.gmra.mrb[18].mxu0 %vm279_vm0, %v11493_v59 }
 0x12d   : > { %9521 = vmatprep.mubr.msk.f32.mxu0 %vm279_vm0, %v11503_v4 }
 0x130   : > { %9522 = vmatmul.mubr.msk.f32.gmra.mrb[20].mxu0 %vm279_vm0, %v11509_v57 }
 0x131   : > { %9524 = vmatprep.mubr.msk.f32.mxu0 %vm279_vm0, %v11519_v41 }
 0x134   : > { %9525 = vmatmul.mubr.msk.f32.gmra.mrb[22].mxu0 %vm279_vm0, %v11525_v50  ;;  %v13383_v50 = vld [vmem:[#allocation9_spill] sm:$0xff] }
 0x135   : > { %9527 = vmatprep.mubr.msk.f32.mxu0 %vm279_vm0, %v11535_v61  ;;  %v13382_v61 = vld [vmem:[#allocation8_spill] sm:$0xff] }
 0x138   : > { %9528 = vmatmul.mubr.msk.f32.gmra.mrb[24].mxu0 %vm279_vm0, %v11541_v48  ;;  %v13381_v48 = vld [vmem:[#allocation7_spill] sm:$0xff] }
 0x139   : > { %9530 = vmatprep.mubr.msk.f32.mxu0 %vm279_vm0, %v13374_v32  ;;  %v13379_v32 = vld [vmem:[#allocation5_spill] sm:$0xff] }
 0x13c   : > { %9531 = vmatmul.mubr.msk.f32.gmra.mrb[26].mxu0 %vm279_vm0, %v11557_v46  ;;  %v8184_v46 = vld [vmem:[%s13194_s1 + $0x78] sm:$0xff] }
 0x13d   : > { %9533 = vmatprep.mubr.msk.f32.mxu0 %vm279_vm0, %v13375_v33  ;;  %v13378_v33 = vld [vmem:[#allocation4_spill] sm:$0xff] }
 0x140   : > { %9534 = vmatmul.mubr.msk.f32.gmra.mrb[28].mxu0 %vm279_vm0, %v11573_v43  ;;  %v10343_v43 = vpack.c.bf16 %v8184_v46, %v8183_v45  ;;  %v13385_v46 = vld [vmem:[#allocation11_spill] sm:$0xff] }
 0x141   : > { %9536 = vmatprep.mubr.msk.f32.mxu0 %vm279_vm0, %v11728_v47  ;;  %v13380_v47 = vld [vmem:[#allocation6_spill] sm:$0xff]  ;;  %v13389_v45 = vld [vmem:[#allocation15_spill] sm:$0xff] }
 0x144   : > { %9537 = vmatmul.mubr.msk.f32.gmra.mrb[30].mxu0 %vm279_vm0, %v11734_v44  ;;  %v13384_v44 = vld [vmem:[#allocation10_spill] sm:$0xff] }
 0x145   : > { %9543 = vmatprep.mubr.msk.f32.mxu0 %vm279_vm0, %v13378_v33  ;;  %v13388_v33 = vld [vmem:[#allocation14_spill] sm:$0xff] }
 0x148   : > { %9544 = vmatmul.mubr.msk.f32.vlgmr.msra.gmra.mrb[0].mxu0 %vm279_vm0, %v13379_v32  ;;  %v13387_v32 = vld [vmem:[#allocation13_spill] sm:$0xff] }
 0x149   : > { %10342 = vmatpush3.bf16.msra.mxu0 %v10339_v56  ;;  %9546 = vmatprep.mubr.msk.f32.mxu0 %vm279_vm0, %v13380_v47  ;;  %v13386_v56 = vld [vmem:[#allocation12_spill] sm:$0xff] }
 0x14a   : > { %10344 = vmatprep.subr.bf16.mxu0 %v10343_v43 }
 0x14c   : > { %9547 = vmatmul.mubr.msk.f32.gmra.mrb[2].mxu0 %vm279_vm0, %v13381_v48 }
 0x14d   : > { %9549 = vmatprep.mubr.msk.f32.mxu0 %vm279_vm0, %v13382_v61  ;;  %v13390_v61 = vld [vmem:[#allocation16_spill] sm:$0xff] }
 0x150   : > { %9550 = vmatmul.mubr.msk.f32.gmra.mrb[4].mxu0 %vm279_vm0, %v13383_v50  ;;  %v13391_v50 = vld [vmem:[#allocation17_spill] sm:$0xff] }
 0x151   : > { %9552 = vmatprep.mubr.msk.f32.mxu0 %vm279_vm0, %v13384_v44  ;;  %v13392_v44 = vld [vmem:[#allocation18_spill] sm:$0xff] }
 0x154   : > { %9553 = vmatmul.mubr.msk.f32.gmra.mrb[6].mxu0 %vm279_vm0, %v13385_v46  ;;  %v13393_v46 = vld [vmem:[#allocation19_spill] sm:$0xff] }
 0x155   : > { %9555 = vmatprep.mubr.msk.f32.mxu0 %vm279_vm0, %v13386_v56  ;;  %v13394_v56 = vld [vmem:[#allocation20_spill] sm:$0xff] }
 0x158   : > { %9556 = vmatmul.mubr.msk.f32.gmra.mrb[8].mxu0 %vm279_vm0, %v13387_v32  ;;  %v13395_v32 = vld [vmem:[#allocation21_spill] sm:$0xff] }
 0x159   : > { %9558 = vmatprep.mubr.msk.f32.mxu0 %vm279_vm0, %v13388_v33  ;;  %v13396_v33 = vld [vmem:[#allocation22_spill] sm:$0xff] }
 0x15c   : > { %9559 = vmatmul.mubr.msk.f32.gmra.mrb[10].mxu0 %vm279_vm0, %v13389_v45  ;;  %v13397_v45 = vld [vmem:[#allocation23_spill] sm:$0xff] }
 0x15d   : > { %9561 = vmatprep.mubr.msk.f32.mxu0 %vm279_vm0, %v13390_v61  ;;  %v13398_v61 = vld [vmem:[#allocation24_spill] sm:$0xff] }
 0x160   : > { %9562 = vmatmul.mubr.msk.f32.gmra.mrb[12].mxu0 %vm279_vm0, %v13391_v50  ;;  %v13399_v50 = vld [vmem:[#allocation25_spill] sm:$0xff] }
 0x161   : > { %9564 = vmatprep.mubr.msk.f32.mxu0 %vm279_vm0, %v13392_v44  ;;  %v13400_v44 = vld [vmem:[#allocation27_spill] sm:$0xff] }
 0x164   : > { %9565 = vmatmul.mubr.msk.f32.gmra.mrb[14].mxu0 %vm279_vm0, %v13393_v46  ;;  %v13401_v46 = vld [vmem:[#allocation29_spill] sm:$0xff] }
 0x165   : > { %9567 = vmatprep.mubr.msk.f32.mxu0 %vm279_vm0, %v13394_v56  ;;  %v13402_v56 = vld [vmem:[#allocation31_spill] sm:$0xff] }
 0x168   : > { %9568 = vmatmul.mubr.msk.f32.gmra.mrb[16].mxu0 %vm279_vm0, %v13395_v32  ;;  %v13403_v32 = vld [vmem:[#allocation33_spill] sm:$0xff] }
 0x169   : > { %9570 = vmatprep.mubr.msk.f32.mxu0 %vm279_vm0, %v13396_v33  ;;  %v13404_v33 = vld [vmem:[#allocation35_spill] sm:$0xff] }
 0x16c   : > { %9571 = vmatmul.mubr.msk.f32.gmra.mrb[18].mxu0 %vm279_vm0, %v13397_v45  ;;  %v13405_v45 = vld [vmem:[#allocation37_spill] sm:$0xff] }
 0x16d   : > { %9573 = vmatprep.mubr.msk.f32.mxu0 %vm279_vm0, %v13398_v61 }
 0x170   : > { %9574 = vmatmul.mubr.msk.f32.gmra.mrb[20].mxu0 %vm279_vm0, %v13399_v50  ;;  %v11802_v50 = vld [vmem:[#allocation2 + $0x209] sm:$0xff] }
 0x171   : > { %9576 = vmatprep.mubr.msk.f32.mxu0 %vm279_vm0, %v13400_v44 }
 0x174   : > { %9577 = vmatmul.mubr.msk.f32.gmra.mrb[22].mxu0 %vm279_vm0, %v13401_v46 }
 0x175   : > { %9579 = vmatprep.mubr.msk.f32.mxu0 %vm279_vm0, %v13402_v56  ;;  %v11808_v56 = vld [vmem:[#allocation2 + $0x211] sm:$0xff] }
 0x178   : > { %9580 = vmatmul.mubr.msk.f32.gmra.mrb[24].mxu0 %vm279_vm0, %v13403_v32 }
 0x179   : > { %9582 = vmatprep.mubr.msk.f32.mxu0 %vm279_vm0, %v13404_v33  ;;  %v8217_v33 = vld [vmem:[%s13194_s1 + $0x80] sm:$0xff] }
 0x17c   : > { %9583 = vmatmul.mubr.msk.f32.gmra.mrb[26].mxu0 %vm279_vm0, %v13405_v45  ;;  %v8218_v45 = vld [vmem:[%s13194_s1 + $0x88] sm:$0xff] }
 0x17d   : > { %9585 = vmatprep.mubr.msk.f32.mxu0 %vm279_vm0, %v11577_v58 }
 0x180   : > { %9586 = vmatmul.mubr.msk.f32.gmra.mrb[28].mxu0 %vm279_vm0, %v11585_v49  ;;  %v10347_v49 = vpack.c.bf16 %v8218_v45, %v8217_v33 }
 0x181   : > { %9588 = vmatprep.mubr.msk.f32.mxu0 %vm279_vm0, %v11802_v50 }
 0x184   : > { %9589 = vmatmul.mubr.msk.f32.gmra.mrb[30].mxu0 %vm279_vm0, %v11808_v56 }
 0x185   : > { %9595 = vmatprep.mubr.msk.f32.mxu0 %vm279_vm0, %v11274_v63  ;;  %v2681_v63 = vld [vmem:[#allocation2 + $0x227] sm:$0xff] }
 0x188   : > { %9596 = vmatmul.mubr.msk.f32.vlgmr.msra.gmra.mrb[0].mxu0 %vm279_vm0, %v11281_v0  ;;  %v2682_v0 = vld [vmem:[#allocation2 + $0x22f] sm:$0xff] }
 0x189   : > { %10346 = vmatpush3.bf16.msra.mxu0 %v10343_v43  ;;  %9598 = vmatprep.mubr.msk.f32.mxu0 %vm279_vm0, %v11283_v1  ;;  %v8252_v1 = vld [vmem:[%s13196_s3 + $0x20] sm:$0xff]  ;;  %v3458_v43 = vld [vmem:[#allocation2 + $0x231] sm:$0xff] }
 0x18a   : > { %10348 = vmatprep.subr.bf16.mxu0 %v10347_v49 }
 0x18c   : > { %9599 = vmatmul.mubr.msk.f32.gmra.mrb[2].mxu0 %vm279_vm0, %v11289_v2  ;;  %v8253_v2 = vld [vmem:[%s13196_s3 + $0x28] sm:$0xff] }
 0x18d   : > { %9601 = vmatprep.mubr.msk.f32.mxu0 %vm279_vm0, %v11291_v3  ;;  %v8254_v3 = vld [vmem:[%s13196_s3 + $0x30] sm:$0xff] }
 0x190   : > { %9602 = vmatmul.mubr.msk.f32.gmra.mrb[4].mxu0 %vm279_vm0, %v11297_v5  ;;  %v10351_v5 = vpack.c.bf16 %v8253_v2, %v8252_v1  ;;  %v8320_v2 = vld [vmem:[%s13196_s3 + $0x40] sm:$0xff] }
 0x191   : > { %9604 = vmatprep.mubr.msk.f32.mxu0 %vm279_vm0, %v11299_v6  ;;  %v8255_v6 = vld [vmem:[%s13196_s3 + $0x38] sm:$0xff] }
 0x192   : > { %10352 = vmatprep.subr.bf16.mxu1 %v10351_v5 }
 0x193   : > { %10354 = vmatpush3.bf16.msra.mxu1 %v10351_v5 }
 0x194   : > { %9605 = vmatmul.mubr.msk.f32.gmra.mrb[6].mxu0 %vm279_vm0, %v11305_v7  ;;  %v10355_v7 = vpack.c.bf16 %v8255_v6, %v8254_v3  ;;  %v8321_v3 = vld [vmem:[%s13196_s3 + $0x48] sm:$0xff]  ;;  %v12154_v6 = vld [vmem:[%s13195_s2] ss:$0 sm:$0xff] }
 0x195   : > { %9607 = vmatprep.mubr.msk.f32.mxu0 %vm279_vm0, %v11307_v8  ;;  %v13417_v8 = vld [vmem:[#allocation10_spill] sm:$0xff]  ;;  %v12148_v5 = vpack.c.bf16 %v8321_v3, %v8320_v2 }
 0x196   : > { %10356 = vmatprep.subr.bf16.mxu1 %v10355_v7 }
 0x197   : > { %10358 = vmatpush3.bf16.msra.mxu1 %v10355_v7 }
 0x198   : > { %9608 = vmatmul.mubr.msk.f32.gmra.mrb[8].mxu0 %vm279_vm0, %v11313_v9  ;;  %v13418_v9 = vld [vmem:[#allocation11_spill] sm:$0xff] }
 0x199   : > { %9610 = vmatprep.mubr.msk.f32.mxu0 %vm279_vm0, %v11315_v10  ;;  %v13419_v10 = vld [vmem:[#allocation12_spill] sm:$0xff] }
 0x19c   : > { %9611 = vmatmul.mubr.msk.f32.gmra.mrb[10].mxu0 %vm279_vm0, %v11321_v11  ;;  %v13420_v11 = vld [vmem:[#allocation13_spill] sm:$0xff] }
 0x19d   : > { %9613 = vmatprep.mubr.msk.f32.mxu0 %vm279_vm0, %v11323_v12  ;;  %v13421_v12 = vld [vmem:[#allocation14_spill] sm:$0xff] }
 0x1a0   : > { %9614 = vmatmul.mubr.msk.f32.gmra.mrb[12].mxu0 %vm279_vm0, %v11329_v13  ;;  %v13422_v13 = vld [vmem:[#allocation15_spill] sm:$0xff] }
 0x1a1   : > { %9616 = vmatprep.mubr.msk.f32.mxu0 %vm279_vm0, %v11331_v14  ;;  %v13423_v14 = vld [vmem:[#allocation16_spill] sm:$0xff] }
 0x1a4   : > { %9617 = vmatmul.mubr.msk.f32.gmra.mrb[14].mxu0 %vm279_vm0, %v11337_v15  ;;  %v13424_v15 = vld [vmem:[#allocation17_spill] sm:$0xff] }
 0x1a5   : > { %9619 = vmatprep.mubr.msk.f32.mxu0 %vm279_vm0, %v11339_v16  ;;  %v13425_v16 = vld [vmem:[#allocation18_spill] sm:$0xff] }
 0x1a8   : > { %9620 = vmatmul.mubr.msk.f32.gmra.mrb[16].mxu0 %vm279_vm0, %v11345_v17  ;;  %v13426_v17 = vld [vmem:[#allocation19_spill] sm:$0xff] }
 0x1a9   : > { %9622 = vmatprep.mubr.msk.f32.mxu0 %vm279_vm0, %v11347_v18  ;;  %v13427_v18 = vld [vmem:[#allocation20_spill] sm:$0xff] }
 0x1ac   : > { %9623 = vmatmul.mubr.msk.f32.gmra.mrb[18].mxu0 %vm279_vm0, %v11353_v19  ;;  %v13428_v19 = vld [vmem:[#allocation21_spill] sm:$0xff] }
 0x1ad   : > { %9625 = vmatprep.mubr.msk.f32.mxu0 %vm279_vm0, %v11355_v20  ;;  %v13429_v20 = vld [vmem:[#allocation22_spill] sm:$0xff] }
 0x1b0   : > { %9626 = vmatmul.mubr.msk.f32.gmra.mrb[20].mxu0 %vm279_vm0, %v11361_v21  ;;  %v13430_v21 = vld [vmem:[#allocation23_spill] sm:$0xff] }
 0x1b1   : > { %9628 = vmatprep.mubr.msk.f32.mxu0 %vm279_vm0, %v11363_v22  ;;  %v13431_v22 = vld [vmem:[#allocation25_spill] sm:$0xff] }
 0x1b4   : > { %9629 = vmatmul.mubr.msk.f32.gmra.mrb[22].mxu0 %vm279_vm0, %v11369_v23  ;;  %v13432_v23 = vld [vmem:[#allocation31_spill] sm:$0xff] }
 0x1b5   : > { %9631 = vmatprep.mubr.msk.f32.mxu0 %vm279_vm0, %v11371_v24  ;;  %v13433_v24 = vld [vmem:[#allocation35_spill] sm:$0xff] }
 0x1b8   : > { %9632 = vmatmul.mubr.msk.f32.gmra.mrb[24].mxu0 %vm279_vm0, %v11381_v27  ;;  %v13434_v27 = vld [vmem:[#allocation37_spill] sm:$0xff] }
 0x1b9   : > { %9634 = vmatprep.mubr.msk.f32.mxu0 %vm279_vm0, %v11383_v28  ;;  %v13435_v28 = vld [vmem:[#allocation39_spill] sm:$0xff] }
 0x1bc   : > { %9635 = vmatmul.mubr.msk.f32.gmra.mrb[26].mxu0 %vm279_vm0, %v11389_v29  ;;  %v3457_v29 = vld [vmem:[#allocation2 + $0x229] sm:$0xff] }
 0x1bd   : > { %9637 = vmatprep.mubr.msk.f32.mxu0 %vm279_vm0, %v11654_v60 }
 0x1c0   : > { %9638 = vmatmul.mubr.msk.f32.gmra.mrb[28].mxu0 %vm279_vm0, %v11660_v62 }
 0x1c1   : > { %9640 = vmatprep.mubr.msk.f32.mxu0 %vm279_vm0, %v2681_v63 }
 0x1c4   : > { %9641 = vmatmul.mubr.msk.f32.gmra.mrb[30].mxu0 %vm279_vm0, %v2682_v0 }
 0x1c5   : > { %9647 = vmatprep.mubr.msk.f32.mxu0 %vm279_vm0, %v11182_v34  ;;  %v13406_v34 = vld [vmem:[#allocation26_spill] sm:$0xff] }
 0x1c8   : > { %9648 = vmatmul.mubr.msk.f32.vlgmr.msra.gmra.mrb[0].mxu0 %vm279_vm0, %v11193_v35  ;;  %v13407_v35 = vld [vmem:[#allocation28_spill] sm:$0xff] }
 0x1c9   : > { %10350 = vmatpush3.bf16.msra.mxu0 %v10347_v49  ;;  %9650 = vmatprep.mubr.msk.f32.mxu0 %vm279_vm0, %v11195_v36  ;;  %v13408_v36 = vld [vmem:[#allocation30_spill] sm:$0xff] }
 0x1cc   : > { %9651 = vmatmul.mubr.msk.f32.gmra.mrb[2].mxu0 %vm279_vm0, %v11201_v37  ;;  %v13409_v37 = vld [vmem:[#allocation32_spill] sm:$0xff] }
 0x1cd   : > { %9653 = vmatprep.mubr.msk.f32.mxu0 %vm279_vm0, %v11203_v38  ;;  %v13410_v38 = vld [vmem:[#allocation34_spill] sm:$0xff] }
 0x1d0   : > { %9654 = vmatmul.mubr.msk.f32.gmra.mrb[4].mxu0 %vm279_vm0, %v11207_v39  ;;  %v13412_v39 = vld [vmem:[#allocation38_spill] sm:$0xff] }
 0x1d1   : > { %9656 = vmatprep.mubr.msk.f32.mxu0 %vm279_vm0, %v11211_v40  ;;  %v13413_v40 = vld [vmem:[#allocation40_spill] sm:$0xff] }
 0x1d4   : > { %9657 = vmatmul.mubr.msk.f32.gmra.mrb[6].mxu0 %vm279_vm0, %v11235_v51  ;;  %v3069_v51 = vld [vmem:[#allocation2 + $0x228] sm:$0xff] }
 0x1d5   : > { %9659 = vmatprep.mubr.msk.f32.mxu0 %vm279_vm0, %v11239_v52  ;;  %v13414_v52 = vld [vmem:[#allocation41_spill] sm:$0xff] }
 0x1d8   : > { %9660 = vmatmul.mubr.msk.f32.gmra.mrb[8].mxu0 %vm279_vm0, %v11245_v53  ;;  %v3070_v53 = vld [vmem:[#allocation2 + $0x230] sm:$0xff] }
 0x1d9   : > { %9662 = vmatprep.mubr.msk.f32.mxu0 %vm279_vm0, %v11247_v54  ;;  %v13415_v54 = vld [vmem:[#allocation8_spill] sm:$0xff] }
 0x1dc   : > { %9663 = vmatmul.mubr.msk.f32.gmra.mrb[10].mxu0 %vm279_vm0, %v11253_v55  ;;  %v13416_v55 = vld [vmem:[#allocation9_spill] sm:$0xff] }
 0x1dd   : > { %9665 = vmatprep.mubr.msk.f32.mxu0 %vm279_vm0, %v11455_v26 }
 0x1e0   : > { %9666 = vmatmul.mubr.msk.f32.gmra.mrb[12].mxu0 %vm279_vm0, %v11461_v31 }
 0x1e1   : > { %9668 = vmatprep.mubr.msk.f32.mxu0 %vm279_vm0, %v11471_v42 }
 0x1e4   : > { %9669 = vmatmul.mubr.msk.f32.gmra.mrb[14].mxu0 %vm279_vm0, %v11477_v25 }
 0x1e5   : > { %9671 = vmatprep.mubr.msk.f32.mxu0 %vm279_vm0, %v11487_v30 }
 0x1e8   : > { %9672 = vmatmul.mubr.msk.f32.gmra.mrb[16].mxu0 %vm279_vm0, %v11493_v59 }
 0x1e9   : > { %9674 = vmatprep.mubr.msk.f32.mxu0 %vm279_vm0, %v11503_v4  ;;  %v13411_v4 = vld [vmem:[#allocation36_spill] sm:$0xff] }
 0x1ec   : > { %9675 = vmatmul.mubr.msk.f32.gmra.mrb[18].mxu0 %vm279_vm0, %v11509_v57  ;;  %v3993_v57 = vld [vmem:[%s13196_s3] sm:$0xff] }
 0x1ed   : > { %9677 = vmatprep.mubr.msk.f32.mxu0 %vm279_vm0, %v11519_v41 }
 0x1f0   : > { %9678 = vmatmul.mubr.msk.f32.gmra.mrb[20].mxu0 %vm279_vm0, %v13406_v34 }
 0x1f1   : > { %9680 = vmatprep.mubr.msk.f32.mxu0 %vm279_vm0, %v13407_v35 }
 0x1f4   : > { %9681 = vmatmul.mubr.msk.f32.gmra.mrb[22].mxu0 %vm279_vm0, %v13408_v36 }
 0x1f5   : > { %9683 = vmatprep.mubr.msk.f32.mxu0 %vm279_vm0, %v13409_v37 }
 0x1f8   : > { %9684 = vmatmul.mubr.msk.f32.gmra.mrb[24].mxu0 %vm279_vm0, %v13410_v38 }
 0x1f9   : > { %9686 = vmatprep.mubr.msk.f32.mxu0 %vm279_vm0, %v13411_v4 }
 0x1fc   : > { %9687 = vmatmul.mubr.msk.f32.gmra.mrb[26].mxu0 %vm279_vm0, %v13412_v39 }
 0x1fd   : > { %9689 = vmatprep.mubr.msk.f32.mxu0 %vm279_vm0, %v13413_v40 }
 0x200   : > { %9690 = vmatmul.mubr.msk.f32.gmra.mrb[28].mxu0 %vm279_vm0, %v13414_v52 }
 0x201   : > { %9692 = vmatprep.mubr.msk.f32.mxu0 %vm279_vm0, %v3069_v51 }
 0x204   : > { %9693 = vmatmul.mubr.msk.f32.gmra.mrb[30].mxu0 %vm279_vm0, %v3070_v53 }
 0x205   : > { %9699 = vmatprep.mubr.msk.f32.mxu0 %vm279_vm0, %v13380_v47 }
 0x208   : > { %9700 = vmatmul.mubr.msk.f32.vlgmr.msra.gmra.mrb[0].mxu0 %vm279_vm0, %v13381_v48  ;;  %v13436_v48 = vmov 0.0  }
 0x209   : > { %9702 = vmatprep.mubr.msk.f32.mxu0 %vm279_vm0, %v13415_v54  ;;  %3886 = vst.msk [vmem:[#allocation3] sm:$0xff] %vm3885_vm1, %v13436_v48  ;;  %3887 = vst.msk [vmem:[#allocation3 + $0x20] sm:$0xff] %vm3885_vm1, %v13436_v48 }
 0x20a   : > { %3888 = vst.msk [vmem:[#allocation3 + $0x40] sm:$0xff] %vm3885_vm1, %v13436_v48  ;;  %3889 = vst.msk [vmem:[#allocation3 + $0x60] sm:$0xff] %vm3885_vm1, %v13436_v48 }
 0x20b   : > { %3890 = vst.msk [vmem:[#allocation3 + $0x80] sm:$0xff] %vm3885_vm1, %v13436_v48  ;;  %3891 = vst.msk [vmem:[#allocation3 + $0xa0] sm:$0xff] %vm3885_vm1, %v13436_v48 }
 0x20c   : > { %9703 = vmatmul.mubr.msk.f32.gmra.mrb[2].mxu0 %vm279_vm0, %v13416_v55  ;;  %3892 = vst.msk [vmem:[#allocation3 + $0xc0] sm:$0xff] %vm3885_vm1, %v13436_v48  ;;  %3893 = vst.msk [vmem:[#allocation3 + $0xe0] sm:$0xff] %vm3885_vm1, %v13436_v48 }
 0x20d   : > { %9705 = vmatprep.mubr.msk.f32.mxu0 %vm279_vm0, %v13417_v8  ;;  %3894 = vst.msk [vmem:[#allocation3 + $0x100] sm:$0xff] %vm3885_vm1, %v13436_v48  ;;  %3895 = vst.msk [vmem:[#allocation3 + $0x120] sm:$0xff] %vm3885_vm1, %v13436_v48 }
 0x20e   : > { %3896 = vst.msk [vmem:[#allocation3 + $0x140] sm:$0xff] %vm3885_vm1, %v13436_v48  ;;  %3897 = vst.msk [vmem:[#allocation3 + $0x160] sm:$0xff] %vm3885_vm1, %v13436_v48 }
 0x20f   : > { %3898 = vst.msk [vmem:[#allocation3 + $0x180] sm:$0xff] %vm3885_vm1, %v13436_v48  ;;  %3899 = vst.msk [vmem:[#allocation3 + $0x1a0] sm:$0xff] %vm3885_vm1, %v13436_v48 }
 0x210   : > { %9706 = vmatmul.mubr.msk.f32.gmra.mrb[4].mxu0 %vm279_vm0, %v13418_v9  ;;  %3900 = vst.msk [vmem:[#allocation3 + $0x1c0] sm:$0xff] %vm3885_vm1, %v13436_v48  ;;  %3901 = vst.msk [vmem:[#allocation3 + $0x1e0] sm:$0xff] %vm3885_vm1, %v13436_v48 }
 0x211   : > { %9708 = vmatprep.mubr.msk.f32.mxu0 %vm279_vm0, %v13419_v10  ;;  %3902 = vst.msk [vmem:[#allocation3 + $0x200] sm:$0xff] %vm3885_vm1, %v13436_v48  ;;  %3903 = vst.msk [vmem:[#allocation3 + $0x220] sm:$0xff] %vm3885_vm1, %v13436_v48 }
 0x212   : > { %3904 = vst.msk [vmem:[#allocation3 + $0x18] sm:$0xff] %vm3885_vm1, %v13436_v48  ;;  %3905 = vst.msk [vmem:[#allocation3 + $0x38] sm:$0xff] %vm3885_vm1, %v13436_v48 }
 0x213   : > { %3906 = vst.msk [vmem:[#allocation3 + $0x58] sm:$0xff] %vm3885_vm1, %v13436_v48  ;;  %3907 = vst.msk [vmem:[#allocation3 + $0x78] sm:$0xff] %vm3885_vm1, %v13436_v48 }
 0x214   : > { %9709 = vmatmul.mubr.msk.f32.gmra.mrb[6].mxu0 %vm279_vm0, %v13420_v11  ;;  %3908 = vst.msk [vmem:[#allocation3 + $0x98] sm:$0xff] %vm3885_vm1, %v13436_v48  ;;  %3909 = vst.msk [vmem:[#allocation3 + $0xb8] sm:$0xff] %vm3885_vm1, %v13436_v48 }
 0x215   : > { %9711 = vmatprep.mubr.msk.f32.mxu0 %vm279_vm0, %v13421_v12  ;;  %3910 = vst.msk [vmem:[#allocation3 + $0xd8] sm:$0xff] %vm3885_vm1, %v13436_v48  ;;  %3911 = vst.msk [vmem:[#allocation3 + $0xf8] sm:$0xff] %vm3885_vm1, %v13436_v48 }
 0x216   : > { %3912 = vst.msk [vmem:[#allocation3 + $0x118] sm:$0xff] %vm3885_vm1, %v13436_v48  ;;  %3913 = vst.msk [vmem:[#allocation3 + $0x138] sm:$0xff] %vm3885_vm1, %v13436_v48 }
 0x217   : > { %3914 = vst.msk [vmem:[#allocation3 + $0x158] sm:$0xff] %vm3885_vm1, %v13436_v48  ;;  %3915 = vst.msk [vmem:[#allocation3 + $0x178] sm:$0xff] %vm3885_vm1, %v13436_v48 }
 0x218   : > { %9712 = vmatmul.mubr.msk.f32.gmra.mrb[8].mxu0 %vm279_vm0, %v13422_v13  ;;  %3916 = vst.msk [vmem:[#allocation3 + $0x198] sm:$0xff] %vm3885_vm1, %v13436_v48  ;;  %3917 = vst.msk [vmem:[#allocation3 + $0x1b8] sm:$0xff] %vm3885_vm1, %v13436_v48 }
 0x219   : > { %9714 = vmatprep.mubr.msk.f32.mxu0 %vm279_vm0, %v13423_v14  ;;  %3918 = vst.msk [vmem:[#allocation3 + $0x1d8] sm:$0xff] %vm3885_vm1, %v13436_v48  ;;  %3919 = vst.msk [vmem:[#allocation3 + $0x1f8] sm:$0xff] %vm3885_vm1, %v13436_v48 }
 0x21a   : > { %3920 = vst.msk [vmem:[#allocation3 + $0x218] sm:$0xff] %vm3885_vm1, %v13436_v48  ;;  %3921 = vst.msk [vmem:[#allocation3 + $0x238] sm:$0xff] %vm3885_vm1, %v13436_v48 }
 0x21b   : > { %3922 = vst.msk [vmem:[#allocation3 + $0x8] sm:$0xff] %vm3885_vm1, %v13436_v48  ;;  %3923 = vst.msk [vmem:[#allocation3 + $0x10] sm:$0xff] %vm3885_vm1, %v13436_v48 }
 0x21c   : > { %9715 = vmatmul.mubr.msk.f32.gmra.mrb[10].mxu0 %vm279_vm0, %v13424_v15  ;;  %3925 = vst.msk [vmem:[#allocation3 + $0x228] sm:$0xff] %vm3885_vm1, %v13436_v48  ;;  %3926 = vst.msk [vmem:[#allocation3 + $0x230] sm:$0xff] %vm3885_vm1, %v13436_v48 }
 0x21d   : > { %9717 = vmatprep.mubr.msk.f32.mxu0 %vm279_vm0, %v13425_v16 }
 0x220   : > { %9718 = vmatmul.mubr.msk.f32.gmra.mrb[12].mxu0 %vm279_vm0, %v13426_v17 }
 0x221   : > { %9720 = vmatprep.mubr.msk.f32.mxu0 %vm279_vm0, %v13427_v18 }
 0x222   : > { %v3997_v49 = vld [vmem:[#allocation3 + $0x8] sm:$0xff] }
 0x223   : > { %9755 = vmatprep.mubr.msk.f32.mxu1 %vm3885_vm1, %v3997_v49 }
 0x224   : > { %9721 = vmatmul.mubr.msk.f32.gmra.mrb[14].mxu0 %vm279_vm0, %v13428_v19 }
 0x225   : > { %9723 = vmatprep.mubr.msk.f32.mxu0 %vm279_vm0, %v13429_v20 }
 0x228   : > { %9724 = vmatmul.mubr.msk.f32.gmra.mrb[16].mxu0 %vm279_vm0, %v13430_v21 }
 0x229   : > { %9726 = vmatprep.mubr.msk.f32.mxu0 %vm279_vm0, %v13398_v61  ;;  %v12104_v61 = vpop.f32.mrb[0].mxu1 }
 0x22a   : > { %v12106_v25 = vpop.f32.mrb[1].mxu1 }
 0x22b   : > { %v12108_v26 = vpop.f32.mrb[2].mxu1 }
 0x22c   : > { %9727 = vmatmul.mubr.msk.f32.gmra.mrb[18].mxu0 %vm279_vm0, %v13431_v22  ;;  %v12110_v30 = vpop.f32.mrb[3].mxu1 }
 0x22d   : > { %9729 = vmatprep.mubr.msk.f32.mxu0 %vm279_vm0, %v13400_v44  ;;  %v12112_v31 = vpop.f32.mrb[4].mxu1  ;;  %v3995_v44 = vld [vmem:[%s13196_s3 + $0x10] sm:$0xff] }
 0x22e   : > { %v12114_v41 = vpop.f32.mrb[5].mxu1 }
 0x22f   : > { %v12116_v42 = vpop.f32.mrb[6].mxu1 }
 0x230   : > { %9730 = vmatmul.mubr.msk.f32.gmra.mrb[20].mxu0 %vm279_vm0, %v13401_v46  ;;  %v12118_v60 = vpop.f32.mrb[7].mxu1  ;;  %v3996_v46 = vld [vmem:[%s13196_s3 + $0x18] sm:$0xff] }
 0x231   : > { %9732 = vmatprep.mubr.msk.f32.mxu0 %vm279_vm0, %v13432_v23  ;;  %v12120_v62 = vpop.f32.mrb[8].mxu1 }
 0x232   : > { %v12122_v47 = vpop.f32.mrb[9].mxu1 }
 0x234   : > { %9733 = vmatmul.mubr.msk.f32.gmra.mrb[22].mxu0 %vm279_vm0, %v13403_v32  ;;  %v10363_v32 = vpack.c.bf16 %v3996_v46, %v3995_v44 }
 0x235   : > { %9735 = vmatprep.mubr.msk.f32.mxu0 %vm279_vm0, %v13433_v24 }
 0x238   : > { %9736 = vmatmul.mubr.msk.f32.gmra.mrb[24].mxu0 %vm279_vm0, %v13434_v27 }
 0x239   : > { %9738 = vmatprep.mubr.msk.f32.mxu0 %vm279_vm0, %v11577_v58  ;;  %v3994_v58 = vld [vmem:[%s13196_s3 + $0x8] sm:$0xff] }
 0x23a   : > { %v10359_v59 = vpack.c.bf16 %v3994_v58, %v3993_v57 }
 0x23c   : > { %9739 = vmatmul.mubr.msk.f32.gmra.mrb[26].mxu0 %vm279_vm0, %v13435_v28  ;;  %10360 = vmatprep.subr.bf16.mxu1 %v10359_v59 }
 0x23d   : > { %9741 = vmatprep.mubr.msk.f32.mxu0 %vm279_vm0, %v11802_v50  ;;  %v3998_v50 = vld [vmem:[#allocation3 + $0x10] sm:$0xff] }
 0x23e   : > { %9756 = vmatmul.mubr.msk.f32.vlgmr.msra.gmra.mrb[16].mxu1 %vm3885_vm1, %v3998_v50 }
 0x23f   : > { %10362 = vmatpush3.bf16.msra.mxu1 %v10359_v59 }
 0x240   : > { %9742 = vmatmul.mubr.msk.f32.gmra.mrb[28].mxu0 %vm279_vm0, %v11808_v56  ;;  %v12130_v56 = vpop.f32.mrb[10].mxu1  ;;  %10364 = vmatprep.subr.bf16.mxu1 %v10363_v32 }
 0x241   : > { %9744 = vmatprep.mubr.msk.f32.mxu0 %vm279_vm0, %v3457_v29  ;;  %v12132_v33 = vpop.f32.mrb[11].mxu1 }
 0x242   : > { %v12134_v45 = vpop.f32.mrb[12].mxu1 }
 0x243   : > { %10366 = vmatpush3.bf16.msra.mxu1 %v10363_v32  ;;  %v12136_v63 = vpop.f32.mrb[13].mxu1 }
 0x244   : > { %9745 = vmatmul.mubr.msk.f32.gmra.mrb[30].mxu0 %vm279_vm0, %v3458_v43  ;;  %v12138_v0 = vpop.f32.mrb[14].mxu1  ;;  %10368 = vmatprep.subr.bf16.mxu1 %v12148_v5 }
 0x245   : > { %v12140_v1 = vpop.f32.mrb[15].mxu1 }
 0x2db   : > { %v9701_v7 = vpop.f32.mrb[0].mxu0 }
 0x2dc   : > { %v3822_v34 = vadd.f32 %v9701_v7, %v12154_v6  ;;  %v3624_v35 = vpop.f32.mrb[1].mxu0 }
 0x2dd   : > { %v3821_v36 = vadd.f32 %v12154_v6, %v3624_v35 }
 0x2de   : > { %v3854_v37 = vmax.f32 %v3822_v34, 0.0 }
 0x2df   : > { %v3853_v38 = vmax.f32 %v3821_v36, 0.0  ;;  %v9704_v4 = vpop.f32.mrb[2].mxu0 }
 0x2e0   : > { %3929 = vst.msk [vmem:[#allocation3 + $0x30] sm:$0xff] %vm3885_vm1, %v3854_v37  ;;  %v3824_v39 = vadd.f32 %v9704_v4, %v12154_v6  ;;  %v3634_v40 = vpop.f32.mrb[3].mxu0 }
 0x2e1   : > { %3928 = vst.msk [vmem:[#allocation3 + $0x28] sm:$0xff] %vm3885_vm1, %v3853_v38  ;;  %v3823_v51 = vadd.f32 %v12154_v6, %v3634_v40 }
 0x2e2   : > { %v3856_v52 = vmax.f32 %v3824_v39, 0.0 }
 0x2e3   : > { %v3855_v53 = vmax.f32 %v3823_v51, 0.0  ;;  %v9707_v54 = vpop.f32.mrb[4].mxu0 }
 0x2e4   : > { %3931 = vst.msk [vmem:[#allocation3 + $0x50] sm:$0xff] %vm3885_vm1, %v3856_v52  ;;  %v3826_v55 = vadd.f32 %v9707_v54, %v12154_v6  ;;  %v3644_v8 = vpop.f32.mrb[5].mxu0 }
 0x2e5   : > { %3930 = vst.msk [vmem:[#allocation3 + $0x48] sm:$0xff] %vm3885_vm1, %v3855_v53  ;;  %v3825_v9 = vadd.f32 %v12154_v6, %v3644_v8 }
 0x2e6   : > { %v3858_v10 = vmax.f32 %v3826_v55, 0.0 }
 0x2e7   : > { %v3857_v11 = vmax.f32 %v3825_v9, 0.0  ;;  %v9710_v12 = vpop.f32.mrb[6].mxu0  ;;  %v12174_v17 = vld [vmem:[#allocation3 + $0x30] sm:$0xff] }
 0x2e8   : > { %3933 = vst.msk [vmem:[#allocation3 + $0x70] sm:$0xff] %vm3885_vm1, %v3858_v10  ;;  %v3828_v13 = vadd.f32 %v9710_v12, %v12154_v6  ;;  %v3654_v14 = vpop.f32.mrb[7].mxu0  ;;  %v12168_v15 = vld [vmem:[#allocation3 + $0x28] sm:$0xff] }
 0x2e9   : > { %3932 = vst.msk [vmem:[#allocation3 + $0x68] sm:$0xff] %vm3885_vm1, %v3857_v11  ;;  %v3827_v16 = vadd.f32 %v12154_v6, %v3654_v14  ;;  %9758 = vmatprep.mubr.msk.f32.mxu1 %vm3885_vm1, %v12168_v15 }
 0x2ea   : > { %v3860_v18 = vmax.f32 %v3828_v13, 0.0  ;;  %9759 = vmatmul.mubr.msk.f32.gmra.mrb[18].mxu1 %vm3885_vm1, %v12174_v17 }
 0x2eb   : > { %v3859_v19 = vmax.f32 %v3827_v16, 0.0  ;;  %v9713_v20 = vpop.f32.mrb[8].mxu0  ;;  %v12186_v27 = vld [vmem:[#allocation3 + $0x50] sm:$0xff] }
 0x2ec   : > { %3935 = vst.msk [vmem:[#allocation3 + $0x90] sm:$0xff] %vm3885_vm1, %v3860_v18  ;;  %v3830_v21 = vadd.f32 %v9713_v20, %v12154_v6  ;;  %v3664_v22 = vpop.f32.mrb[9].mxu0  ;;  %v12180_v23 = vld [vmem:[#allocation3 + $0x48] sm:$0xff] }
 0x2ed   : > { %3934 = vst.msk [vmem:[#allocation3 + $0x88] sm:$0xff] %vm3885_vm1, %v3859_v19  ;;  %v3829_v24 = vadd.f32 %v12154_v6, %v3664_v22  ;;  %9761 = vmatprep.mubr.msk.f32.mxu1 %vm3885_vm1, %v12180_v23 }
 0x2ee   : > { %v3862_v28 = vmax.f32 %v3830_v21, 0.0  ;;  %9762 = vmatmul.mubr.msk.f32.gmra.mrb[20].mxu1 %vm3885_vm1, %v12186_v27 }
 0x2ef   : > { %v3861_v29 = vmax.f32 %v3829_v24, 0.0  ;;  %v9716_v43 = vpop.f32.mrb[10].mxu0  ;;  %v12198_v58 = vld [vmem:[#allocation3 + $0x70] sm:$0xff] }
 0x2f0   : > { %3937 = vst.msk [vmem:[#allocation3 + $0xb0] sm:$0xff] %vm3885_vm1, %v3862_v28  ;;  %v3832_v48 = vadd.f32 %v9716_v43, %v12154_v6  ;;  %v3674_v49 = vpop.f32.mrb[11].mxu0  ;;  %v12192_v50 = vld [vmem:[#allocation3 + $0x68] sm:$0xff] }
 0x2f1   : > { %3936 = vst.msk [vmem:[#allocation3 + $0xa8] sm:$0xff] %vm3885_vm1, %v3861_v29  ;;  %v3831_v57 = vadd.f32 %v12154_v6, %v3674_v49  ;;  %9764 = vmatprep.mubr.msk.f32.mxu1 %vm3885_vm1, %v12192_v50 }
 0x2f2   : > { %v3864_v59 = vmax.f32 %v3832_v48, 0.0  ;;  %9765 = vmatmul.mubr.msk.f32.gmra.mrb[22].mxu1 %vm3885_vm1, %v12198_v58 }
 0x2f3   : > { %v3863_v44 = vmax.f32 %v3831_v57, 0.0  ;;  %v9719_v46 = vpop.f32.mrb[12].mxu0  ;;  %v12210_v34 = vld [vmem:[#allocation3 + $0x90] sm:$0xff] }
 0x2f4   : > { %3939 = vst.msk [vmem:[#allocation3 + $0xd0] sm:$0xff] %vm3885_vm1, %v3864_v59  ;;  %v3834_v32 = vadd.f32 %v9719_v46, %v12154_v6  ;;  %v3684_v2 = vpop.f32.mrb[13].mxu0  ;;  %v12204_v3 = vld [vmem:[#allocation3 + $0x88] sm:$0xff] }
 0x2f5   : > { %3938 = vst.msk [vmem:[#allocation3 + $0xc8] sm:$0xff] %vm3885_vm1, %v3863_v44  ;;  %v3833_v7 = vadd.f32 %v12154_v6, %v3684_v2  ;;  %9767 = vmatprep.mubr.msk.f32.mxu1 %vm3885_vm1, %v12204_v3 }
 0x2f6   : > { %v3866_v35 = vmax.f32 %v3834_v32, 0.0  ;;  %9768 = vmatmul.mubr.msk.f32.gmra.mrb[24].mxu1 %vm3885_vm1, %v12210_v34 }
 0x2f7   : > { %v3865_v36 = vmax.f32 %v3833_v7, 0.0  ;;  %v9722_v37 = vpop.f32.mrb[14].mxu0  ;;  %v12222_v51 = vld [vmem:[#allocation3 + $0xb0] sm:$0xff] }
 0x2f8   : > { %3941 = vst.msk [vmem:[#allocation3 + $0xf0] sm:$0xff] %vm3885_vm1, %v3866_v35  ;;  %v3836_v38 = vadd.f32 %v9722_v37, %v12154_v6  ;;  %v3694_v4 = vpop.f32.mrb[15].mxu0  ;;  %v12216_v39 = vld [vmem:[#allocation3 + $0xa8] sm:$0xff] }
 0x2f9   : > { %3940 = vst.msk [vmem:[#allocation3 + $0xe8] sm:$0xff] %vm3885_vm1, %v3865_v36  ;;  %v3835_v40 = vadd.f32 %v12154_v6, %v3694_v4  ;;  %9770 = vmatprep.mubr.msk.f32.mxu1 %vm3885_vm1, %v12216_v39 }
 0x2fa   : > { %v3868_v52 = vmax.f32 %v3836_v38, 0.0  ;;  %9771 = vmatmul.mubr.msk.f32.gmra.mrb[26].mxu1 %vm3885_vm1, %v12222_v51 }
 0x2fb   : > { %v3867_v53 = vmax.f32 %v3835_v40, 0.0  ;;  %v9725_v54 = vpop.f32.mrb[16].mxu0  ;;  %v12234_v11 = vld [vmem:[#allocation3 + $0xd0] sm:$0xff] }
 0x2fc   : > { %3943 = vst.msk [vmem:[#allocation3 + $0x110] sm:$0xff] %vm3885_vm1, %v3868_v52  ;;  %v10441_v55 = vadd.f32 %v9725_v54, %v12104_v61  ;;  %v3704_v8 = vpop.f32.mrb[17].mxu0  ;;  %v12228_v9 = vld [vmem:[#allocation3 + $0xc8] sm:$0xff] }
 0x2fd   : > { %3942 = vst.msk [vmem:[#allocation3 + $0x108] sm:$0xff] %vm3885_vm1, %v3867_v53  ;;  %v10442_v10 = vadd.f32 %v3704_v8, %v12106_v25  ;;  %9773 = vmatprep.mubr.msk.f32.mxu1 %vm3885_vm1, %v12228_v9 }
 0x2fe   : > { %v3838_v12 = vadd.f32 %v10441_v55, %v12154_v6  ;;  %9774 = vmatmul.mubr.msk.f32.gmra.mrb[28].mxu1 %vm3885_vm1, %v12234_v11 }
 0x2ff   : > { %v3837_v13 = vadd.f32 %v10442_v10, %v12154_v6  ;;  %v9728_v61 = vpop.f32.mrb[18].mxu0  ;;  %v12246_v21 = vld [vmem:[#allocation3 + $0xf0] sm:$0xff] }
 0x300   : > { %v3870_v14 = vmax.f32 %v3838_v12, 0.0  ;;  %v10443_v16 = vadd.f32 %v9728_v61, %v12108_v26  ;;  %v3714_v18 = vpop.f32.mrb[19].mxu0  ;;  %v12241_v19 = vld [vmem:[#allocation3 + $0xe8] sm:$0xff] }
 0x301   : > { %v3869_v25 = vmax.f32 %v3837_v13, 0.0  ;;  %v10444_v20 = vadd.f32 %v3714_v18, %v12110_v30  ;;  %9776 = vmatprep.mubr.msk.f32.mxu1 %vm3885_vm1, %v12241_v19 }
 0x302   : > { %3945 = vst.msk [vmem:[#allocation3 + $0x130] sm:$0xff] %vm3885_vm1, %v3870_v14  ;;  %v3840_v22 = vadd.f32 %v10443_v16, %v12154_v6  ;;  %9777 = vmatmul.mubr.msk.f32.gmra.mrb[30].mxu1 %vm3885_vm1, %v12246_v21 }
 0x303   : > { %3944 = vst.msk [vmem:[#allocation3 + $0x128] sm:$0xff] %vm3885_vm1, %v3869_v25  ;;  %v3839_v26 = vadd.f32 %v10444_v20, %v12154_v6  ;;  %v9731_v24 = vpop.f32.mrb[20].mxu0  ;;  %v12260_v57 = vld [vmem:[#allocation3 + $0x110] sm:$0xff] }
 0x304   : > { %v3872_v28 = vmax.f32 %v3840_v22, 0.0  ;;  %v10445_v30 = vadd.f32 %v9731_v24, %v12112_v31  ;;  %v3724_v29 = vpop.f32.mrb[21].mxu0  ;;  %v12255_v43 = vld [vmem:[#allocation3 + $0x108] sm:$0xff] }
 0x305   : > { %v3871_v48 = vmax.f32 %v3839_v26, 0.0  ;;  %v10446_v49 = vadd.f32 %v3724_v29, %v12114_v41  ;;  %9779 = vmatprep.mubr.msk.f32.mxu1 %vm3885_vm1, %v12255_v43 }
 0x306   : > { %3947 = vst.msk [vmem:[#allocation3 + $0x150] sm:$0xff] %vm3885_vm1, %v3872_v28  ;;  %v3842_v59 = vadd.f32 %v10445_v30, %v12154_v6  ;;  %9780 = vmatmul.mubr.msk.f32.gmra.mrb[32].mxu1 %vm3885_vm1, %v12260_v57 }
 0x307   : > { %3946 = vst.msk [vmem:[#allocation3 + $0x148] sm:$0xff] %vm3885_vm1, %v3871_v48  ;;  %v3841_v31 = vadd.f32 %v10446_v49, %v12154_v6  ;;  %v9734_v44 = vpop.f32.mrb[22].mxu0 }
 0x308   : > { %v3874_v46 = vmax.f32 %v3842_v59, 0.0  ;;  %v10447_v41 = vadd.f32 %v9734_v44, %v12116_v42  ;;  %v3734_v32 = vpop.f32.mrb[23].mxu0 }
 0x309   : > { %v3873_v2 = vmax.f32 %v3841_v31, 0.0  ;;  %v10448_v7 = vadd.f32 %v3734_v32, %v12118_v60  ;;  %v12278_v4 = vld [vmem:[#allocation3 + $0x130] sm:$0xff] }
 0x30a   : > { %3949 = vst.msk [vmem:[#allocation3 + $0x170] sm:$0xff] %vm3885_vm1, %v3874_v46  ;;  %v3844_v35 = vadd.f32 %v10447_v41, %v12154_v6  ;;  %v12272_v36 = vld [vmem:[#allocation3 + $0x128] sm:$0xff] }
 0x30b   : > { %3948 = vst.msk [vmem:[#allocation3 + $0x168] sm:$0xff] %vm3885_vm1, %v3873_v2  ;;  %v3843_v37 = vadd.f32 %v10448_v7, %v12154_v6  ;;  %v9737_v38 = vpop.f32.mrb[24].mxu0  ;;  %9782 = vmatprep.mubr.msk.f32.mxu1 %vm3885_vm1, %v12272_v36 }
 0x30c   : > { %v3876_v42 = vmax.f32 %v3844_v35, 0.0  ;;  %v10449_v40 = vadd.f32 %v9737_v38, %v12120_v62  ;;  %v3744_v60 = vpop.f32.mrb[25].mxu0  ;;  %9783 = vmatmul.mubr.msk.f32.gmra.mrb[34].mxu1 %vm3885_vm1, %v12278_v4  ;;  %v3961_v38 = vld [vmem:[#allocation3 + $0x7] sm:$0xff] }
 0x30d   : > { %v3875_v52 = vmax.f32 %v3843_v37, 0.0  ;;  %v10450_v53 = vadd.f32 %v3744_v60, %v12122_v47  ;;  %v12292_v62 = vld [vmem:[#allocation3 + $0x150] sm:$0xff]  ;;  %v8323_v60 = vld [vmem:[%s13196_s3 + $0x58] sm:$0xff] }
 0x30e   : > { %3951 = vst.msk [vmem:[#allocation3 + $0x190] sm:$0xff] %vm3885_vm1, %v3876_v42  ;;  %v3846_v54 = vadd.f32 %v10449_v40, %v12154_v6  ;;  %v12286_v55 = vld [vmem:[#allocation3 + $0x148] sm:$0xff]  ;;  %v8322_v40 = vld [vmem:[%s13196_s3 + $0x50] sm:$0xff] }
 0x30f   : > { %3950 = vst.msk [vmem:[#allocation3 + $0x188] sm:$0xff] %vm3885_vm1, %v3875_v52  ;;  %v3845_v8 = vadd.f32 %v10450_v53, %v12154_v6  ;;  %v9740_v10 = vpop.f32.mrb[26].mxu0  ;;  %9785 = vmatprep.mubr.msk.f32.mxu1 %vm3885_vm1, %v12286_v55  ;;  %v3962_v52 = vld [vmem:[#allocation3 + $0xf] sm:$0xff]  ;;  %v10371_v53 = vpack.c.bf16 %v8323_v60, %v8322_v40 }
 0x310   : > { %v3878_v12 = vmax.f32 %v3846_v54, 0.0  ;;  %v10451_v13 = vadd.f32 %v9740_v10, %v12130_v56  ;;  %v3754_v47 = vpop.f32.mrb[27].mxu0  ;;  %9786 = vmatmul.mubr.msk.f32.gmra.mrb[36].mxu1 %vm3885_vm1, %v12292_v62  ;;  %v8356_v54 = vld [vmem:[%s13196_s3 + $0x60] sm:$0xff] }
 0x311   : > { %v3877_v61 = vmax.f32 %v3845_v8, 0.0  ;;  %v10452_v14 = vadd.f32 %v3754_v47, %v12132_v33  ;;  %v12306_v56 = vld [vmem:[#allocation3 + $0x170] sm:$0xff]  ;;  %v8357_v8 = vld [vmem:[%s13196_s3 + $0x68] sm:$0xff] }
 0x312   : > { %3953 = vst.msk [vmem:[#allocation3 + $0x1b0] sm:$0xff] %vm3885_vm1, %v3878_v12  ;;  %v3848_v16 = vadd.f32 %v10451_v13, %v12154_v6  ;;  %v12300_v18 = vld [vmem:[#allocation3 + $0x168] sm:$0xff]  ;;  %v12375_v12 = vpack.c.bf16 %v8357_v8, %v8356_v54  ;;  %v8358_v54 = vld [vmem:[%s13196_s3 + $0x70] sm:$0xff]  ;;  %v8359_v8 = vld [vmem:[%s13196_s3 + $0x78] sm:$0xff] }
 0x313   : > { %3952 = vst.msk [vmem:[#allocation3 + $0x1a8] sm:$0xff] %vm3885_vm1, %v3877_v61  ;;  %v3847_v25 = vadd.f32 %v10452_v14, %v12154_v6  ;;  %v9743_v20 = vpop.f32.mrb[28].mxu0  ;;  %9788 = vmatprep.mubr.msk.f32.mxu1 %vm3885_vm1, %v12300_v18  ;;  %v12370_v10 = vld [vmem:[#allocation3 + $0x27] sm:$0xff]  ;;  %v12377_v13 = vld [vmem:[#allocation3 + $0x2f] sm:$0xff] }
 0x314   : > { %v3880_v22 = vmax.f32 %v3848_v16, 0.0  ;;  %v10453_v26 = vadd.f32 %v9743_v20, %v12134_v45  ;;  %v3764_v33 = vpop.f32.mrb[29].mxu0  ;;  %9789 = vmatmul.mubr.msk.f32.gmra.mrb[38].mxu1 %vm3885_vm1, %v12306_v56  ;;  %v12381_v47 = vld [vmem:[#allocation3 + $0x47] sm:$0xff]  ;;  %v12394_v14 = vld [vmem:[#allocation3 + $0x6f] sm:$0xff] }
 0x315   : > { %v3879_v24 = vmax.f32 %v3847_v25, 0.0  ;;  %v10454_v28 = vadd.f32 %v3764_v33, %v12136_v63  ;;  %v12320_v45 = vld [vmem:[#allocation3 + $0x190] sm:$0xff]  ;;  %v12390_v61 = vld [vmem:[#allocation3 + $0x67] sm:$0xff] }
 0x316   : > { %3955 = vst.msk [vmem:[#allocation3 + $0x1d0] sm:$0xff] %vm3885_vm1, %v3880_v22  ;;  %v3850_v30 = vadd.f32 %v10453_v26, %v12154_v6  ;;  %v12314_v29 = vld [vmem:[#allocation3 + $0x188] sm:$0xff] }
 0x317   : > { %3954 = vst.msk [vmem:[#allocation3 + $0x1c8] sm:$0xff] %vm3885_vm1, %v3879_v24  ;;  %v3849_v48 = vadd.f32 %v10454_v28, %v12154_v6  ;;  %v9746_v49 = vpop.f32.mrb[30].mxu0  ;;  %9791 = vmatprep.mubr.msk.f32.mxu1 %vm3885_vm1, %v12314_v29  ;;  %v12398_v16 = vld [vmem:[#allocation3 + $0x87] sm:$0xff]  ;;  %v12402_v25 = vld [vmem:[#allocation3 + $0x8f] sm:$0xff] }
 0x318   : > { %v3882_v59 = vmax.f32 %v3850_v30, 0.0  ;;  %v10455_v31 = vadd.f32 %v9746_v49, %v12138_v0  ;;  %v3774_v63 = vpop.f32.mrb[31].mxu0  ;;  %9792 = vmatmul.mubr.msk.f32.gmra.mrb[40].mxu1 %vm3885_vm1, %v12320_v45  ;;  %v12406_v20 = vld [vmem:[#allocation3 + $0xa7] sm:$0xff]  ;;  %v12410_v22 = vld [vmem:[#allocation3 + $0xaf] sm:$0xff] }
 0x319   : > { %v3881_v44 = vmax.f32 %v3849_v48, 0.0  ;;  %v10456_v46 = vadd.f32 %v3774_v63, %v12140_v1  ;;  %v12334_v0 = vld [vmem:[#allocation3 + $0x1b0] sm:$0xff]  ;;  %v12414_v26 = vld [vmem:[#allocation3 + $0xc7] sm:$0xff] }
 0x31a   : > { %3957 = vst.msk [vmem:[#allocation3 + $0x1f0] sm:$0xff] %vm3885_vm1, %v3882_v59  ;;  %v3852_v41 = vadd.f32 %v10455_v31, %v12154_v6  ;;  %v12328_v32 = vld [vmem:[#allocation3 + $0x1a8] sm:$0xff]  ;;  %13437 = vst [vmem:[#allocation4_spill] sm:$0xff] %v12334_v0 }
 0x31b   : > { %3956 = vst.msk [vmem:[#allocation3 + $0x1e8] sm:$0xff] %vm3885_vm1, %v3881_v44  ;;  %v3851_v2 = vadd.f32 %v10456_v46, %v12154_v6  ;;  %9794 = vmatprep.mubr.msk.f32.mxu1 %vm3885_vm1, %v12328_v32  ;;  %v12418_v33 = vld [vmem:[#allocation3 + $0xcf] sm:$0xff]  ;;  %v12422_v24 = vld [vmem:[#allocation3 + $0xe7] sm:$0xff] }
 0x31c   : > { %v3884_v7 = vmax.f32 %v3852_v41, 0.0  ;;  %9795 = vmatmul.mubr.msk.f32.gmra.mrb[42].mxu1 %vm3885_vm1, %v12334_v0  ;;  %v12426_v28 = vld [vmem:[#allocation3 + $0xef] sm:$0xff]  ;;  %v12430_v30 = vld [vmem:[#allocation3 + $0x107] sm:$0xff] }
 0x31d   : > { %v3883_v1 = vmax.f32 %v3851_v2, 0.0  ;;  %v12344_v6 = vld [vmem:[#allocation3 + $0x1d0] sm:$0xff]  ;;  %v12438_v49 = vld [vmem:[#allocation3 + $0x127] sm:$0xff] }
 0x31e   : > { %3959 = vst.msk [vmem:[#allocation3 + $0x210] sm:$0xff] %vm3885_vm1, %v3884_v7  ;;  %v12339_v35 = vld [vmem:[#allocation3 + $0x1c8] sm:$0xff]  ;;  %13439 = vst [vmem:[#allocation6_spill] sm:$0xff] %v12344_v6 }
 0x31f   : > { %13438 = vst [vmem:[#allocation5_spill] sm:$0xff] %v12339_v35  ;;  %3958 = vst.msk [vmem:[#allocation3 + $0x208] sm:$0xff] %vm3885_vm1, %v3883_v1  ;;  %9797 = vmatprep.mubr.msk.f32.mxu1 %vm3885_vm1, %v12339_v35  ;;  %v12434_v48 = vld [vmem:[#allocation3 + $0x10f] sm:$0xff]  ;;  %v12446_v31 = vld [vmem:[#allocation3 + $0x147] sm:$0xff] }
 0x320   : > { %9798 = vmatmul.mubr.msk.f32.gmra.mrb[44].mxu1 %vm3885_vm1, %v12344_v6  ;;  %v12442_v59 = vld [vmem:[#allocation3 + $0x12f] sm:$0xff]  ;;  %v12454_v44 = vld [vmem:[#allocation3 + $0x167] sm:$0xff] }
 0x321   : > { %v12352_v42 = vld [vmem:[#allocation3 + $0x1f0] sm:$0xff]  ;;  %v12462_v41 = vld [vmem:[#allocation3 + $0x187] sm:$0xff] }
 0x322   : > { %v12348_v37 = vld [vmem:[#allocation3 + $0x1e8] sm:$0xff]  ;;  %13441 = vst [vmem:[#allocation24_spill] sm:$0xff] %v12352_v42  ;;  %v8392_v6 = vld [vmem:[%s13196_s3 + $0x80] sm:$0xff] }
 0x323   : > { %13440 = vst [vmem:[#allocation7_spill] sm:$0xff] %v12348_v37  ;;  %9800 = vmatprep.mubr.msk.f32.mxu1 %vm3885_vm1, %v12348_v37  ;;  %v12450_v63 = vld [vmem:[#allocation3 + $0x14f] sm:$0xff]  ;;  %v12470_v7 = vld [vmem:[#allocation3 + $0x1a7] sm:$0xff]  ;;  %v10379_v37 = vpack.c.bf16 %v8359_v8, %v8358_v54 }
 0x324   : > { %9801 = vmatmul.mubr.msk.f32.gmra.mrb[46].mxu1 %vm3885_vm1, %v12352_v42  ;;  %v12458_v46 = vld [vmem:[#allocation3 + $0x16f] sm:$0xff]  ;;  %v12486_v60 = vld [vmem:[#allocation3 + $0x1e7] sm:$0xff] }
 0x325   : > { %9811 = vmatprep.mubr.msk.f32.mxu1 %vm3885_vm1, %v3961_v38  ;;  %v12466_v2 = vld [vmem:[#allocation3 + $0x18f] sm:$0xff]  ;;  %v12478_v38 = vld [vmem:[#allocation3 + $0x1c7] sm:$0xff] }
 0x326   : > { %v12474_v1 = vld [vmem:[#allocation3 + $0x1af] sm:$0xff] }
 0x327   : > { %v12482_v40 = vld [vmem:[#allocation3 + $0x1cf] sm:$0xff] }
 0x328   : > { %9812 = vmatmul.mubr.msk.f32.vlgmr.msra.gmra.mrb[16].mxu1 %vm3885_vm1, %v3962_v52  ;;  %v4676_v52 = vld [vmem:[#allocation3 + $0x9] sm:$0xff]  ;;  %v4677_v42 = vld [vmem:[#allocation3 + $0x11] sm:$0xff] }
 0x329   : > { %10370 = vmatpush3.bf16.msra.mxu1 %v12148_v5  ;;  %9814 = vmatprep.mubr.msk.f32.mxu1 %vm3885_vm1, %v12370_v10  ;;  %v12386_v5 = vld [vmem:[#allocation3 + $0x4f] sm:$0xff] }
 0x32a   : > { %10372 = vmatprep.subr.bf16.mxu1 %v10371_v53  ;;  %v8393_v35 = vld [vmem:[%s13196_s3 + $0x88] sm:$0xff]  ;;  %v12515_v54 = vld [vmem:[#allocation3 + $0x31] sm:$0xff] }
 0x32b   : > { %v12508_v0 = vld [vmem:[#allocation3 + $0x29] sm:$0xff] }
 0x32c   : > { %9815 = vmatmul.mubr.msk.f32.gmra.mrb[18].mxu1 %vm3885_vm1, %v12377_v13  ;;  %v12519_v8 = vld [vmem:[#allocation3 + $0x49] sm:$0xff] }
 0x32d   : > { %9817 = vmatprep.mubr.msk.f32.mxu1 %vm3885_vm1, %v12381_v47  ;;  %10374 = vmatpush3.bf16.msra.mxu1 %v10371_v53  ;;  %v12490_v53 = vld [vmem:[#allocation3 + $0x1ef] sm:$0xff]  ;;  %13442 = vst [vmem:[#allocation27_spill] sm:$0xff] %v12519_v8 }
 0x32e   : > { %10376 = vmatprep.subr.bf16.mxu1 %v12375_v12 }
 0x330   : > { %9818 = vmatmul.mubr.msk.f32.gmra.mrb[20].mxu1 %vm3885_vm1, %v12386_v5 }
 0x331   : > { %9820 = vmatprep.mubr.msk.f32.mxu1 %vm3885_vm1, %v12390_v61 }
 0x334   : > { %9821 = vmatmul.mubr.msk.f32.gmra.mrb[22].mxu1 %vm3885_vm1, %v12394_v14 }
 0x335   : > { %9823 = vmatprep.mubr.msk.f32.mxu1 %vm3885_vm1, %v12398_v16 }
 0x338   : > { %9824 = vmatmul.mubr.msk.f32.gmra.mrb[24].mxu1 %vm3885_vm1, %v12402_v25 }
 0x339   : > { %9826 = vmatprep.mubr.msk.f32.mxu1 %vm3885_vm1, %v12406_v20 }
 0x33c   : > { %9827 = vmatmul.mubr.msk.f32.gmra.mrb[26].mxu1 %vm3885_vm1, %v12410_v22 }
 0x33d   : > { %9829 = vmatprep.mubr.msk.f32.mxu1 %vm3885_vm1, %v12414_v26 }
 0x340   : > { %9830 = vmatmul.mubr.msk.f32.gmra.mrb[28].mxu1 %vm3885_vm1, %v12418_v33 }
 0x341   : > { %9832 = vmatprep.mubr.msk.f32.mxu1 %vm3885_vm1, %v12422_v24 }
 0x344   : > { %9833 = vmatmul.mubr.msk.f32.gmra.mrb[30].mxu1 %vm3885_vm1, %v12426_v28 }
 0x345   : > { %9835 = vmatprep.mubr.msk.f32.mxu1 %vm3885_vm1, %v12430_v30 }
 0x348   : > { %9836 = vmatmul.mubr.msk.f32.gmra.mrb[32].mxu1 %vm3885_vm1, %v12434_v48 }
 0x349   : > { %9838 = vmatprep.mubr.msk.f32.mxu1 %vm3885_vm1, %v12438_v49 }
 0x34c   : > { %9839 = vmatmul.mubr.msk.f32.gmra.mrb[34].mxu1 %vm3885_vm1, %v12442_v59 }
 0x34d   : > { %9841 = vmatprep.mubr.msk.f32.mxu1 %vm3885_vm1, %v12446_v31 }
 0x350   : > { %9842 = vmatmul.mubr.msk.f32.gmra.mrb[36].mxu1 %vm3885_vm1, %v12450_v63 }
 0x351   : > { %9844 = vmatprep.mubr.msk.f32.mxu1 %vm3885_vm1, %v12454_v44 }
 0x354   : > { %9845 = vmatmul.mubr.msk.f32.gmra.mrb[38].mxu1 %vm3885_vm1, %v12458_v46 }
 0x355   : > { %9847 = vmatprep.mubr.msk.f32.mxu1 %vm3885_vm1, %v12462_v41 }
 0x358   : > { %9848 = vmatmul.mubr.msk.f32.gmra.mrb[40].mxu1 %vm3885_vm1, %v12466_v2 }
 0x359   : > { %9850 = vmatprep.mubr.msk.f32.mxu1 %vm3885_vm1, %v12470_v7 }
 0x35c   : > { %9851 = vmatmul.mubr.msk.f32.gmra.mrb[42].mxu1 %vm3885_vm1, %v12474_v1 }
 0x35d   : > { %9853 = vmatprep.mubr.msk.f32.mxu1 %vm3885_vm1, %v12478_v38 }
 0x360   : > { %9854 = vmatmul.mubr.msk.f32.gmra.mrb[44].mxu1 %vm3885_vm1, %v12482_v40 }
 0x361   : > { %9856 = vmatprep.mubr.msk.f32.mxu1 %vm3885_vm1, %v12486_v60 }
 0x364   : > { %9857 = vmatmul.mubr.msk.f32.gmra.mrb[46].mxu1 %vm3885_vm1, %v12490_v53 }
 0x365   : > { %9867 = vmatprep.mubr.msk.f32.mxu1 %vm3885_vm1, %v4676_v52  ;;  %v12513_v52 = vpack.c.bf16 %v8393_v35, %v8392_v6  ;;  %v12528_v35 = vld [vmem:[#allocation3 + $0x69] sm:$0xff]  ;;  %v12532_v6 = vld [vmem:[#allocation3 + $0x71] sm:$0xff] }
 0x366   : > { %13444 = vst [vmem:[#allocation33_spill] sm:$0xff] %v12528_v35  ;;  %13445 = vst [vmem:[#allocation26_spill] sm:$0xff] %v12532_v6 }
 0x368   : > { %9868 = vmatmul.mubr.msk.f32.vlgmr.msra.gmra.mrb[16].mxu1 %vm3885_vm1, %v4677_v42  ;;  %v12524_v42 = vld [vmem:[#allocation3 + $0x51] sm:$0xff] }
 0x369   : > { %10378 = vmatpush3.bf16.msra.mxu1 %v12375_v12  ;;  %9870 = vmatprep.mubr.msk.f32.mxu1 %vm3885_vm1, %v12508_v0  ;;  %13443 = vst [vmem:[#allocation29_spill] sm:$0xff] %v12524_v42  ;;  %v12536_v12 = vld [vmem:[#allocation3 + $0x89] sm:$0xff] }
 0x36a   : > { %10380 = vmatprep.subr.bf16.mxu1 %v10379_v37  ;;  %13446 = vst [vmem:[#allocation28_spill] sm:$0xff] %v12536_v12 }
 0x36c   : > { %9871 = vmatmul.mubr.msk.f32.gmra.mrb[18].mxu1 %vm3885_vm1, %v12515_v54 }
 0x36d   : > { %9873 = vmatprep.mubr.msk.f32.mxu1 %vm3885_vm1, %v12519_v8  ;;  %10382 = vmatpush3.bf16.msra.mxu1 %v10379_v37  ;;  %v12540_v37 = vld [vmem:[#allocation3 + $0x91] sm:$0xff]  ;;  %v8429_v8 = vld [vmem:[%s13196_s3 + $0xa8] sm:$0xff] }
 0x36e   : > { %10384 = vmatprep.subr.bf16.mxu1 %v12513_v52  ;;  %13447 = vst [vmem:[#allocation30_spill] sm:$0xff] %v12540_v37 }
 0x370   : > { %9874 = vmatmul.mubr.msk.f32.gmra.mrb[20].mxu1 %vm3885_vm1, %v12524_v42  ;;  %v12544_v42 = vld [vmem:[#allocation3 + $0xa9] sm:$0xff] }
 0x371   : > { %9876 = vmatprep.mubr.msk.f32.mxu1 %vm3885_vm1, %v12528_v35  ;;  %13448 = vst [vmem:[#allocation32_spill] sm:$0xff] %v12544_v42  ;;  %v12548_v35 = vld [vmem:[#allocation3 + $0xb1] sm:$0xff] }
 0x372   : > { %13449 = vst [vmem:[#allocation34_spill] sm:$0xff] %v12548_v35 }
 0x374   : > { %9877 = vmatmul.mubr.msk.f32.gmra.mrb[22].mxu1 %vm3885_vm1, %v12532_v6  ;;  %v12552_v6 = vld [vmem:[#allocation3 + $0xc9] sm:$0xff] }
 0x375   : > { %9879 = vmatprep.mubr.msk.f32.mxu1 %vm3885_vm1, %v12536_v12  ;;  %13450 = vst [vmem:[#allocation36_spill] sm:$0xff] %v12552_v6  ;;  %v12556_v12 = vld [vmem:[#allocation3 + $0xd1] sm:$0xff] }
 0x376   : > { %13451 = vst [vmem:[#allocation38_spill] sm:$0xff] %v12556_v12 }
 0x378   : > { %9880 = vmatmul.mubr.msk.f32.gmra.mrb[24].mxu1 %vm3885_vm1, %v12540_v37  ;;  %v12560_v37 = vld [vmem:[#allocation3 + $0xe9] sm:$0xff] }
 0x379   : > { %9882 = vmatprep.mubr.msk.f32.mxu1 %vm3885_vm1, %v12544_v42  ;;  %13452 = vst [vmem:[#allocation40_spill] sm:$0xff] %v12560_v37  ;;  %v12564_v42 = vld [vmem:[#allocation3 + $0xf1] sm:$0xff] }
 0x37a   : > { %13453 = vst [vmem:[#allocation41_spill] sm:$0xff] %v12564_v42 }
 0x37c   : > { %9883 = vmatmul.mubr.msk.f32.gmra.mrb[26].mxu1 %vm3885_vm1, %v12548_v35  ;;  %v12568_v35 = vld [vmem:[#allocation3 + $0x109] sm:$0xff] }
 0x37d   : > { %9885 = vmatprep.mubr.msk.f32.mxu1 %vm3885_vm1, %v12552_v6  ;;  %13454 = vst [vmem:[#allocation8_spill] sm:$0xff] %v12568_v35  ;;  %v12572_v6 = vld [vmem:[#allocation3 + $0x111] sm:$0xff] }
 0x37e   : > { %13455 = vst [vmem:[#allocation9_spill] sm:$0xff] %v12572_v6 }
 0x380   : > { %9886 = vmatmul.mubr.msk.f32.gmra.mrb[28].mxu1 %vm3885_vm1, %v12556_v12  ;;  %v12576_v12 = vld [vmem:[#allocation3 + $0x129] sm:$0xff] }
 0x381   : > { %9888 = vmatprep.mubr.msk.f32.mxu1 %vm3885_vm1, %v12560_v37  ;;  %13456 = vst [vmem:[#allocation10_spill] sm:$0xff] %v12576_v12  ;;  %v12580_v37 = vld [vmem:[#allocation3 + $0x131] sm:$0xff] }
 0x382   : > { %13457 = vst [vmem:[#allocation11_spill] sm:$0xff] %v12580_v37 }
 0x384   : > { %9889 = vmatmul.mubr.msk.f32.gmra.mrb[30].mxu1 %vm3885_vm1, %v12564_v42  ;;  %v12584_v42 = vld [vmem:[#allocation3 + $0x149] sm:$0xff] }
 0x385   : > { %9891 = vmatprep.mubr.msk.f32.mxu1 %vm3885_vm1, %v12568_v35  ;;  %13458 = vst [vmem:[#allocation12_spill] sm:$0xff] %v12584_v42  ;;  %v12588_v35 = vld [vmem:[#allocation3 + $0x151] sm:$0xff] }
 0x386   : > { %13459 = vst [vmem:[#allocation13_spill] sm:$0xff] %v12588_v35 }
 0x388   : > { %9892 = vmatmul.mubr.msk.f32.gmra.mrb[32].mxu1 %vm3885_vm1, %v12572_v6  ;;  %v12592_v6 = vld [vmem:[#allocation3 + $0x169] sm:$0xff] }
 0x389   : > { %9894 = vmatprep.mubr.msk.f32.mxu1 %vm3885_vm1, %v12576_v12  ;;  %13460 = vst [vmem:[#allocation14_spill] sm:$0xff] %v12592_v6  ;;  %v12596_v12 = vld [vmem:[#allocation3 + $0x171] sm:$0xff] }
 0x38a   : > { %13461 = vst [vmem:[#allocation15_spill] sm:$0xff] %v12596_v12 }
 0x38c   : > { %9895 = vmatmul.mubr.msk.f32.gmra.mrb[34].mxu1 %vm3885_vm1, %v12580_v37  ;;  %v12600_v37 = vld [vmem:[#allocation3 + $0x189] sm:$0xff] }
 0x38d   : > { %9897 = vmatprep.mubr.msk.f32.mxu1 %vm3885_vm1, %v12584_v42  ;;  %13462 = vst [vmem:[#allocation16_spill] sm:$0xff] %v12600_v37  ;;  %v12604_v42 = vld [vmem:[#allocation3 + $0x191] sm:$0xff] }
 0x38e   : > { %13463 = vst [vmem:[#allocation17_spill] sm:$0xff] %v12604_v42 }
 0x390   : > { %9898 = vmatmul.mubr.msk.f32.gmra.mrb[36].mxu1 %vm3885_vm1, %v12588_v35  ;;  %v12608_v35 = vld [vmem:[#allocation3 + $0x1a9] sm:$0xff] }
 0x391   : > { %9900 = vmatprep.mubr.msk.f32.mxu1 %vm3885_vm1, %v12592_v6  ;;  %13464 = vst [vmem:[#allocation18_spill] sm:$0xff] %v12608_v35  ;;  %v12612_v6 = vld [vmem:[#allocation3 + $0x1b1] sm:$0xff] }
 0x392   : > { %13465 = vst [vmem:[#allocation19_spill] sm:$0xff] %v12612_v6 }
 0x394   : > { %9901 = vmatmul.mubr.msk.f32.gmra.mrb[38].mxu1 %vm3885_vm1, %v12596_v12  ;;  %v12616_v12 = vld [vmem:[#allocation3 + $0x1c9] sm:$0xff] }
 0x395   : > { %9903 = vmatprep.mubr.msk.f32.mxu1 %vm3885_vm1, %v12600_v37  ;;  %13466 = vst [vmem:[#allocation20_spill] sm:$0xff] %v12616_v12  ;;  %v12620_v37 = vld [vmem:[#allocation3 + $0x1d1] sm:$0xff] }
 0x396   : > { %13467 = vst [vmem:[#allocation21_spill] sm:$0xff] %v12620_v37 }
 0x398   : > { %9904 = vmatmul.mubr.msk.f32.gmra.mrb[40].mxu1 %vm3885_vm1, %v12604_v42  ;;  %v12624_v42 = vld [vmem:[#allocation3 + $0x1e9] sm:$0xff] }
 0x399   : > { %9906 = vmatprep.mubr.msk.f32.mxu1 %vm3885_vm1, %v12608_v35  ;;  %13468 = vst [vmem:[#allocation22_spill] sm:$0xff] %v12624_v42  ;;  %v12628_v35 = vld [vmem:[#allocation3 + $0x1f1] sm:$0xff] }
 0x39a   : > { %13469 = vst [vmem:[#allocation23_spill] sm:$0xff] %v12628_v35 }
 0x39c   : > { %9907 = vmatmul.mubr.msk.f32.gmra.mrb[42].mxu1 %vm3885_vm1, %v12612_v6  ;;  %v8394_v6 = vld [vmem:[%s13196_s3 + $0x90] sm:$0xff] }
 0x39d   : > { %9909 = vmatprep.mubr.msk.f32.mxu1 %vm3885_vm1, %v12616_v12  ;;  %v8395_v12 = vld [vmem:[%s13196_s3 + $0x98] sm:$0xff] }
 0x3a0   : > { %9910 = vmatmul.mubr.msk.f32.gmra.mrb[44].mxu1 %vm3885_vm1, %v12620_v37  ;;  %v10387_v37 = vpack.c.bf16 %v8395_v12, %v8394_v6  ;;  %v8464_v6 = vld [vmem:[%s13196_s3 + $0xc0] sm:$0xff]  ;;  %v8465_v12 = vld [vmem:[%s13196_s3 + $0xc8] sm:$0xff] }
 0x3a1   : > { %9912 = vmatprep.mubr.msk.f32.mxu1 %vm3885_vm1, %v12624_v42  ;;  %v8428_v42 = vld [vmem:[%s13196_s3 + $0xa0] sm:$0xff] }
 0x3a4   : > { %9913 = vmatmul.mubr.msk.f32.gmra.mrb[46].mxu1 %vm3885_vm1, %v12628_v35  ;;  %v10391_v35 = vpack.c.bf16 %v8429_v8, %v8428_v42  ;;  %v8431_v8 = vld [vmem:[%s13196_s3 + $0xb8] sm:$0xff] }
 0x3a5   : > { %9923 = vmatprep.mubr.msk.f32.mxu1 %vm3885_vm1, %v12370_v10  ;;  %v12705_v10 = vld [vmem:[#allocation3 + $0x207] sm:$0xff] }
 0x3a8   : > { %9924 = vmatmul.mubr.msk.f32.vlgmr.msra.gmra.mrb[16].mxu1 %vm3885_vm1, %v12377_v13  ;;  %v12709_v13 = vld [vmem:[#allocation3 + $0x20f] sm:$0xff] }
 0x3a9   : > { %10386 = vmatpush3.bf16.msra.mxu1 %v12513_v52  ;;  %9926 = vmatprep.mubr.msk.f32.mxu1 %vm3885_vm1, %v12381_v47  ;;  %v8430_v52 = vld [vmem:[%s13196_s3 + $0xb0] sm:$0xff] }
 0x3aa   : > { %10388 = vmatprep.subr.bf16.mxu1 %v10387_v37  ;;  %v10395_v42 = vpack.c.bf16 %v8431_v8, %v8430_v52  ;;  %v13488_v52 = vld [vmem:[#allocation9_spill] sm:$0xff]  ;;  %v13489_v8 = vld [vmem:[#allocation10_spill] sm:$0xff] }
 0x3ac   : > { %9927 = vmatmul.mubr.msk.f32.gmra.mrb[18].mxu1 %vm3885_vm1, %v12386_v5 }
 0x3ad   : > { %9929 = vmatprep.mubr.msk.f32.mxu1 %vm3885_vm1, %v12390_v61  ;;  %10390 = vmatpush3.bf16.msra.mxu1 %v10387_v37  ;;  %v10399_v37 = vpack.c.bf16 %v8465_v12, %v8464_v6  ;;  %v13491_v6 = vld [vmem:[#allocation12_spill] sm:$0xff]  ;;  %v13492_v12 = vld [vmem:[#allocation13_spill] sm:$0xff] }
 0x3ae   : > { %10392 = vmatprep.subr.bf16.mxu1 %v10391_v35 }
 0x3b0   : > { %9930 = vmatmul.mubr.msk.f32.gmra.mrb[20].mxu1 %vm3885_vm1, %v12394_v14 }
 0x3b1   : > { %9932 = vmatprep.mubr.msk.f32.mxu1 %vm3885_vm1, %v12398_v16 }
 0x3b4   : > { %9933 = vmatmul.mubr.msk.f32.gmra.mrb[22].mxu1 %vm3885_vm1, %v12402_v25 }
 0x3b5   : > { %9935 = vmatprep.mubr.msk.f32.mxu1 %vm3885_vm1, %v12406_v20 }
 0x3b8   : > { %9936 = vmatmul.mubr.msk.f32.gmra.mrb[24].mxu1 %vm3885_vm1, %v12410_v22 }
 0x3b9   : > { %9938 = vmatprep.mubr.msk.f32.mxu1 %vm3885_vm1, %v12414_v26 }
 0x3bc   : > { %9939 = vmatmul.mubr.msk.f32.gmra.mrb[26].mxu1 %vm3885_vm1, %v12418_v33 }
 0x3bd   : > { %9941 = vmatprep.mubr.msk.f32.mxu1 %vm3885_vm1, %v12422_v24 }
 0x3c0   : > { %9942 = vmatmul.mubr.msk.f32.gmra.mrb[28].mxu1 %vm3885_vm1, %v12426_v28 }
 0x3c1   : > { %9944 = vmatprep.mubr.msk.f32.mxu1 %vm3885_vm1, %v12430_v30 }
 0x3c4   : > { %9945 = vmatmul.mubr.msk.f32.gmra.mrb[30].mxu1 %vm3885_vm1, %v12434_v48 }
 0x3c5   : > { %9947 = vmatprep.mubr.msk.f32.mxu1 %vm3885_vm1, %v12438_v49 }
 0x3c8   : > { %9948 = vmatmul.mubr.msk.f32.gmra.mrb[32].mxu1 %vm3885_vm1, %v12442_v59 }
 0x3c9   : > { %9950 = vmatprep.mubr.msk.f32.mxu1 %vm3885_vm1, %v12446_v31 }
 0x3cc   : > { %9951 = vmatmul.mubr.msk.f32.gmra.mrb[34].mxu1 %vm3885_vm1, %v12450_v63 }
 0x3cd   : > { %9953 = vmatprep.mubr.msk.f32.mxu1 %vm3885_vm1, %v12454_v44 }
 0x3d0   : > { %9954 = vmatmul.mubr.msk.f32.gmra.mrb[36].mxu1 %vm3885_vm1, %v12458_v46 }
 0x3d1   : > { %9956 = vmatprep.mubr.msk.f32.mxu1 %vm3885_vm1, %v12462_v41 }
 0x3d4   : > { %9957 = vmatmul.mubr.msk.f32.gmra.mrb[38].mxu1 %vm3885_vm1, %v12466_v2 }
 0x3d5   : > { %9959 = vmatprep.mubr.msk.f32.mxu1 %vm3885_vm1, %v12470_v7 }
 0x3d8   : > { %9960 = vmatmul.mubr.msk.f32.gmra.mrb[40].mxu1 %vm3885_vm1, %v12474_v1 }
 0x3d9   : > { %9962 = vmatprep.mubr.msk.f32.mxu1 %vm3885_vm1, %v12478_v38 }
 0x3dc   : > { %9963 = vmatmul.mubr.msk.f32.gmra.mrb[42].mxu1 %vm3885_vm1, %v12482_v40 }
 0x3dd   : > { %9965 = vmatprep.mubr.msk.f32.mxu1 %vm3885_vm1, %v12486_v60 }
 0x3e0   : > { %9966 = vmatmul.mubr.msk.f32.gmra.mrb[44].mxu1 %vm3885_vm1, %v12490_v53 }
 0x3e1   : > { %9968 = vmatprep.mubr.msk.f32.mxu1 %vm3885_vm1, %v12705_v10 }
 0x3e4   : > { %9969 = vmatmul.mubr.msk.f32.gmra.mrb[46].mxu1 %vm3885_vm1, %v12709_v13 }
 0x3e5   : > { %9979 = vmatprep.mubr.msk.f32.mxu1 %vm3885_vm1, %v12168_v15  ;;  %v13470_v15 = vld [vmem:[#allocation4_spill] sm:$0xff] }
 0x3e8   : > { %9980 = vmatmul.mubr.msk.f32.vlgmr.msra.gmra.mrb[16].mxu1 %vm3885_vm1, %v12174_v17  ;;  %v13471_v17 = vld [vmem:[#allocation5_spill] sm:$0xff] }
 0x3e9   : > { %10394 = vmatpush3.bf16.msra.mxu1 %v10391_v35  ;;  %9982 = vmatprep.mubr.msk.f32.mxu1 %vm3885_vm1, %v12180_v23  ;;  %v13472_v23 = vld [vmem:[#allocation6_spill] sm:$0xff]  ;;  %v13487_v35 = vld [vmem:[#allocation8_spill] sm:$0xff] }
 0x3ea   : > { %10396 = vmatprep.subr.bf16.mxu1 %v10395_v42 }
 0x3ec   : > { %9983 = vmatmul.mubr.msk.f32.gmra.mrb[18].mxu1 %vm3885_vm1, %v12186_v27  ;;  %v13473_v27 = vld [vmem:[#allocation7_spill] sm:$0xff] }
 0x3ed   : > { %9985 = vmatprep.mubr.msk.f32.mxu1 %vm3885_vm1, %v12192_v50  ;;  %10398 = vmatpush3.bf16.msra.mxu1 %v10395_v42  ;;  %v13474_v50 = vld [vmem:[#allocation24_spill] sm:$0xff]  ;;  %v13490_v42 = vld [vmem:[#allocation11_spill] sm:$0xff] }
 0x3ee   : > { %10400 = vmatprep.subr.bf16.mxu1 %v10399_v37 }
 0x3f0   : > { %9986 = vmatmul.mubr.msk.f32.gmra.mrb[20].mxu1 %vm3885_vm1, %v12198_v58  ;;  %v12785_v58 = vld [vmem:[#allocation3 + $0x208] sm:$0xff] }
 0x3f1   : > { %9988 = vmatprep.mubr.msk.f32.mxu1 %vm3885_vm1, %v12204_v3  ;;  %v12789_v3 = vld [vmem:[#allocation3 + $0x210] sm:$0xff] }
 0x3f4   : > { %9989 = vmatmul.mubr.msk.f32.gmra.mrb[22].mxu1 %vm3885_vm1, %v12210_v34  ;;  %v8466_v34 = vld [vmem:[%s13196_s3 + $0xd0] sm:$0xff] }
 0x3f5   : > { %9991 = vmatprep.mubr.msk.f32.mxu1 %vm3885_vm1, %v12216_v39  ;;  %v8467_v39 = vld [vmem:[%s13196_s3 + $0xd8] sm:$0xff] }
 0x3f8   : > { %9992 = vmatmul.mubr.msk.f32.gmra.mrb[24].mxu1 %vm3885_vm1, %v12222_v51  ;;  %v10403_v51 = vpack.c.bf16 %v8467_v39, %v8466_v34  ;;  %v13494_v34 = vld [vmem:[#allocation15_spill] sm:$0xff]  ;;  %v13495_v39 = vld [vmem:[#allocation16_spill] sm:$0xff] }
 0x3f9   : > { %9994 = vmatprep.mubr.msk.f32.mxu1 %vm3885_vm1, %v12228_v9  ;;  %v8500_v9 = vld [vmem:[%s13196_s3 + $0xe0] sm:$0xff] }
 0x3fc   : > { %9995 = vmatmul.mubr.msk.f32.gmra.mrb[26].mxu1 %vm3885_vm1, %v12234_v11  ;;  %v8501_v11 = vld [vmem:[%s13196_s3 + $0xe8] sm:$0xff] }
 0x3fd   : > { %9997 = vmatprep.mubr.msk.f32.mxu1 %vm3885_vm1, %v12241_v19  ;;  %v13475_v19 = vld [vmem:[#allocation27_spill] sm:$0xff] }
 0x400   : > { %9998 = vmatmul.mubr.msk.f32.gmra.mrb[28].mxu1 %vm3885_vm1, %v12246_v21  ;;  %v10407_v21 = vpack.c.bf16 %v8501_v11, %v8500_v9  ;;  %v13497_v9 = vld [vmem:[#allocation18_spill] sm:$0xff]  ;;  %v13498_v11 = vld [vmem:[#allocation19_spill] sm:$0xff] }
 0x401   : > { %10000 = vmatprep.mubr.msk.f32.mxu1 %vm3885_vm1, %v12255_v43  ;;  %v13476_v43 = vld [vmem:[#allocation29_spill] sm:$0xff] }
 0x404   : > { %10001 = vmatmul.mubr.msk.f32.gmra.mrb[30].mxu1 %vm3885_vm1, %v12260_v57  ;;  %v13477_v57 = vld [vmem:[#allocation33_spill] sm:$0xff] }
 0x405   : > { %10003 = vmatprep.mubr.msk.f32.mxu1 %vm3885_vm1, %v12272_v36  ;;  %v13478_v36 = vld [vmem:[#allocation26_spill] sm:$0xff] }
 0x408   : > { %10004 = vmatmul.mubr.msk.f32.gmra.mrb[32].mxu1 %vm3885_vm1, %v12278_v4  ;;  %v13479_v4 = vld [vmem:[#allocation28_spill] sm:$0xff] }
 0x409   : > { %10006 = vmatprep.mubr.msk.f32.mxu1 %vm3885_vm1, %v12286_v55  ;;  %v13480_v55 = vld [vmem:[#allocation30_spill] sm:$0xff] }
 0x40c   : > { %10007 = vmatmul.mubr.msk.f32.gmra.mrb[34].mxu1 %vm3885_vm1, %v12292_v62  ;;  %v13481_v62 = vld [vmem:[#allocation32_spill] sm:$0xff] }
 0x40d   : > { %10009 = vmatprep.mubr.msk.f32.mxu1 %vm3885_vm1, %v12300_v18  ;;  %v13482_v18 = vld [vmem:[#allocation34_spill] sm:$0xff] }
 0x410   : > { %10010 = vmatmul.mubr.msk.f32.gmra.mrb[36].mxu1 %vm3885_vm1, %v12306_v56  ;;  %v13483_v56 = vld [vmem:[#allocation36_spill] sm:$0xff] }
 0x411   : > { %10012 = vmatprep.mubr.msk.f32.mxu1 %vm3885_vm1, %v12314_v29  ;;  %v13484_v29 = vld [vmem:[#allocation38_spill] sm:$0xff] }
 0x414   : > { %10013 = vmatmul.mubr.msk.f32.gmra.mrb[38].mxu1 %vm3885_vm1, %v12320_v45 }
 0x415   : > { %10015 = vmatprep.mubr.msk.f32.mxu1 %vm3885_vm1, %v12328_v32 }
 0x418   : > { %10016 = vmatmul.mubr.msk.f32.gmra.mrb[40].mxu1 %vm3885_vm1, %v13470_v15 }
 0x419   : > { %10018 = vmatprep.mubr.msk.f32.mxu1 %vm3885_vm1, %v13471_v17 }
 0x41c   : > { %10019 = vmatmul.mubr.msk.f32.gmra.mrb[42].mxu1 %vm3885_vm1, %v13472_v23 }
 0x41d   : > { %10021 = vmatprep.mubr.msk.f32.mxu1 %vm3885_vm1, %v13473_v27 }
 0x420   : > { %10022 = vmatmul.mubr.msk.f32.gmra.mrb[44].mxu1 %vm3885_vm1, %v13474_v50 }
 0x421   : > { %10024 = vmatprep.mubr.msk.f32.mxu1 %vm3885_vm1, %v12785_v58 }
 0x424   : > { %10025 = vmatmul.mubr.msk.f32.gmra.mrb[46].mxu1 %vm3885_vm1, %v12789_v3 }
 0x425   : > { %10035 = vmatprep.mubr.msk.f32.mxu1 %vm3885_vm1, %v12508_v0  ;;  %v13485_v0 = vld [vmem:[#allocation40_spill] sm:$0xff] }
 0x428   : > { %10036 = vmatmul.mubr.msk.f32.vlgmr.msra.gmra.mrb[16].mxu1 %vm3885_vm1, %v12515_v54  ;;  %v13486_v54 = vld [vmem:[#allocation41_spill] sm:$0xff] }
 0x429   : > { %10402 = vmatpush3.bf16.msra.mxu1 %v10399_v37  ;;  %10038 = vmatprep.mubr.msk.f32.mxu1 %vm3885_vm1, %v13475_v19  ;;  %v13493_v37 = vld [vmem:[#allocation14_spill] sm:$0xff] }
 0x42a   : > { %10404 = vmatprep.subr.bf16.mxu1 %v10403_v51 }
 0x42c   : > { %10039 = vmatmul.mubr.msk.f32.gmra.mrb[18].mxu1 %vm3885_vm1, %v13476_v43 }
 0x42d   : > { %10041 = vmatprep.mubr.msk.f32.mxu1 %vm3885_vm1, %v13477_v57  ;;  %10406 = vmatpush3.bf16.msra.mxu1 %v10403_v51  ;;  %v13496_v51 = vld [vmem:[#allocation17_spill] sm:$0xff] }
 0x42e   : > { %10408 = vmatprep.subr.bf16.mxu1 %v10407_v21 }
 0x430   : > { %10042 = vmatmul.mubr.msk.f32.gmra.mrb[20].mxu1 %vm3885_vm1, %v13478_v36 }
 0x431   : > { %10044 = vmatprep.mubr.msk.f32.mxu1 %vm3885_vm1, %v13479_v4 }
 0x434   : > { %10045 = vmatmul.mubr.msk.f32.gmra.mrb[22].mxu1 %vm3885_vm1, %v13480_v55 }
 0x435   : > { %10047 = vmatprep.mubr.msk.f32.mxu1 %vm3885_vm1, %v13481_v62 }
 0x438   : > { %10048 = vmatmul.mubr.msk.f32.gmra.mrb[24].mxu1 %vm3885_vm1, %v13482_v18 }
 0x439   : > { %10050 = vmatprep.mubr.msk.f32.mxu1 %vm3885_vm1, %v13483_v56 }
 0x43c   : > { %10051 = vmatmul.mubr.msk.f32.gmra.mrb[26].mxu1 %vm3885_vm1, %v13484_v29 }
 0x43d   : > { %10053 = vmatprep.mubr.msk.f32.mxu1 %vm3885_vm1, %v13485_v0 }
 0x440   : > { %10054 = vmatmul.mubr.msk.f32.gmra.mrb[28].mxu1 %vm3885_vm1, %v13486_v54 }
 0x441   : > { %10056 = vmatprep.mubr.msk.f32.mxu1 %vm3885_vm1, %v13487_v35 }
 0x444   : > { %10057 = vmatmul.mubr.msk.f32.gmra.mrb[30].mxu1 %vm3885_vm1, %v13488_v52 }
 0x445   : > { %10059 = vmatprep.mubr.msk.f32.mxu1 %vm3885_vm1, %v13489_v8 }
 0x448   : > { %10060 = vmatmul.mubr.msk.f32.gmra.mrb[32].mxu1 %vm3885_vm1, %v13490_v42 }
 0x449   : > { %10062 = vmatprep.mubr.msk.f32.mxu1 %vm3885_vm1, %v13491_v6  ;;  %v13499_v6 = vld [vmem:[#allocation20_spill] sm:$0xff] }
 0x44c   : > { %10063 = vmatmul.mubr.msk.f32.gmra.mrb[34].mxu1 %vm3885_vm1, %v13492_v12  ;;  %v13500_v12 = vld [vmem:[#allocation21_spill] sm:$0xff] }
 0x44d   : > { %10065 = vmatprep.mubr.msk.f32.mxu1 %vm3885_vm1, %v13493_v37  ;;  %v13501_v37 = vld [vmem:[#allocation22_spill] sm:$0xff] }
 0x450   : > { %10066 = vmatmul.mubr.msk.f32.gmra.mrb[36].mxu1 %vm3885_vm1, %v13494_v34  ;;  %v13502_v34 = vld [vmem:[#allocation23_spill] sm:$0xff] }
 0x451   : > { %10068 = vmatprep.mubr.msk.f32.mxu1 %vm3885_vm1, %v13495_v39  ;;  %v12865_v39 = vld [vmem:[#allocation3 + $0x209] sm:$0xff] }
 0x452   : > { %13503 = vst [vmem:[#allocation25_spill] sm:$0xff] %v12865_v39 }
 0x454   : > { %10069 = vmatmul.mubr.msk.f32.gmra.mrb[38].mxu1 %vm3885_vm1, %v13496_v51 }
 0x455   : > { %10071 = vmatprep.mubr.msk.f32.mxu1 %vm3885_vm1, %v13497_v9  ;;  %v12869_v9 = vld [vmem:[#allocation3 + $0x211] sm:$0xff] }
 0x456   : > { %13504 = vst [vmem:[#allocation31_spill] sm:$0xff] %v12869_v9 }
 0x458   : > { %10072 = vmatmul.mubr.msk.f32.gmra.mrb[40].mxu1 %vm3885_vm1, %v13498_v11 }
 0x459   : > { %10074 = vmatprep.mubr.msk.f32.mxu1 %vm3885_vm1, %v13499_v6  ;;  %v8502_v6 = vld [vmem:[%s13196_s3 + $0xf0] sm:$0xff] }
 0x45c   : > { %10075 = vmatmul.mubr.msk.f32.gmra.mrb[42].mxu1 %vm3885_vm1, %v13500_v12  ;;  %v8503_v12 = vld [vmem:[%s13196_s3 + $0xf8] sm:$0xff] }
 0x45d   : > { %10077 = vmatprep.mubr.msk.f32.mxu1 %vm3885_vm1, %v13501_v37  ;;  %v8537_v37 = vld [vmem:[%s13196_s3 + $0x108] sm:$0xff] }
 0x460   : > { %10078 = vmatmul.mubr.msk.f32.gmra.mrb[44].mxu1 %vm3885_vm1, %v13502_v34  ;;  %v10411_v34 = vpack.c.bf16 %v8503_v12, %v8502_v6  ;;  %v6641_v6 = vld [vmem:[#allocation3 + $0x128] sm:$0xff]  ;;  %v6642_v12 = vld [vmem:[#allocation3 + $0x130] sm:$0xff] }
 0x461   : > { %10080 = vmatprep.mubr.msk.f32.mxu1 %vm3885_vm1, %v12865_v39  ;;  %v8536_v39 = vld [vmem:[%s13196_s3 + $0x100] sm:$0xff] }
 0x464   : > { %10081 = vmatmul.mubr.msk.f32.gmra.mrb[46].mxu1 %vm3885_vm1, %v12869_v9  ;;  %v10415_v9 = vpack.c.bf16 %v8537_v37, %v8536_v39  ;;  %v6643_v37 = vld [vmem:[#allocation3 + $0x148] sm:$0xff] }
 0x465   : > { %10091 = vmatprep.mubr.msk.f32.mxu1 %vm3885_vm1, %v12381_v47  ;;  %v6267_v47 = vld [vmem:[#allocation3 + $0x227] sm:$0xff] }
 0x466   : > { %v6645_v39 = vld [vmem:[#allocation3 + $0x168] sm:$0xff] }
 0x468   : > { %10092 = vmatmul.mubr.msk.f32.vlgmr.msra.gmra.mrb[16].mxu1 %vm3885_vm1, %v12386_v5  ;;  %v6268_v5 = vld [vmem:[#allocation3 + $0x22f] sm:$0xff] }
 0x469   : > { %10410 = vmatpush3.bf16.msra.mxu1 %v10407_v21  ;;  %10094 = vmatprep.mubr.msk.f32.mxu1 %vm3885_vm1, %v12390_v61  ;;  %v6627_v61 = vld [vmem:[#allocation3 + $0x48] sm:$0xff]  ;;  %v6640_v21 = vld [vmem:[#allocation3 + $0x110] sm:$0xff] }
 0x46a   : > { %10412 = vmatprep.subr.bf16.mxu1 %v10411_v34 }
 0x46c   : > { %10095 = vmatmul.mubr.msk.f32.gmra.mrb[18].mxu1 %vm3885_vm1, %v12394_v14  ;;  %v8538_v14 = vld [vmem:[%s13196_s3 + $0x110] sm:$0xff] }
 0x46d   : > { %10097 = vmatprep.mubr.msk.f32.mxu1 %vm3885_vm1, %v12398_v16  ;;  %10414 = vmatpush3.bf16.msra.mxu1 %v10411_v34  ;;  %v8539_v16 = vld [vmem:[%s13196_s3 + $0x118] sm:$0xff]  ;;  %v6644_v34 = vld [vmem:[#allocation3 + $0x150] sm:$0xff] }
 0x46e   : > { %10416 = vmatprep.subr.bf16.mxu1 %v10415_v9 }
 0x470   : > { %10098 = vmatmul.mubr.msk.f32.gmra.mrb[20].mxu1 %vm3885_vm1, %v12402_v25  ;;  %v7477_v25 = vld [vmem:[%s13198_s5] sm:$0xff] }
 0x471   : > { %10100 = vmatprep.mubr.msk.f32.mxu1 %vm3885_vm1, %v12406_v20  ;;  %v7478_v20 = vld [vmem:[%s13198_s5 + $0x8] sm:$0xff] }
 0x474   : > { %10101 = vmatmul.mubr.msk.f32.gmra.mrb[22].mxu1 %vm3885_vm1, %v12410_v22  ;;  %v7479_v22 = vld [vmem:[%s13198_s5 + $0x10] sm:$0xff] }
 0x475   : > { %10103 = vmatprep.mubr.msk.f32.mxu1 %vm3885_vm1, %v12414_v26  ;;  %v10423_v26 = vpack.c.bf16 %v7478_v20, %v7477_v25 }
 0x477   : > { %10424 = vmatprep.subr.bf16.mxu0 %v10423_v26 }
 0x478   : > { %10104 = vmatmul.mubr.msk.f32.gmra.mrb[24].mxu1 %vm3885_vm1, %v12418_v33  ;;  %v7480_v33 = vld [vmem:[%s13198_s5 + $0x18] sm:$0xff]  ;;  %10426 = vmatpush3.bf16.msra.mxu0 %v10423_v26 }
 0x479   : > { %10106 = vmatprep.mubr.msk.f32.mxu1 %vm3885_vm1, %v12422_v24  ;;  %v10419_v24 = vpack.c.bf16 %v8539_v16, %v8538_v14 }
 0x47c   : > { %10107 = vmatmul.mubr.msk.f32.gmra.mrb[26].mxu1 %vm3885_vm1, %v12426_v28  ;;  %v10427_v28 = vpack.c.bf16 %v7480_v33, %v7479_v22 }
 0x47d   : > { %10109 = vmatprep.mubr.msk.f32.mxu1 %vm3885_vm1, %v12430_v30  ;;  %v6628_v30 = vld [vmem:[#allocation3 + $0x50] sm:$0xff] }
 0x47e   : > { %10428 = vmatprep.subr.bf16.mxu0 %v10427_v28 }
 0x47f   : > { %10430 = vmatpush3.bf16.msra.mxu0 %v10427_v28 }
 0x480   : > { %10110 = vmatmul.mubr.msk.f32.gmra.mrb[28].mxu1 %vm3885_vm1, %v12434_v48  ;;  %v7481_v48 = vld [vmem:[%s13198_s5 + $0x20] sm:$0xff] }
 0x481   : > { %10112 = vmatprep.mubr.msk.f32.mxu1 %vm3885_vm1, %v12438_v49  ;;  %v7482_v49 = vld [vmem:[%s13198_s5 + $0x28] sm:$0xff] }
 0x484   : > { %10113 = vmatmul.mubr.msk.f32.gmra.mrb[30].mxu1 %vm3885_vm1, %v12442_v59  ;;  %v6629_v59 = vld [vmem:[#allocation3 + $0x68] sm:$0xff] }
 0x485   : > { %10115 = vmatprep.mubr.msk.f32.mxu1 %vm3885_vm1, %v12446_v31  ;;  %v10431_v31 = vpack.c.bf16 %v7482_v49, %v7481_v48 }
 0x487   : > { %10432 = vmatprep.subr.bf16.mxu0 %v10431_v31 }
 0x488   : > { %10116 = vmatmul.mubr.msk.f32.gmra.mrb[32].mxu1 %vm3885_vm1, %v12450_v63  ;;  %v7483_v63 = vld [vmem:[%s13198_s5 + $0x30] sm:$0xff]  ;;  %10434 = vmatpush3.bf16.msra.mxu0 %v10431_v31 }
 0x489   : > { %10118 = vmatprep.mubr.msk.f32.mxu1 %vm3885_vm1, %v12454_v44  ;;  %v7484_v44 = vld [vmem:[%s13198_s5 + $0x38] sm:$0xff] }
 0x48c   : > { %10119 = vmatmul.mubr.msk.f32.gmra.mrb[34].mxu1 %vm3885_vm1, %v12458_v46  ;;  %v6630_v46 = vld [vmem:[#allocation3 + $0x70] sm:$0xff] }
 0x48d   : > { %10121 = vmatprep.mubr.msk.f32.mxu1 %vm3885_vm1, %v12462_v41  ;;  %v6631_v41 = vld [vmem:[#allocation3 + $0x88] sm:$0xff] }
 0x490   : > { %10122 = vmatmul.mubr.msk.f32.gmra.mrb[36].mxu1 %vm3885_vm1, %v12466_v2  ;;  %v10435_v2 = vpack.c.bf16 %v7484_v44, %v7483_v63 }
 0x491   : > { %10124 = vmatprep.mubr.msk.f32.mxu1 %vm3885_vm1, %v12470_v7  ;;  %v6632_v7 = vld [vmem:[#allocation3 + $0x90] sm:$0xff] }
 0x492   : > { %10436 = vmatprep.subr.bf16.mxu0 %v10435_v2 }
 0x493   : > { %10438 = vmatpush3.bf16.msra.mxu0 %v10435_v2 }
 0x494   : > { %10125 = vmatmul.mubr.msk.f32.gmra.mrb[38].mxu1 %vm3885_vm1, %v12474_v1  ;;  %v6633_v1 = vld [vmem:[#allocation3 + $0xa8] sm:$0xff] }
 0x495   : > { %10127 = vmatprep.mubr.msk.f32.mxu1 %vm3885_vm1, %v12478_v38  ;;  %v6634_v38 = vld [vmem:[#allocation3 + $0xb0] sm:$0xff] }
 0x498   : > { %10128 = vmatmul.mubr.msk.f32.gmra.mrb[40].mxu1 %vm3885_vm1, %v12482_v40  ;;  %v6635_v40 = vld [vmem:[#allocation3 + $0xc8] sm:$0xff] }
 0x499   : > { %10130 = vmatprep.mubr.msk.f32.mxu1 %vm3885_vm1, %v12486_v60  ;;  %v6636_v60 = vld [vmem:[#allocation3 + $0xd0] sm:$0xff] }
 0x49c   : > { %10131 = vmatmul.mubr.msk.f32.gmra.mrb[42].mxu1 %vm3885_vm1, %v12490_v53  ;;  %v6637_v53 = vld [vmem:[#allocation3 + $0xe8] sm:$0xff] }
 0x49d   : > { %10133 = vmatprep.mubr.msk.f32.mxu1 %vm3885_vm1, %v12705_v10  ;;  %v6638_v10 = vld [vmem:[#allocation3 + $0xf0] sm:$0xff] }
 0x4a0   : > { %10134 = vmatmul.mubr.msk.f32.gmra.mrb[44].mxu1 %vm3885_vm1, %v12709_v13  ;;  %v6639_v13 = vld [vmem:[#allocation3 + $0x108] sm:$0xff] }
 0x4a1   : > { %10136 = vmatprep.mubr.msk.f32.mxu1 %vm3885_vm1, %v6267_v47  ;;  %v6647_v47 = vld [vmem:[#allocation3 + $0x188] sm:$0xff] }
 0x4a4   : > { %10137 = vmatmul.mubr.msk.f32.gmra.mrb[46].mxu1 %vm3885_vm1, %v6268_v5 }
 0x4a5   : > { %10147 = vmatprep.mubr.msk.f32.mxu1 %vm3885_vm1, %v6627_v61 }
 0x4a8   : > { %10148 = vmatmul.mubr.msk.f32.vlgmr.msra.gmra.mrb[16].mxu1 %vm3885_vm1, %v6628_v30 }
 0x4a9   : > { %10418 = vmatpush3.bf16.msra.mxu1 %v10415_v9  ;;  %10150 = vmatprep.mubr.msk.f32.mxu1 %vm3885_vm1, %v6629_v59  ;;  %v6646_v9 = vld [vmem:[#allocation3 + $0x170] sm:$0xff] }
 0x4aa   : > { %10420 = vmatprep.subr.bf16.mxu1 %v10419_v24 }
 0x4ac   : > { %10151 = vmatmul.mubr.msk.f32.gmra.mrb[18].mxu1 %vm3885_vm1, %v6630_v46 }
 0x4ad   : > { %10153 = vmatprep.mubr.msk.f32.mxu1 %vm3885_vm1, %v6631_v41  ;;  %10422 = vmatpush3.bf16.msra.mxu1 %v10419_v24 }
 0x4b0   : > { %10154 = vmatmul.mubr.msk.f32.gmra.mrb[20].mxu1 %vm3885_vm1, %v6632_v7 }
 0x4b1   : > { %10156 = vmatprep.mubr.msk.f32.mxu1 %vm3885_vm1, %v6633_v1 }
 0x4b4   : > { %10157 = vmatmul.mubr.msk.f32.gmra.mrb[22].mxu1 %vm3885_vm1, %v6634_v38 }
 0x4b5   : > { %10159 = vmatprep.mubr.msk.f32.mxu1 %vm3885_vm1, %v6635_v40 }
 0x4b8   : > { %10160 = vmatmul.mubr.msk.f32.gmra.mrb[24].mxu1 %vm3885_vm1, %v6636_v60 }
 0x4b9   : > { %10162 = vmatprep.mubr.msk.f32.mxu1 %vm3885_vm1, %v6637_v53 }
 0x4bc   : > { %10163 = vmatmul.mubr.msk.f32.gmra.mrb[26].mxu1 %vm3885_vm1, %v6638_v10 }
 0x4bd   : > { %10165 = vmatprep.mubr.msk.f32.mxu1 %vm3885_vm1, %v6639_v13 }
 0x4c0   : > { %10166 = vmatmul.mubr.msk.f32.gmra.mrb[28].mxu1 %vm3885_vm1, %v6640_v21 }
 0x4c1   : > { %10168 = vmatprep.mubr.msk.f32.mxu1 %vm3885_vm1, %v6641_v6 }
 0x4c4   : > { %10169 = vmatmul.mubr.msk.f32.gmra.mrb[30].mxu1 %vm3885_vm1, %v6642_v12 }
 0x4c5   : > { %10171 = vmatprep.mubr.msk.f32.mxu1 %vm3885_vm1, %v6643_v37 }
 0x4c8   : > { %10172 = vmatmul.mubr.msk.f32.gmra.mrb[32].mxu1 %vm3885_vm1, %v6644_v34 }
 0x4c9   : > { %10174 = vmatprep.mubr.msk.f32.mxu1 %vm3885_vm1, %v6645_v39 }
 0x4cc   : > { %10175 = vmatmul.mubr.msk.f32.gmra.mrb[34].mxu1 %vm3885_vm1, %v6646_v9 }
 0x4cd   : > { %10177 = vmatprep.mubr.msk.f32.mxu1 %vm3885_vm1, %v6647_v47 }
 0x4d0   : > { %10178 = vmatmul.mubr.msk.f32.gmra.mrb[36].mxu1 %vm3885_vm1, %v12320_v45  ;;  %v6657_v45 = vld [vmem:[#allocation3 + $0x228] sm:$0xff] }
 0x4d1   : > { %10180 = vmatprep.mubr.msk.f32.mxu1 %vm3885_vm1, %v12328_v32  ;;  %v6658_v32 = vld [vmem:[#allocation3 + $0x230] sm:$0xff] }
 0x4d4   : > { %10181 = vmatmul.mubr.msk.f32.gmra.mrb[38].mxu1 %vm3885_vm1, %v13470_v15  ;;  %v13505_v15 = vld [vmem:[#allocation12_spill] sm:$0xff] }
 0x4d5   : > { %10183 = vmatprep.mubr.msk.f32.mxu1 %vm3885_vm1, %v13471_v17  ;;  %v13506_v17 = vld [vmem:[#allocation13_spill] sm:$0xff] }
 0x4d8   : > { %10184 = vmatmul.mubr.msk.f32.gmra.mrb[40].mxu1 %vm3885_vm1, %v13472_v23  ;;  %v13507_v23 = vld [vmem:[#allocation14_spill] sm:$0xff] }
 0x4d9   : > { %10186 = vmatprep.mubr.msk.f32.mxu1 %vm3885_vm1, %v13473_v27  ;;  %v13508_v27 = vld [vmem:[#allocation15_spill] sm:$0xff] }
 0x4dc   : > { %10187 = vmatmul.mubr.msk.f32.gmra.mrb[42].mxu1 %vm3885_vm1, %v13474_v50  ;;  %v13509_v50 = vld [vmem:[#allocation16_spill] sm:$0xff] }
 0x4dd   : > { %10189 = vmatprep.mubr.msk.f32.mxu1 %vm3885_vm1, %v12785_v58  ;;  %v13510_v58 = vld [vmem:[#allocation18_spill] sm:$0xff] }
 0x4e0   : > { %10190 = vmatmul.mubr.msk.f32.gmra.mrb[44].mxu1 %vm3885_vm1, %v12789_v3  ;;  %v13511_v3 = vld [vmem:[#allocation20_spill] sm:$0xff] }
 0x4e1   : > { %10192 = vmatprep.mubr.msk.f32.mxu1 %vm3885_vm1, %v6657_v45 }
 0x4e4   : > { %10193 = vmatmul.mubr.msk.f32.gmra.mrb[46].mxu1 %vm3885_vm1, %v6658_v32 }
 0x4e5   : > { %10203 = vmatprep.mubr.msk.f32.mxu1 %vm3885_vm1, %v13475_v19  ;;  %v13512_v19 = vld [vmem:[#allocation21_spill] sm:$0xff] }
 0x4e8   : > { %10204 = vmatmul.mubr.msk.f32.vlgmr.msra.gmra.mrb[16].mxu1 %vm3885_vm1, %v13476_v43  ;;  %v13513_v43 = vld [vmem:[#allocation22_spill] sm:$0xff] }
 0x4e9   : > { %10206 = vmatprep.mubr.msk.f32.mxu1 %vm3885_vm1, %v13477_v57  ;;  %v13514_v57 = vld [vmem:[#allocation23_spill] sm:$0xff] }
 0x4ec   : > { %10207 = vmatmul.mubr.msk.f32.gmra.mrb[18].mxu1 %vm3885_vm1, %v13478_v36  ;;  %v13515_v36 = vld [vmem:[#allocation25_spill] sm:$0xff] }
 0x4ed   : > { %10209 = vmatprep.mubr.msk.f32.mxu1 %vm3885_vm1, %v13479_v4  ;;  %v7047_v4 = vld [vmem:[#allocation3 + $0x229] sm:$0xff] }
 0x4f0   : > { %10210 = vmatmul.mubr.msk.f32.gmra.mrb[20].mxu1 %vm3885_vm1, %v13480_v55  ;;  %v13516_v55 = vld [vmem:[#allocation31_spill] sm:$0xff] }
 0x4f1   : > { %10212 = vmatprep.mubr.msk.f32.mxu1 %vm3885_vm1, %v13481_v62  ;;  %v7048_v62 = vld [vmem:[#allocation3 + $0x231] sm:$0xff] }
 0x4f4   : > { %10213 = vmatmul.mubr.msk.f32.gmra.mrb[22].mxu1 %vm3885_vm1, %v13482_v18  ;;  %v13083_v18 = vld [vmem:[%s13197_s4] ss:$0 sm:$0xff] }
 0x4f5   : > { %10215 = vmatprep.mubr.msk.f32.mxu1 %vm3885_vm1, %v13483_v56 }
 0x4f8   : > { %10216 = vmatmul.mubr.msk.f32.gmra.mrb[24].mxu1 %vm3885_vm1, %v13484_v29 }
 0x4f9   : > { %10218 = vmatprep.mubr.msk.f32.mxu1 %vm3885_vm1, %v13485_v0 }
 0x4fc   : > { %10219 = vmatmul.mubr.msk.f32.gmra.mrb[26].mxu1 %vm3885_vm1, %v13486_v54 }
 0x4fd   : > { %10221 = vmatprep.mubr.msk.f32.mxu1 %vm3885_vm1, %v13487_v35 }
 0x500   : > { %10222 = vmatmul.mubr.msk.f32.gmra.mrb[28].mxu1 %vm3885_vm1, %v13488_v52 }
 0x501   : > { %10224 = vmatprep.mubr.msk.f32.mxu1 %vm3885_vm1, %v13489_v8 }
 0x504   : > { %10225 = vmatmul.mubr.msk.f32.gmra.mrb[30].mxu1 %vm3885_vm1, %v13490_v42 }
 0x505   : > { %10227 = vmatprep.mubr.msk.f32.mxu1 %vm3885_vm1, %v13505_v15 }
 0x508   : > { %10228 = vmatmul.mubr.msk.f32.gmra.mrb[32].mxu1 %vm3885_vm1, %v13506_v17 }
 0x509   : > { %10230 = vmatprep.mubr.msk.f32.mxu1 %vm3885_vm1, %v13507_v23 }
 0x50c   : > { %10231 = vmatmul.mubr.msk.f32.gmra.mrb[34].mxu1 %vm3885_vm1, %v13508_v27 }
 0x50d   : > { %10233 = vmatprep.mubr.msk.f32.mxu1 %vm3885_vm1, %v13509_v50 }
 0x510   : > { %10234 = vmatmul.mubr.msk.f32.gmra.mrb[36].mxu1 %vm3885_vm1, %v13496_v51 }
 0x511   : > { %10236 = vmatprep.mubr.msk.f32.mxu1 %vm3885_vm1, %v13510_v58 }
 0x514   : > { %10237 = vmatmul.mubr.msk.f32.gmra.mrb[38].mxu1 %vm3885_vm1, %v13498_v11 }
 0x515   : > { %10239 = vmatprep.mubr.msk.f32.mxu1 %vm3885_vm1, %v13511_v3 }
 0x518   : > { %10240 = vmatmul.mubr.msk.f32.gmra.mrb[40].mxu1 %vm3885_vm1, %v13512_v19 }
 0x519   : > { %10242 = vmatprep.mubr.msk.f32.mxu1 %vm3885_vm1, %v13513_v43 }
 0x51c   : > { %10243 = vmatmul.mubr.msk.f32.gmra.mrb[42].mxu1 %vm3885_vm1, %v13514_v57 }
 0x51d   : > { %10245 = vmatprep.mubr.msk.f32.mxu1 %vm3885_vm1, %v13515_v36 }
 0x520   : > { %10246 = vmatmul.mubr.msk.f32.gmra.mrb[44].mxu1 %vm3885_vm1, %v13516_v55 }
 0x521   : > { %10248 = vmatprep.mubr.msk.f32.mxu1 %vm3885_vm1, %v7047_v4 }
 0x524   : > { %10249 = vmatmul.mubr.msk.f32.gmra.mrb[46].mxu1 %vm3885_vm1, %v7048_v62 }
 0x5bb   : > { %v10205_v56 = vpop.f32.mrb[16].mxu1 }
 0x5bc   : > { %v7414_v29 = vadd.f32 %v10205_v56, %v13083_v18  ;;  %v7216_v0 = vpop.f32.mrb[17].mxu1 }
 0x5bd   : > { %v7413_v54 = vadd.f32 %v13083_v18, %v7216_v0 }
 0x5be   : > { %v7446_v8 = vmax.f32 %v7414_v29, 0.0 }
 0x5bf   : > { %v7445_v35 = vmax.f32 %v7413_v54, 0.0  ;;  %v10208_v52 = vpop.f32.mrb[18].mxu1 }
 0x5c0   : > { %v7416_v42 = vadd.f32 %v10208_v52, %v13083_v18  ;;  %v7226_v51 = vpop.f32.mrb[19].mxu1 }
 0x5c1   : > { %v7415_v11 = vadd.f32 %v13083_v18, %v7226_v51  ;;  %10267 = vmatprep.mubr.msk.f32.mxu0 %vm7492_vm2, %v7445_v35 }
 0x5c2   : > { %10268 = vmatmul.mubr.msk.f32.vlgmr.msra.gmra.mrb[32].mxu0 %vm7492_vm2, %v7446_v8  ;;  %v7448_v14 = vmax.f32 %v7416_v42, 0.0 }
 0x5c3   : > { %v7447_v5 = vmax.f32 %v7415_v11, 0.0  ;;  %v10211_v61 = vpop.f32.mrb[20].mxu1 }
 0x5c4   : > { %v7418_v16 = vadd.f32 %v10211_v61, %v13083_v18  ;;  %v7236_v25 = vpop.f32.mrb[21].mxu1 }
 0x5c5   : > { %v7417_v20 = vadd.f32 %v13083_v18, %v7236_v25  ;;  %10270 = vmatprep.mubr.msk.f32.mxu0 %vm7492_vm2, %v7447_v5 }
 0x5c6   : > { %10271 = vmatmul.mubr.msk.f32.gmra.mrb[34].mxu0 %vm7492_vm2, %v7448_v14  ;;  %v7450_v33 = vmax.f32 %v7418_v16, 0.0 }
 0x5c7   : > { %v7449_v22 = vmax.f32 %v7417_v20, 0.0  ;;  %v10214_v26 = vpop.f32.mrb[22].mxu1 }
 0x5c8   : > { %v7420_v24 = vadd.f32 %v10214_v26, %v13083_v18  ;;  %v7246_v28 = vpop.f32.mrb[23].mxu1 }
 0x5c9   : > { %v7419_v30 = vadd.f32 %v13083_v18, %v7246_v28  ;;  %10273 = vmatprep.mubr.msk.f32.mxu0 %vm7492_vm2, %v7449_v22 }
 0x5ca   : > { %10274 = vmatmul.mubr.msk.f32.gmra.mrb[36].mxu0 %vm7492_vm2, %v7450_v33  ;;  %v7452_v59 = vmax.f32 %v7420_v24, 0.0 }
 0x5cb   : > { %v7451_v48 = vmax.f32 %v7419_v30, 0.0  ;;  %v10217_v49 = vpop.f32.mrb[24].mxu1 }
 0x5cc   : > { %v7422_v31 = vadd.f32 %v10217_v49, %v13083_v18  ;;  %v7256_v63 = vpop.f32.mrb[25].mxu1 }
 0x5cd   : > { %v7421_v44 = vadd.f32 %v13083_v18, %v7256_v63  ;;  %10276 = vmatprep.mubr.msk.f32.mxu0 %vm7492_vm2, %v7451_v48 }
 0x5ce   : > { %10277 = vmatmul.mubr.msk.f32.gmra.mrb[38].mxu0 %vm7492_vm2, %v7452_v59  ;;  %v7454_v2 = vmax.f32 %v7422_v31, 0.0 }
 0x5cf   : > { %v7453_v46 = vmax.f32 %v7421_v44, 0.0  ;;  %v10220_v41 = vpop.f32.mrb[26].mxu1 }
 0x5d0   : > { %v7424_v7 = vadd.f32 %v10220_v41, %v13083_v18  ;;  %v7266_v1 = vpop.f32.mrb[27].mxu1 }
 0x5d1   : > { %v7423_v38 = vadd.f32 %v13083_v18, %v7266_v1  ;;  %10279 = vmatprep.mubr.msk.f32.mxu0 %vm7492_vm2, %v7453_v46 }
 0x5d2   : > { %10280 = vmatmul.mubr.msk.f32.gmra.mrb[40].mxu0 %vm7492_vm2, %v7454_v2  ;;  %v7456_v53 = vmax.f32 %v7424_v7, 0.0 }
 0x5d3   : > { %v7455_v40 = vmax.f32 %v7423_v38, 0.0  ;;  %v10223_v60 = vpop.f32.mrb[28].mxu1  ;;  %v13152_v38 = vld [vmem:[%s13199_s6] ss:$0 sm:$0xff] }
 0x5d4   : > { %v7426_v10 = vadd.f32 %v10223_v60, %v13083_v18  ;;  %v7276_v13 = vpop.f32.mrb[29].mxu1 }
 0x5d5   : > { %v7425_v21 = vadd.f32 %v13083_v18, %v7276_v13  ;;  %10282 = vmatprep.mubr.msk.f32.mxu0 %vm7492_vm2, %v7455_v40 }
 0x5d6   : > { %10283 = vmatmul.mubr.msk.f32.gmra.mrb[42].mxu0 %vm7492_vm2, %v7456_v53  ;;  %v7458_v37 = vmax.f32 %v7426_v10, 0.0 }
 0x5d7   : > { %v7457_v6 = vmax.f32 %v7425_v21, 0.0  ;;  %v10226_v12 = vpop.f32.mrb[30].mxu1 }
 0x5d8   : > { %v7428_v34 = vadd.f32 %v10226_v12, %v13083_v18  ;;  %v7286_v39 = vpop.f32.mrb[31].mxu1 }
 0x5d9   : > { %v7427_v9 = vadd.f32 %v13083_v18, %v7286_v39  ;;  %10285 = vmatprep.mubr.msk.f32.mxu0 %vm7492_vm2, %v7457_v6 }
 0x5da   : > { %10286 = vmatmul.mubr.msk.f32.gmra.mrb[44].mxu0 %vm7492_vm2, %v7458_v37  ;;  %v7460_v32 = vmax.f32 %v7428_v34, 0.0 }
 0x5db   : > { %v7459_v47 = vmax.f32 %v7427_v9, 0.0  ;;  %v10229_v45 = vpop.f32.mrb[32].mxu1 }
 0x5dc   : > { %v7430_v15 = vadd.f32 %v10229_v45, %v13083_v18  ;;  %v7296_v17 = vpop.f32.mrb[33].mxu1 }
 0x5dd   : > { %v7429_v23 = vadd.f32 %v13083_v18, %v7296_v17  ;;  %10288 = vmatprep.mubr.msk.f32.mxu0 %vm7492_vm2, %v7459_v47 }
 0x5de   : > { %10289 = vmatmul.mubr.msk.f32.gmra.mrb[46].mxu0 %vm7492_vm2, %v7460_v32  ;;  %v7462_v58 = vmax.f32 %v7430_v15, 0.0 }
 0x5df   : > { %v7461_v27 = vmax.f32 %v7429_v23, 0.0  ;;  %v10232_v50 = vpop.f32.mrb[34].mxu1 }
 0x5e0   : > { %v7432_v3 = vadd.f32 %v10232_v50, %v13083_v18  ;;  %v7306_v19 = vpop.f32.mrb[35].mxu1 }
 0x5e1   : > { %v7431_v43 = vadd.f32 %v13083_v18, %v7306_v19  ;;  %10291 = vmatprep.mubr.msk.f32.mxu0 %vm7492_vm2, %v7461_v27 }
 0x5e2   : > { %10292 = vmatmul.mubr.msk.f32.gmra.mrb[48].mxu0 %vm7492_vm2, %v7462_v58  ;;  %v7464_v4 = vmax.f32 %v7432_v3, 0.0 }
 0x5e3   : > { %v7463_v57 = vmax.f32 %v7431_v43, 0.0  ;;  %v10235_v36 = vpop.f32.mrb[36].mxu1 }
 0x5e4   : > { %v7434_v55 = vadd.f32 %v10235_v36, %v13083_v18  ;;  %v7316_v62 = vpop.f32.mrb[37].mxu1 }
 0x5e5   : > { %v7433_v56 = vadd.f32 %v13083_v18, %v7316_v62  ;;  %10294 = vmatprep.mubr.msk.f32.mxu0 %vm7492_vm2, %v7463_v57 }
 0x5e6   : > { %10295 = vmatmul.mubr.msk.f32.gmra.mrb[50].mxu0 %vm7492_vm2, %v7464_v4  ;;  %v7466_v54 = vmax.f32 %v7434_v55, 0.0 }
 0x5e7   : > { %v7465_v29 = vmax.f32 %v7433_v56, 0.0  ;;  %v10238_v0 = vpop.f32.mrb[38].mxu1 }
 0x5e8   : > { %v7436_v35 = vadd.f32 %v10238_v0, %v13083_v18  ;;  %v7326_v52 = vpop.f32.mrb[39].mxu1 }
 0x5e9   : > { %v7435_v8 = vadd.f32 %v13083_v18, %v7326_v52  ;;  %10297 = vmatprep.mubr.msk.f32.mxu0 %vm7492_vm2, %v7465_v29 }
 0x5ea   : > { %10298 = vmatmul.mubr.msk.f32.gmra.mrb[52].mxu0 %vm7492_vm2, %v7466_v54  ;;  %v7468_v11 = vmax.f32 %v7436_v35, 0.0 }
 0x5eb   : > { %v7467_v42 = vmax.f32 %v7435_v8, 0.0  ;;  %v10241_v51 = vpop.f32.mrb[40].mxu1 }
 0x5ec   : > { %v7438_v5 = vadd.f32 %v10241_v51, %v13083_v18  ;;  %v7336_v61 = vpop.f32.mrb[41].mxu1 }
 0x5ed   : > { %v7437_v14 = vadd.f32 %v13083_v18, %v7336_v61  ;;  %10300 = vmatprep.mubr.msk.f32.mxu0 %vm7492_vm2, %v7467_v42 }
 0x5ee   : > { %10301 = vmatmul.mubr.msk.f32.gmra.mrb[54].mxu0 %vm7492_vm2, %v7468_v11  ;;  %v7470_v20 = vmax.f32 %v7438_v5, 0.0 }
 0x5ef   : > { %v7469_v16 = vmax.f32 %v7437_v14, 0.0  ;;  %v10244_v25 = vpop.f32.mrb[42].mxu1 }
 0x5f0   : > { %v7440_v22 = vadd.f32 %v10244_v25, %v13083_v18  ;;  %v7346_v26 = vpop.f32.mrb[43].mxu1 }
 0x5f1   : > { %v7439_v33 = vadd.f32 %v13083_v18, %v7346_v26  ;;  %10303 = vmatprep.mubr.msk.f32.mxu0 %vm7492_vm2, %v7469_v16 }
 0x5f2   : > { %10304 = vmatmul.mubr.msk.f32.gmra.mrb[56].mxu0 %vm7492_vm2, %v7470_v20  ;;  %v7472_v30 = vmax.f32 %v7440_v22, 0.0 }
 0x5f3   : > { %v7471_v24 = vmax.f32 %v7439_v33, 0.0  ;;  %v10247_v28 = vpop.f32.mrb[44].mxu1 }
 0x5f4   : > { %v7442_v48 = vadd.f32 %v10247_v28, %v13083_v18  ;;  %v7356_v49 = vpop.f32.mrb[45].mxu1 }
 0x5f5   : > { %v7441_v59 = vadd.f32 %v13083_v18, %v7356_v49  ;;  %10306 = vmatprep.mubr.msk.f32.mxu0 %vm7492_vm2, %v7471_v24 }
 0x5f6   : > { %10307 = vmatmul.mubr.msk.f32.gmra.mrb[58].mxu0 %vm7492_vm2, %v7472_v30  ;;  %v7474_v44 = vmax.f32 %v7442_v48, 0.0 }
 0x5f7   : > { %v7473_v31 = vmax.f32 %v7441_v59, 0.0  ;;  %v10250_v63 = vpop.f32.mrb[46].mxu1 }
 0x5f8   : > { %v7444_v46 = vadd.f32 %v10250_v63, %v13083_v18  ;;  %v7366_v41 = vpop.f32.mrb[47].mxu1 }
 0x5f9   : > { %v7443_v2 = vadd.f32 %v13083_v18, %v7366_v41  ;;  %10309 = vmatprep.mubr.msk.f32.mxu0 %vm7492_vm2, %v7473_v31 }
 0x5fa   : > { %10310 = vmatmul.mubr.msk.f32.gmra.mrb[60].mxu0 %vm7492_vm2, %v7474_v44  ;;  %v7476_v1 = vmax.f32 %v7444_v46, 0.0 }
 0x5fb   : > { %v7475_v7 = vmax.f32 %v7443_v2, 0.0 }
 0x5fd   : > { %10312 = vmatprep.mubr.msk.f32.mxu0 %vm7492_vm2, %v7475_v7 }
 0x5fe   : > { %10313 = vmatmul.mubr.msk.f32.gmra.mrb[62].mxu0 %vm7492_vm2, %v7476_v1 }
 0x695   : > { %v10269_v40 = vpop.f32.mrb[32].mxu0 }
 0x696   : > { %v7655_v60 = vpop.f32.mrb[33].mxu0  ;;  %v7661_v13 = vadd.f32 %v10269_v40, %v13152_v38 }
 0x697   : > { %v7656_v53 = vadd.f32 %v13152_v38, %v7655_v60 }
 0x699   : > { %7814 = vxpose.xlu0.b32.start [1/16] (narrow) %v7656_v53, 24  ;;  %v10272_v18 = vpop.f32.mrb[34].mxu0 }
 0x69a   : > { %v7665_v10 = vpop.f32.mrb[35].mxu0  ;;  %v7671_v39 = vadd.f32 %v10272_v18, %v13152_v38 }
 0x69b   : > { %v7666_v12 = vadd.f32 %v13152_v38, %v7665_v10 }
 0x69d   : > { %7815 = vxpose.xlu0.b32.cont [2/16] (narrow) %v7661_v13, 24  ;;  %v10275_v21 = vpop.f32.mrb[36].mxu0 }
 0x69e   : > { %v7675_v6 = vpop.f32.mrb[37].mxu0  ;;  %v7681_v17 = vadd.f32 %v10275_v21, %v13152_v38 }
 0x69f   : > { %v7676_v45 = vadd.f32 %v13152_v38, %v7675_v6 }
 0x6a1   : > { %7816 = vxpose.xlu0.b32.cont [3/16] (narrow) %v7666_v12, 24  ;;  %v10278_v37 = vpop.f32.mrb[38].mxu0 }
 0x6a2   : > { %v7685_v34 = vpop.f32.mrb[39].mxu0  ;;  %v7691_v19 = vadd.f32 %v10278_v37, %v13152_v38 }
 0x6a3   : > { %v7686_v50 = vadd.f32 %v13152_v38, %v7685_v34 }
 0x6a5   : > { %7817 = vxpose.xlu0.b32.cont [4/16] (narrow) %v7671_v39, 24  ;;  %v10281_v9 = vpop.f32.mrb[40].mxu0 }
 0x6a6   : > { %v7695_v47 = vpop.f32.mrb[41].mxu0  ;;  %v7701_v56 = vadd.f32 %v10281_v9, %v13152_v38 }
 0x6a7   : > { %v7696_v36 = vadd.f32 %v13152_v38, %v7695_v47 }
 0x6a9   : > { %7818 = vxpose.xlu0.b32.cont [5/16] (narrow) %v7676_v45, 24  ;;  %v10284_v32 = vpop.f32.mrb[42].mxu0 }
 0x6aa   : > { %v7705_v15 = vpop.f32.mrb[43].mxu0  ;;  %v7711_v51 = vadd.f32 %v10284_v32, %v13152_v38 }
 0x6ab   : > { %v7706_v35 = vadd.f32 %v13152_v38, %v7705_v15 }
 0x6ad   : > { %7819 = vxpose.xlu0.b32.cont [6/16] (narrow) %v7681_v17, 24  ;;  %v10287_v23 = vpop.f32.mrb[44].mxu0 }
 0x6ae   : > { %v7715_v27 = vpop.f32.mrb[45].mxu0  ;;  %v7721_v24 = vadd.f32 %v10287_v23, %v13152_v38 }
 0x6af   : > { %v7716_v16 = vadd.f32 %v13152_v38, %v7715_v27 }
 0x6b1   : > { %7820 = vxpose.xlu0.b32.cont [7/16] (narrow) %v7686_v50, 24  ;;  %v10290_v58 = vpop.f32.mrb[46].mxu0 }
 0x6b2   : > { %v7725_v3 = vpop.f32.mrb[47].mxu0  ;;  %v7731_v7 = vadd.f32 %v10290_v58, %v13152_v38 }
 0x6b3   : > { %v7726_v31 = vadd.f32 %v13152_v38, %v7725_v3 }
 0x6b5   : > { %7821 = vxpose.xlu0.b32.cont [8/16] (narrow) %v7691_v19, 24  ;;  %v10293_v43 = vpop.f32.mrb[48].mxu0 }
 0x6b6   : > { %v7735_v57 = vpop.f32.mrb[49].mxu0  ;;  %v7741_v29 = vadd.f32 %v10293_v43, %v13152_v38 }
 0x6b7   : > { %v7736_v4 = vadd.f32 %v13152_v38, %v7735_v57 }
 0x6b9   : > { %7822 = vxpose.xlu0.b32.cont [9/16] (narrow) %v7696_v36, 24  ;;  %7846 = vxpose.xlu1.b32.start [1/16] (narrow) %v7736_v4, 24  ;;  %v10296_v55 = vpop.f32.mrb[50].mxu0 }
 0x6ba   : > { %v7745_v62 = vpop.f32.mrb[51].mxu0  ;;  %v7751_v11 = vadd.f32 %v10296_v55, %v13152_v38 }
 0x6bb   : > { %v7746_v52 = vadd.f32 %v13152_v38, %v7745_v62 }
 0x6bd   : > { %7823 = vxpose.xlu0.b32.cont [10/16] (narrow) %v7701_v56, 24  ;;  %7847 = vxpose.xlu1.b32.cont [2/16] (narrow) %v7741_v29, 24  ;;  %v10299_v0 = vpop.f32.mrb[52].mxu0 }
 0x6be   : > { %v7755_v54 = vpop.f32.mrb[53].mxu0  ;;  %v7761_v28 = vadd.f32 %v10299_v0, %v13152_v38 }
 0x6bf   : > { %v7756_v25 = vadd.f32 %v13152_v38, %v7755_v54 }
 0x6c1   : > { %7824 = vxpose.xlu0.b32.cont [11/16] (narrow) %v7706_v35, 24  ;;  %7848 = vxpose.xlu1.b32.cont [3/16] (narrow) %v7746_v52, 24  ;;  %v10302_v8 = vpop.f32.mrb[54].mxu0 }
 0x6c2   : > { %v7765_v42 = vpop.f32.mrb[55].mxu0  ;;  %v7771_v1 = vadd.f32 %v10302_v8, %v13152_v38 }
 0x6c3   : > { %v7766_v63 = vadd.f32 %v13152_v38, %v7765_v42 }
 0x6c5   : > { %7825 = vxpose.xlu0.b32.cont [12/16] (narrow) %v7711_v51, 24  ;;  %7849 = vxpose.xlu1.b32.cont [4/16] (narrow) %v7751_v11, 24  ;;  %v10305_v5 = vpop.f32.mrb[56].mxu0 }
 0x6c6   : > { %v7781_v61 = vadd.f32 %v10305_v5, %v13152_v38  ;;  %v7775_v14 = vpop.f32.mrb[57].mxu0 }
 0x6c7   : > { %v7776_v20 = vadd.f32 %v13152_v38, %v7775_v14 }
 0x6c9   : > { %7826 = vxpose.xlu0.b32.cont [13/16] (narrow) %v7716_v16, 24  ;;  %7850 = vxpose.xlu1.b32.cont [5/16] (narrow) %v7756_v25, 24  ;;  %v10308_v22 = vpop.f32.mrb[58].mxu0 }
 0x6ca   : > { %v7791_v26 = vadd.f32 %v10308_v22, %v13152_v38  ;;  %v7785_v33 = vpop.f32.mrb[59].mxu0 }
 0x6cb   : > { %v7786_v30 = vadd.f32 %v13152_v38, %v7785_v33 }
 0x6cd   : > { %7827 = vxpose.xlu0.b32.cont [14/16] (narrow) %v7721_v24, 24  ;;  %7851 = vxpose.xlu1.b32.cont [6/16] (narrow) %v7761_v28, 24  ;;  %v10311_v48 = vpop.f32.mrb[60].mxu0 }
 0x6ce   : > { %v7801_v49 = vadd.f32 %v10311_v48, %v13152_v38  ;;  %v7795_v59 = vpop.f32.mrb[61].mxu0 }
 0x6cf   : > { %v7796_v44 = vadd.f32 %v13152_v38, %v7795_v59 }
 0x6d1   : > { %7828 = vxpose.xlu0.b32.cont [15/16] (narrow) %v7726_v31, 24  ;;  %7852 = vxpose.xlu1.b32.cont [7/16] (narrow) %v7766_v63, 24  ;;  %v10314_v46 = vpop.f32.mrb[62].mxu0 }
 0x6d2   : > { %v7811_v41 = vadd.f32 %v10314_v46, %v13152_v38  ;;  %v7805_v2 = vpop.f32.mrb[63].mxu0 }
 0x6d3   : > { %v7806_v40 = vadd.f32 %v13152_v38, %v7805_v2 }
 0x6d5   : > { %7829 = vxpose.xlu0.b32.end [16/16] (narrow) %v7731_v7, 24  ;;  %7853 = vxpose.xlu1.b32.cont [8/16] (narrow) %v7771_v1, 24 }
 0x6d9   : > { %7854 = vxpose.xlu1.b32.cont [9/16] (narrow) %v7776_v20, 24 }
 0x6dd   : > { %7855 = vxpose.xlu1.b32.cont [10/16] (narrow) %v7781_v61, 24 }
 0x6e1   : > { %7856 = vxpose.xlu1.b32.cont [11/16] (narrow) %v7786_v30, 24 }
 0x6e5   : > { %7857 = vxpose.xlu1.b32.cont [12/16] (narrow) %v7791_v26, 24 }
 0x6e9   : > { %7858 = vxpose.xlu1.b32.cont [13/16] (narrow) %v7796_v44, 24 }
 0x6ed   : > { %7859 = vxpose.xlu1.b32.cont [14/16] (narrow) %v7801_v49, 24 }
 0x6f1   : > { %7860 = vxpose.xlu1.b32.cont [15/16] (narrow) %v7806_v40, 24 }
 0x6f5   : > { %7861 = vxpose.xlu1.b32.end [16/16] (narrow) %v7811_v41, 24 }
 0x719   : > { %v7830_v60 = vpop.trf.xlu0 }
 0x71a   : > { %7878 = vst [vmem:[%s278_s15] sm:$0xff] %v7830_v60 }
 0x71d   : > { %v7831_v53 = vpop.trf.xlu0 }
 0x71e   : > { %7880 = vst [vmem:[%s278_s15 + $0x10] sm:$0xff] %v7831_v53 }
 0x721   : > { %v7832_v38 = vpop.trf.xlu0 }
 0x722   : > { %7882 = vst [vmem:[%s278_s15 + $0x20] sm:$0xff] %v7832_v38 }
 0x739   : > { %v7862_v18 = vpop.trf.xlu1 }
 0x73a   : > { %7879 = vst [vmem:[%s278_s15 + $0x8] sm:$0xff] %v7862_v18 }
 0x73d   : > { %v7863_v10 = vpop.trf.xlu1 }
 0x73e   : > { %7881 = vst [vmem:[%s278_s15 + $0x18] sm:$0xff] %v7863_v10 }
 0x741   : > { %v7864_v13 = vpop.trf.xlu1 }
 0x742   : > { %7883 = vst [vmem:[%s278_s15 + $0x28] sm:$0xff] %v7864_v13 }
 0x743 PF: > { %s17_s24 = sadd.s32 1, %s10969_s24  }
 0x744   : > { %p14_p4 = scmp.ge.s32.totalorder %s17_s24, 4  }
 0x746   :  { %16 = sbr.rel (!%p14_p4) target bundleno = 1 (0x1), region = 100 }

</bundles_post_ra>
